<compile_context>
chip_gen: v6e
topology: v6e:2x2x1
jax: 0.10.0
libtpu: 0.0.40
codegen_flags: <defaults>
</compile_context>

<pallas_src>
import functools

import numpy as np
import jax
import jax.numpy as jnp
from jax.experimental import pallas as pl
from jax.experimental.pallas import tpu as pltpu


def _deformable_block_kernel(x_ref, w_off_ref, b_off_ref, w_def_ref, b_def_ref,
                             out_ref, patch_ref, samp_ref,
                             *, H, WW, OY, OX, dil, K, Cin):
    HWW = H * WW
    xflat = x_ref[0]                                   # (Cin, HH*WW) zero-padded flat image

    # Contiguous lane-slice of the flat padded image == window shifted by (ry, rx) pixels
    # (original-image coordinates) for every working output position q = h*WW + w.
    cache = {}

    def shifted(ry, rx):
        if (ry, rx) not in cache:
            s = (ry + OY) * WW + (rx + OX)             # static flat shift
            cache[(ry, rx)] = xflat[:, s:s + HWW]      # (Cin, HWW)
        return cache[(ry, rx)]

    # ---- offset conv (3x3, pad=1, dil=1): im2col rows built in-kernel, one MXU matmul ----
    for kh in range(K):
        for kw in range(K):
            k = kh * K + kw
            patch_ref[k * Cin:(k + 1) * Cin, :] = shifted(kh - 1, kw - 1)
    off = jnp.dot(w_off_ref[...], patch_ref[...],
                  preferred_element_type=jnp.float32)  # (2*K*K, HWW)
    off = jnp.clip(off + b_off_ref[...], -1.0, 1.0)    # Hardtanh

    # ---- deformable sampling: per tap, bounded 4x4 window with tent weights ----
    corners = (-1, 0, 1, 2)
    for kh in range(K):
        for kw in range(K):
            k = kh * K + kw
            off_y = off[2 * k:2 * k + 1, :]            # (1, HWW)  torchvision (y, x) order
            off_x = off[2 * k + 1:2 * k + 2, :]
            wy = [jnp.maximum(1.0 - jnp.abs(off_y - dy), 0.0) for dy in corners]
            wx = [jnp.maximum(1.0 - jnp.abs(off_x - dx), 0.0) for dx in corners]
            acc = jnp.zeros((Cin, HWW), jnp.float32)
            for iy, dy in enumerate(corners):
                ry = dil * (kh - 1) + dy
                for ix, dx in enumerate(corners):
                    rx = dil * (kw - 1) + dx
                    acc = acc + (wy[iy] * wx[ix]) * shifted(ry, rx)
            samp_ref[k * Cin:(k + 1) * Cin, :] = acc

    # ---- fused K = 9*Cin contraction, lane-dense (Cout, HWW) output ----
    # TODO(synk): on v6e/v7x cast samp/w_def to bf16 here (~2x MXU rate, half the bytes);
    # kept f32 so the numerics match the f32 reference tightly.
    out = jnp.dot(w_def_ref[...], samp_ref[...], preferred_element_type=jnp.float32)
    out_ref[0] = (out + b_def_ref[...]).astype(out_ref.dtype)


def deformable_block(x, w_off, b_off, w_def, b_def, dilate):
    """x: (N, Cin, H, W) NCHW.  Returns (N, Cout, H, W) NCHW (same as the torch module)."""
    N, Cin, H, W = x.shape
    K = 3
    Coff = 2 * K * K
    Cout = w_def.shape[0]
    d = int(dilate)

    # Canvas geometry: offsets are clipped to [-1, 1], so every sample lies within
    # [-(d+1), d+2] pixels of its output position.  The image is embedded at (OY, OX) in a
    # zero-padded canvas wide/tall enough that every shifted window is a contiguous flat
    # slice of the row-major canvas (one extra bottom row absorbs junk-column wrap-around).
    OY = OX = d + 1
    WW = W + 2 * d + 3
    for cand in range(WW, WW + 16):                    # small round-up so H*WW % 128 == 0
        if (H * cand) % 128 == 0:
            WW = cand
            break
    HH = H + 2 * d + 4
    HWW = H * WW
    KKC = K * K * Cin

    x = x.astype(jnp.float32)
    xpad = jnp.pad(x, ((0, 0), (0, 0), (OY, HH - H - OY), (OX, WW - W - OX)))
    xflat = xpad.reshape(N, Cin, HH * WW)

    # Weights in (out-channel rows) x (kh, kw, cin) matmul layout.
    w_off_m = jnp.transpose(w_off.astype(jnp.float32), (0, 2, 3, 1)).reshape(Coff, KKC)
    w_def_m = jnp.transpose(w_def.astype(jnp.float32), (0, 2, 3, 1)).reshape(Cout, KKC)
    b_off_m = b_off.astype(jnp.float32).reshape(Coff, 1)
    b_def_m = b_def.astype(jnp.float32).reshape(Cout, 1)

    kernel = functools.partial(_deformable_block_kernel,
                               H=H, WW=WW, OY=OY, OX=OX, dil=d, K=K, Cin=Cin)

    # TODO(synk): for very large H*W, tile the pixel axis (halo'd manual DMA) so the
    # per-step footprint stays under v7x's 64 MiB VMEM; one image per grid step is fine here.
    out_flat = pl.pallas_call(
        kernel,
        out_shape=jax.ShapeDtypeStruct((N, Cout, HWW), jnp.float32),
        grid_spec=pltpu.PrefetchScalarGridSpec(
            num_scalar_prefetch=0,
            grid=(N,),
            in_specs=[
                pl.BlockSpec((1, Cin, HH * WW), lambda b: (b, 0, 0)),
                pl.BlockSpec((Coff, KKC), lambda b: (0, 0)),
                pl.BlockSpec((Coff, 1), lambda b: (0, 0)),
                pl.BlockSpec((Cout, KKC), lambda b: (0, 0)),
                pl.BlockSpec((Cout, 1), lambda b: (0, 0)),
            ],
            out_specs=pl.BlockSpec((1, Cout, HWW), lambda b: (b, 0, 0)),
            scratch_shapes=[pltpu.VMEM((KKC, HWW), jnp.float32),   # offset-conv im2col
                            pltpu.VMEM((KKC, HWW), jnp.float32)],  # stacked deform samples
        ),
        compiler_params=pltpu.CompilerParams(dimension_semantics=("parallel",)),
    )(xflat, w_off_m, b_off_m, w_def_m, b_def_m)

    # Crop junk columns; already NCHW -- no transpose needed.
    return out_flat.reshape(N, Cout, H, WW)[:, :, :, :W]


# ------------------------- pure-JAX reference (torchvision semantics) -------------------------
def _bilinear_ref(img, y, x):
    N, C, H, W = img.shape
    oob = (y <= -1.0) | (y >= float(H)) | (x <= -1.0) | (x >= float(W))
    yl = jnp.floor(y); xl = jnp.floor(x)
    ly = y - yl; lx = x - xl
    hy = 1.0 - ly; hx = 1.0 - lx
    yl_i = yl.astype(jnp.int32); xl_i = xl.astype(jnp.int32)
    yh_i = yl_i + 1; xh_i = xl_i + 1

    def gather(r, c):
        rc = jnp.clip(r, 0, H - 1)
        cc = jnp.clip(c, 0, W - 1)
        return jax.vmap(lambda im, rr, ccn: im[:, rr, ccn])(img, rc, cc)

    def corner(r, c, wgt, rvalid, cvalid):
        v = gather(r, c)
        m = (rvalid & cvalid).astype(img.dtype)
        return v * (wgt * m)[:, None]

    v = (corner(yl_i, xl_i, hy * hx, yl_i >= 0, xl_i >= 0)
         + corner(yl_i, xh_i, hy * lx, yl_i >= 0, xh_i <= W - 1)
         + corner(yh_i, xl_i, ly * hx, yh_i <= H - 1, xl_i >= 0)
         + corner(yh_i, xh_i, ly * lx, yh_i <= H - 1, xh_i <= W - 1))
    return jnp.where(oob[:, None], 0.0, v)


def deformable_block_ref(x, w_off, b_off, w_def, b_def, dilate):
    N, Cin, H, W = x.shape
    K = 3
    off = jax.lax.conv_general_dilated(
        x, w_off, window_strides=(1, 1), padding=((1, 1), (1, 1)),
        dimension_numbers=('NCHW', 'OIHW', 'NCHW'),
        precision=jax.lax.Precision.HIGHEST)
    off = off + b_off[None, :, None, None]
    off = jnp.clip(off, -1.0, 1.0)
    hh = jnp.arange(H, dtype=jnp.float32)[:, None]
    ww = jnp.arange(W, dtype=jnp.float32)[None, :]
    out = jnp.zeros((N, w_def.shape[0], H, W), jnp.float32)
    for kh in range(K):
        for kw in range(K):
            k = kh * K + kw
            y = hh - dilate + dilate * kh + off[:, 2 * k]
            xx = ww - dilate + dilate * kw + off[:, 2 * k + 1]
            val = _bilinear_ref(x, y, xx)
            out = out + jnp.einsum('nchw,oc->nohw', val, w_def[:, :, kh, kw],
                                   precision=jax.lax.Precision.HIGHEST)
    return out + b_def[None, :, None, None]


if __name__ == "__main__":
    key = jax.random.PRNGKey(0)
    N, Cin, Cout, H, W = 2, 4, 8, 16, 16
    K = 3
    k1, k2, k3, k4, k5 = jax.random.split(key, 5)
    x = jax.random.normal(k1, (N, Cin, H, W), jnp.float32)
    w_off = jax.random.normal(k2, (2 * K * K, Cin, K, K), jnp.float32) * 0.1
    b_off = jax.random.normal(k3, (2 * K * K,), jnp.float32) * 0.1
    w_def = jax.random.normal(k4, (Cout, Cin, K, K), jnp.float32) * 0.1
    b_def = jax.random.normal(k5, (Cout,), jnp.float32) * 0.1

    for dilate in (1, 2):
        out = jax.block_until_ready(deformable_block(x, w_off, b_off, w_def, b_def, dilate))
        ref = jax.block_until_ready(deformable_block_ref(x, w_off, b_off, w_def, b_def, dilate))
        np.testing.assert_allclose(np.asarray(out), np.asarray(ref), rtol=1e-2, atol=1e-2)
    print("KERNEL_OK")
</pallas_src>

<mosaic_0001>
module attributes {stable_mosaic.version = 11 : i64} {
  func.func @_deformable_block_kernel(%arg0: i32, %arg1: memref<1x4x528xf32, #tpu.memory_space<vmem>>, %arg2: memref<18x36xf32, #tpu.memory_space<vmem>>, %arg3: memref<18x1xf32, #tpu.memory_space<vmem>>, %arg4: memref<8x36xf32, #tpu.memory_space<vmem>>, %arg5: memref<8x1xf32, #tpu.memory_space<vmem>>, %arg6: memref<1x8x384xf32, #tpu.memory_space<vmem>>, %arg7: memref<36x384xf32, #tpu.memory_space<vmem>>, %arg8: memref<36x384xf32, #tpu.memory_space<vmem>>) attributes {dimension_semantics = [#tpu.dimension_semantics<parallel>], iteration_bounds = array<i64: 2>, scalar_prefetch = 0 : i64, scratch_operands = 2 : i64, tpu.core_type = #tpu.core_type<tc>, window_params = [{transform_indices = @transform_0, window_bounds = array<i64: 1, 4, 528>}, {pipeline_mode = #tpu.pipeline_mode<synchronous>, transform_indices = @transform_1, window_bounds = array<i64: 18, 36>}, {pipeline_mode = #tpu.pipeline_mode<synchronous>, transform_indices = @transform_2, window_bounds = array<i64: 18, 1>}, {pipeline_mode = #tpu.pipeline_mode<synchronous>, transform_indices = @transform_3, window_bounds = array<i64: 8, 36>}, {pipeline_mode = #tpu.pipeline_mode<synchronous>, transform_indices = @transform_4, window_bounds = array<i64: 8, 1>}, {transform_indices = @transform_5, window_bounds = array<i64: 1, 8, 384>}]} {
    %c0 = arith.constant 0 : index
    %c0_0 = arith.constant 0 : index
    %c0_1 = arith.constant 0 : index
    %0 = vector.load %arg1[%c0, %c0_0, %c0_1] : memref<1x4x528xf32, #tpu.memory_space<vmem>>, vector<1x4x528xf32>
    %1 = vector.shape_cast %0 : vector<1x4x528xf32> to vector<4x528xf32>
    %2 = vector.extract_strided_slice %1 {offsets = [0, 25], sizes = [4, 384], strides = [1, 1]} : vector<4x528xf32> to vector<4x384xf32>
    %c0_2 = arith.constant 0 : index
    %c0_3 = arith.constant 0 : index
    %3 = vector.load %arg7[%c0_2, %c0_3] : memref<36x384xf32, #tpu.memory_space<vmem>>, vector<4x384xf32>
    tpu.vector_store %arg7[%c0_2, %c0_3], %2 {strides = array<i32>} : memref<36x384xf32, #tpu.memory_space<vmem>>, vector<4x384xf32>,
    %4 = vector.extract_strided_slice %1 {offsets = [0, 26], sizes = [4, 384], strides = [1, 1]} : vector<4x528xf32> to vector<4x384xf32>
    %c4 = arith.constant 4 : index
    %c0_4 = arith.constant 0 : index
    %5 = vector.load %arg7[%c4, %c0_4] : memref<36x384xf32, #tpu.memory_space<vmem>>, vector<4x384xf32>
    tpu.vector_store %arg7[%c4, %c0_4], %4 {strides = array<i32>} : memref<36x384xf32, #tpu.memory_space<vmem>>, vector<4x384xf32>,
    %6 = vector.extract_strided_slice %1 {offsets = [0, 27], sizes = [4, 384], strides = [1, 1]} : vector<4x528xf32> to vector<4x384xf32>
    %c8 = arith.constant 8 : index
    %c0_5 = arith.constant 0 : index
    %7 = vector.load %arg7[%c8, %c0_5] : memref<36x384xf32, #tpu.memory_space<vmem>>, vector<4x384xf32>
    tpu.vector_store %arg7[%c8, %c0_5], %6 {strides = array<i32>} : memref<36x384xf32, #tpu.memory_space<vmem>>, vector<4x384xf32>,
    %8 = vector.extract_strided_slice %1 {offsets = [0, 49], sizes = [4, 384], strides = [1, 1]} : vector<4x528xf32> to vector<4x384xf32>
    %c12 = arith.constant 12 : index
    %c0_6 = arith.constant 0 : index
    %9 = vector.load %arg7[%c12, %c0_6] : memref<36x384xf32, #tpu.memory_space<vmem>>, vector<4x384xf32>
    tpu.vector_store %arg7[%c12, %c0_6], %8 {strides = array<i32>} : memref<36x384xf32, #tpu.memory_space<vmem>>, vector<4x384xf32>,
    %10 = vector.extract_strided_slice %1 {offsets = [0, 50], sizes = [4, 384], strides = [1, 1]} : vector<4x528xf32> to vector<4x384xf32>
    %c16 = arith.constant 16 : index
    %c0_7 = arith.constant 0 : index
    %11 = vector.load %arg7[%c16, %c0_7] : memref<36x384xf32, #tpu.memory_space<vmem>>, vector<4x384xf32>
    tpu.vector_store %arg7[%c16, %c0_7], %10 {strides = array<i32>} : memref<36x384xf32, #tpu.memory_space<vmem>>, vector<4x384xf32>,
    %12 = vector.extract_strided_slice %1 {offsets = [0, 51], sizes = [4, 384], strides = [1, 1]} : vector<4x528xf32> to vector<4x384xf32>
    %c20 = arith.constant 20 : index
    %c0_8 = arith.constant 0 : index
    %13 = vector.load %arg7[%c20, %c0_8] : memref<36x384xf32, #tpu.memory_space<vmem>>, vector<4x384xf32>
    tpu.vector_store %arg7[%c20, %c0_8], %12 {strides = array<i32>} : memref<36x384xf32, #tpu.memory_space<vmem>>, vector<4x384xf32>,
    %14 = vector.extract_strided_slice %1 {offsets = [0, 73], sizes = [4, 384], strides = [1, 1]} : vector<4x528xf32> to vector<4x384xf32>
    %c24 = arith.constant 24 : index
    %c0_9 = arith.constant 0 : index
    %15 = vector.load %arg7[%c24, %c0_9] : memref<36x384xf32, #tpu.memory_space<vmem>>, vector<4x384xf32>
    tpu.vector_store %arg7[%c24, %c0_9], %14 {strides = array<i32>} : memref<36x384xf32, #tpu.memory_space<vmem>>, vector<4x384xf32>,
    %16 = vector.extract_strided_slice %1 {offsets = [0, 74], sizes = [4, 384], strides = [1, 1]} : vector<4x528xf32> to vector<4x384xf32>
    %c28 = arith.constant 28 : index
    %c0_10 = arith.constant 0 : index
    %17 = vector.load %arg7[%c28, %c0_10] : memref<36x384xf32, #tpu.memory_space<vmem>>, vector<4x384xf32>
    tpu.vector_store %arg7[%c28, %c0_10], %16 {strides = array<i32>} : memref<36x384xf32, #tpu.memory_space<vmem>>, vector<4x384xf32>,
    %18 = vector.extract_strided_slice %1 {offsets = [0, 75], sizes = [4, 384], strides = [1, 1]} : vector<4x528xf32> to vector<4x384xf32>
    %c32 = arith.constant 32 : index
    %c0_11 = arith.constant 0 : index
    %19 = vector.load %arg7[%c32, %c0_11] : memref<36x384xf32, #tpu.memory_space<vmem>>, vector<4x384xf32>
    tpu.vector_store %arg7[%c32, %c0_11], %18 {strides = array<i32>} : memref<36x384xf32, #tpu.memory_space<vmem>>, vector<4x384xf32>,
    %c0_12 = arith.constant 0 : index
    %c0_13 = arith.constant 0 : index
    %20 = vector.load %arg2[%c0_12, %c0_13] : memref<18x36xf32, #tpu.memory_space<vmem>>, vector<18x36xf32>
    %c0_14 = arith.constant 0 : index
    %c0_15 = arith.constant 0 : index
    %21 = vector.load %arg7[%c0_14, %c0_15] : memref<36x384xf32, #tpu.memory_space<vmem>>, vector<36x384xf32>
    %cst = arith.constant dense<0.000000e+00> : vector<18x384xf32>
    %22 = tpu.matmul %20, %21, %cst {dimension_numbers = #tpu.dot_dimension_numbers<[1], [0], [0], [1], [0, 0, 1, 1], [], []>} : vector<18x36xf32>, vector<36x384xf32>, vector<18x384xf32> -> vector<18x384xf32>
    %c0_16 = arith.constant 0 : index
    %c0_17 = arith.constant 0 : index
    %23 = vector.load %arg3[%c0_16, %c0_17] : memref<18x1xf32, #tpu.memory_space<vmem>>, vector<18x1xf32>
    %24 = vector.broadcast %23 : vector<18x1xf32> to vector<18x384xf32>
    %25 = arith.addf %22, %24 : vector<18x384xf32>
    %cst_18 = arith.constant -1.000000e+00 : f32
    %cst_19 = arith.constant 1.000000e+00 : f32
    %26 = vector.broadcast %cst_18 : f32 to vector<18x384xf32>
    %27 = arith.maximumf %26, %25 : vector<18x384xf32>
    %28 = vector.broadcast %cst_19 : f32 to vector<18x384xf32>
    %29 = arith.minimumf %28, %27 : vector<18x384xf32>
    %30 = vector.extract_strided_slice %29 {offsets = [0, 0], sizes = [1, 384], strides = [1, 1]} : vector<18x384xf32> to vector<1x384xf32>
    %31 = vector.extract_strided_slice %29 {offsets = [1, 0], sizes = [1, 384], strides = [1, 1]} : vector<18x384xf32> to vector<1x384xf32>
    %cst_20 = arith.constant -1.000000e+00 : f32
    %32 = vector.broadcast %cst_20 : f32 to vector<1x384xf32>
    %33 = arith.subf %30, %32 : vector<1x384xf32>
    %34 = math.absf %33 : vector<1x384xf32>
    %cst_21 = arith.constant 1.000000e+00 : f32
    %35 = vector.broadcast %cst_21 : f32 to vector<1x384xf32>
    %36 = arith.subf %35, %34 : vector<1x384xf32>
    %cst_22 = arith.constant 0.000000e+00 : f32
    %37 = vector.broadcast %cst_22 : f32 to vector<1x384xf32>
    %38 = arith.maximumf %36, %37 : vector<1x384xf32>
    %cst_23 = arith.constant 0.000000e+00 : f32
    %39 = vector.broadcast %cst_23 : f32 to vector<1x384xf32>
    %40 = arith.subf %30, %39 : vector<1x384xf32>
    %41 = math.absf %40 : vector<1x384xf32>
    %cst_24 = arith.constant 1.000000e+00 : f32
    %42 = vector.broadcast %cst_24 : f32 to vector<1x384xf32>
    %43 = arith.subf %42, %41 : vector<1x384xf32>
    %cst_25 = arith.constant 0.000000e+00 : f32
    %44 = vector.broadcast %cst_25 : f32 to vector<1x384xf32>
    %45 = arith.maximumf %43, %44 : vector<1x384xf32>
    %cst_26 = arith.constant 1.000000e+00 : f32
    %46 = vector.broadcast %cst_26 : f32 to vector<1x384xf32>
    %47 = arith.subf %30, %46 : vector<1x384xf32>
    %48 = math.absf %47 : vector<1x384xf32>
    %cst_27 = arith.constant 1.000000e+00 : f32
    %49 = vector.broadcast %cst_27 : f32 to vector<1x384xf32>
    %50 = arith.subf %49, %48 : vector<1x384xf32>
    %cst_28 = arith.constant 0.000000e+00 : f32
    %51 = vector.broadcast %cst_28 : f32 to vector<1x384xf32>
    %52 = arith.maximumf %50, %51 : vector<1x384xf32>
    %cst_29 = arith.constant 2.000000e+00 : f32
    %53 = vector.broadcast %cst_29 : f32 to vector<1x384xf32>
    %54 = arith.subf %30, %53 : vector<1x384xf32>
    %55 = math.absf %54 : vector<1x384xf32>
    %cst_30 = arith.constant 1.000000e+00 : f32
    %56 = vector.broadcast %cst_30 : f32 to vector<1x384xf32>
    %57 = arith.subf %56, %55 : vector<1x384xf32>
    %cst_31 = arith.constant 0.000000e+00 : f32
    %58 = vector.broadcast %cst_31 : f32 to vector<1x384xf32>
    %59 = arith.maximumf %57, %58 : vector<1x384xf32>
    %cst_32 = arith.constant -1.000000e+00 : f32
    %60 = vector.broadcast %cst_32 : f32 to vector<1x384xf32>
    %61 = arith.subf %31, %60 : vector<1x384xf32>
    %62 = math.absf %61 : vector<1x384xf32>
    %cst_33 = arith.constant 1.000000e+00 : f32
    %63 = vector.broadcast %cst_33 : f32 to vector<1x384xf32>
    %64 = arith.subf %63, %62 : vector<1x384xf32>
    %cst_34 = arith.constant 0.000000e+00 : f32
    %65 = vector.broadcast %cst_34 : f32 to vector<1x384xf32>
    %66 = arith.maximumf %64, %65 : vector<1x384xf32>
    %cst_35 = arith.constant 0.000000e+00 : f32
    %67 = vector.broadcast %cst_35 : f32 to vector<1x384xf32>
    %68 = arith.subf %31, %67 : vector<1x384xf32>
    %69 = math.absf %68 : vector<1x384xf32>
    %cst_36 = arith.constant 1.000000e+00 : f32
    %70 = vector.broadcast %cst_36 : f32 to vector<1x384xf32>
    %71 = arith.subf %70, %69 : vector<1x384xf32>
    %cst_37 = arith.constant 0.000000e+00 : f32
    %72 = vector.broadcast %cst_37 : f32 to vector<1x384xf32>
    %73 = arith.maximumf %71, %72 : vector<1x384xf32>
    %cst_38 = arith.constant 1.000000e+00 : f32
    %74 = vector.broadcast %cst_38 : f32 to vector<1x384xf32>
    %75 = arith.subf %31, %74 : vector<1x384xf32>
    %76 = math.absf %75 : vector<1x384xf32>
    %cst_39 = arith.constant 1.000000e+00 : f32
    %77 = vector.broadcast %cst_39 : f32 to vector<1x384xf32>
    %78 = arith.subf %77, %76 : vector<1x384xf32>
    %cst_40 = arith.constant 0.000000e+00 : f32
    %79 = vector.broadcast %cst_40 : f32 to vector<1x384xf32>
    %80 = arith.maximumf %78, %79 : vector<1x384xf32>
    %cst_41 = arith.constant 2.000000e+00 : f32
    %81 = vector.broadcast %cst_41 : f32 to vector<1x384xf32>
    %82 = arith.subf %31, %81 : vector<1x384xf32>
    %83 = math.absf %82 : vector<1x384xf32>
    %cst_42 = arith.constant 1.000000e+00 : f32
    %84 = vector.broadcast %cst_42 : f32 to vector<1x384xf32>
    %85 = arith.subf %84, %83 : vector<1x384xf32>
    %cst_43 = arith.constant 0.000000e+00 : f32
    %86 = vector.broadcast %cst_43 : f32 to vector<1x384xf32>
    %87 = arith.maximumf %85, %86 : vector<1x384xf32>
    %cst_44 = arith.constant 0.000000e+00 : f32
    %88 = vector.broadcast %cst_44 : f32 to vector<4x384xf32>
    %89 = arith.mulf %38, %66 : vector<1x384xf32>
    %90 = vector.extract_strided_slice %1 {offsets = [0, 0], sizes = [4, 384], strides = [1, 1]} : vector<4x528xf32> to vector<4x384xf32>
    %91 = vector.broadcast %89 : vector<1x384xf32> to vector<4x384xf32>
    %92 = arith.mulf %91, %90 : vector<4x384xf32>
    %93 = arith.addf %88, %92 : vector<4x384xf32>
    %94 = arith.mulf %38, %73 : vector<1x384xf32>
    %95 = vector.extract_strided_slice %1 {offsets = [0, 1], sizes = [4, 384], strides = [1, 1]} : vector<4x528xf32> to vector<4x384xf32>
    %96 = vector.broadcast %94 : vector<1x384xf32> to vector<4x384xf32>
    %97 = arith.mulf %96, %95 : vector<4x384xf32>
    %98 = arith.addf %93, %97 : vector<4x384xf32>
    %99 = arith.mulf %38, %80 : vector<1x384xf32>
    %100 = vector.extract_strided_slice %1 {offsets = [0, 2], sizes = [4, 384], strides = [1, 1]} : vector<4x528xf32> to vector<4x384xf32>
    %101 = vector.broadcast %99 : vector<1x384xf32> to vector<4x384xf32>
    %102 = arith.mulf %101, %100 : vector<4x384xf32>
    %103 = arith.addf %98, %102 : vector<4x384xf32>
    %104 = arith.mulf %38, %87 : vector<1x384xf32>
    %105 = vector.extract_strided_slice %1 {offsets = [0, 3], sizes = [4, 384], strides = [1, 1]} : vector<4x528xf32> to vector<4x384xf32>
    %106 = vector.broadcast %104 : vector<1x384xf32> to vector<4x384xf32>
    %107 = arith.mulf %106, %105 : vector<4x384xf32>
    %108 = arith.addf %103, %107 : vector<4x384xf32>
    %109 = arith.mulf %45, %66 : vector<1x384xf32>
    %110 = vector.extract_strided_slice %1 {offsets = [0, 24], sizes = [4, 384], strides = [1, 1]} : vector<4x528xf32> to vector<4x384xf32>
    %111 = vector.broadcast %109 : vector<1x384xf32> to vector<4x384xf32>
    %112 = arith.mulf %111, %110 : vector<4x384xf32>
    %113 = arith.addf %108, %112 : vector<4x384xf32>
    %114 = arith.mulf %45, %73 : vector<1x384xf32>
    %115 = vector.broadcast %114 : vector<1x384xf32> to vector<4x384xf32>
    %116 = arith.mulf %115, %2 : vector<4x384xf32>
    %117 = arith.addf %113, %116 : vector<4x384xf32>
    %118 = arith.mulf %45, %80 : vector<1x384xf32>
    %119 = vector.broadcast %118 : vector<1x384xf32> to vector<4x384xf32>
    %120 = arith.mulf %119, %4 : vector<4x384xf32>
    %121 = arith.addf %117, %120 : vector<4x384xf32>
    %122 = arith.mulf %45, %87 : vector<1x384xf32>
    %123 = vector.broadcast %122 : vector<1x384xf32> to vector<4x384xf32>
    %124 = arith.mulf %123, %6 : vector<4x384xf32>
    %125 = arith.addf %121, %124 : vector<4x384xf32>
    %126 = arith.mulf %52, %66 : vector<1x384xf32>
    %127 = vector.extract_strided_slice %1 {offsets = [0, 48], sizes = [4, 384], strides = [1, 1]} : vector<4x528xf32> to vector<4x384xf32>
    %128 = vector.broadcast %126 : vector<1x384xf32> to vector<4x384xf32>
    %129 = arith.mulf %128, %127 : vector<4x384xf32>
    %130 = arith.addf %125, %129 : vector<4x384xf32>
    %131 = arith.mulf %52, %73 : vector<1x384xf32>
    %132 = vector.broadcast %131 : vector<1x384xf32> to vector<4x384xf32>
    %133 = arith.mulf %132, %8 : vector<4x384xf32>
    %134 = arith.addf %130, %133 : vector<4x384xf32>
    %135 = arith.mulf %52, %80 : vector<1x384xf32>
    %136 = vector.broadcast %135 : vector<1x384xf32> to vector<4x384xf32>
    %137 = arith.mulf %136, %10 : vector<4x384xf32>
    %138 = arith.addf %134, %137 : vector<4x384xf32>
    %139 = arith.mulf %52, %87 : vector<1x384xf32>
    %140 = vector.broadcast %139 : vector<1x384xf32> to vector<4x384xf32>
    %141 = arith.mulf %140, %12 : vector<4x384xf32>
    %142 = arith.addf %138, %141 : vector<4x384xf32>
    %143 = arith.mulf %59, %66 : vector<1x384xf32>
    %144 = vector.extract_strided_slice %1 {offsets = [0, 72], sizes = [4, 384], strides = [1, 1]} : vector<4x528xf32> to vector<4x384xf32>
    %145 = vector.broadcast %143 : vector<1x384xf32> to vector<4x384xf32>
    %146 = arith.mulf %145, %144 : vector<4x384xf32>
    %147 = arith.addf %142, %146 : vector<4x384xf32>
    %148 = arith.mulf %59, %73 : vector<1x384xf32>
    %149 = vector.broadcast %148 : vector<1x384xf32> to vector<4x384xf32>
    %150 = arith.mulf %149, %14 : vector<4x384xf32>
    %151 = arith.addf %147, %150 : vector<4x384xf32>
    %152 = arith.mulf %59, %80 : vector<1x384xf32>
    %153 = vector.broadcast %152 : vector<1x384xf32> to vector<4x384xf32>
    %154 = arith.mulf %153, %16 : vector<4x384xf32>
    %155 = arith.addf %151, %154 : vector<4x384xf32>
    %156 = arith.mulf %59, %87 : vector<1x384xf32>
    %157 = vector.broadcast %156 : vector<1x384xf32> to vector<4x384xf32>
    %158 = arith.mulf %157, %18 : vector<4x384xf32>
    %159 = arith.addf %155, %158 : vector<4x384xf32>
    %c0_45 = arith.constant 0 : index
    %c0_46 = arith.constant 0 : index
    %160 = vector.load %arg8[%c0_45, %c0_46] : memref<36x384xf32, #tpu.memory_space<vmem>>, vector<4x384xf32>
    tpu.vector_store %arg8[%c0_45, %c0_46], %159 {strides = array<i32>} : memref<36x384xf32, #tpu.memory_space<vmem>>, vector<4x384xf32>,
    %161 = vector.extract_strided_slice %29 {offsets = [2, 0], sizes = [1, 384], strides = [1, 1]} : vector<18x384xf32> to vector<1x384xf32>
    %162 = vector.extract_strided_slice %29 {offsets = [3, 0], sizes = [1, 384], strides = [1, 1]} : vector<18x384xf32> to vector<1x384xf32>
    %cst_47 = arith.constant -1.000000e+00 : f32
    %163 = vector.broadcast %cst_47 : f32 to vector<1x384xf32>
    %164 = arith.subf %161, %163 : vector<1x384xf32>
    %165 = math.absf %164 : vector<1x384xf32>
    %cst_48 = arith.constant 1.000000e+00 : f32
    %166 = vector.broadcast %cst_48 : f32 to vector<1x384xf32>
    %167 = arith.subf %166, %165 : vector<1x384xf32>
    %cst_49 = arith.constant 0.000000e+00 : f32
    %168 = vector.broadcast %cst_49 : f32 to vector<1x384xf32>
    %169 = arith.maximumf %167, %168 : vector<1x384xf32>
    %cst_50 = arith.constant 0.000000e+00 : f32
    %170 = vector.broadcast %cst_50 : f32 to vector<1x384xf32>
    %171 = arith.subf %161, %170 : vector<1x384xf32>
    %172 = math.absf %171 : vector<1x384xf32>
    %cst_51 = arith.constant 1.000000e+00 : f32
    %173 = vector.broadcast %cst_51 : f32 to vector<1x384xf32>
    %174 = arith.subf %173, %172 : vector<1x384xf32>
    %cst_52 = arith.constant 0.000000e+00 : f32
    %175 = vector.broadcast %cst_52 : f32 to vector<1x384xf32>
    %176 = arith.maximumf %174, %175 : vector<1x384xf32>
    %cst_53 = arith.constant 1.000000e+00 : f32
    %177 = vector.broadcast %cst_53 : f32 to vector<1x384xf32>
    %178 = arith.subf %161, %177 : vector<1x384xf32>
    %179 = math.absf %178 : vector<1x384xf32>
    %cst_54 = arith.constant 1.000000e+00 : f32
    %180 = vector.broadcast %cst_54 : f32 to vector<1x384xf32>
    %181 = arith.subf %180, %179 : vector<1x384xf32>
    %cst_55 = arith.constant 0.000000e+00 : f32
    %182 = vector.broadcast %cst_55 : f32 to vector<1x384xf32>
    %183 = arith.maximumf %181, %182 : vector<1x384xf32>
    %cst_56 = arith.constant 2.000000e+00 : f32
    %184 = vector.broadcast %cst_56 : f32 to vector<1x384xf32>
    %185 = arith.subf %161, %184 : vector<1x384xf32>
    %186 = math.absf %185 : vector<1x384xf32>
    %cst_57 = arith.constant 1.000000e+00 : f32
    %187 = vector.broadcast %cst_57 : f32 to vector<1x384xf32>
    %188 = arith.subf %187, %186 : vector<1x384xf32>
    %cst_58 = arith.constant 0.000000e+00 : f32
    %189 = vector.broadcast %cst_58 : f32 to vector<1x384xf32>
    %190 = arith.maximumf %188, %189 : vector<1x384xf32>
    %cst_59 = arith.constant -1.000000e+00 : f32
    %191 = vector.broadcast %cst_59 : f32 to vector<1x384xf32>
    %192 = arith.subf %162, %191 : vector<1x384xf32>
    %193 = math.absf %192 : vector<1x384xf32>
    %cst_60 = arith.constant 1.000000e+00 : f32
    %194 = vector.broadcast %cst_60 : f32 to vector<1x384xf32>
    %195 = arith.subf %194, %193 : vector<1x384xf32>
    %cst_61 = arith.constant 0.000000e+00 : f32
    %196 = vector.broadcast %cst_61 : f32 to vector<1x384xf32>
    %197 = arith.maximumf %195, %196 : vector<1x384xf32>
    %cst_62 = arith.constant 0.000000e+00 : f32
    %198 = vector.broadcast %cst_62 : f32 to vector<1x384xf32>
    %199 = arith.subf %162, %198 : vector<1x384xf32>
    %200 = math.absf %199 : vector<1x384xf32>
    %cst_63 = arith.constant 1.000000e+00 : f32
    %201 = vector.broadcast %cst_63 : f32 to vector<1x384xf32>
    %202 = arith.subf %201, %200 : vector<1x384xf32>
    %cst_64 = arith.constant 0.000000e+00 : f32
    %203 = vector.broadcast %cst_64 : f32 to vector<1x384xf32>
    %204 = arith.maximumf %202, %203 : vector<1x384xf32>
    %cst_65 = arith.constant 1.000000e+00 : f32
    %205 = vector.broadcast %cst_65 : f32 to vector<1x384xf32>
    %206 = arith.subf %162, %205 : vector<1x384xf32>
    %207 = math.absf %206 : vector<1x384xf32>
    %cst_66 = arith.constant 1.000000e+00 : f32
    %208 = vector.broadcast %cst_66 : f32 to vector<1x384xf32>
    %209 = arith.subf %208, %207 : vector<1x384xf32>
    %cst_67 = arith.constant 0.000000e+00 : f32
    %210 = vector.broadcast %cst_67 : f32 to vector<1x384xf32>
    %211 = arith.maximumf %209, %210 : vector<1x384xf32>
    %cst_68 = arith.constant 2.000000e+00 : f32
    %212 = vector.broadcast %cst_68 : f32 to vector<1x384xf32>
    %213 = arith.subf %162, %212 : vector<1x384xf32>
    %214 = math.absf %213 : vector<1x384xf32>
    %cst_69 = arith.constant 1.000000e+00 : f32
    %215 = vector.broadcast %cst_69 : f32 to vector<1x384xf32>
    %216 = arith.subf %215, %214 : vector<1x384xf32>
    %cst_70 = arith.constant 0.000000e+00 : f32
    %217 = vector.broadcast %cst_70 : f32 to vector<1x384xf32>
    %218 = arith.maximumf %216, %217 : vector<1x384xf32>
    %cst_71 = arith.constant 0.000000e+00 : f32
    %219 = vector.broadcast %cst_71 : f32 to vector<4x384xf32>
    %220 = arith.mulf %169, %197 : vector<1x384xf32>
    %221 = vector.broadcast %220 : vector<1x384xf32> to vector<4x384xf32>
    %222 = arith.mulf %221, %95 : vector<4x384xf32>
    %223 = arith.addf %219, %222 : vector<4x384xf32>
    %224 = arith.mulf %169, %204 : vector<1x384xf32>
    %225 = vector.broadcast %224 : vector<1x384xf32> to vector<4x384xf32>
    %226 = arith.mulf %225, %100 : vector<4x384xf32>
    %227 = arith.addf %223, %226 : vector<4x384xf32>
    %228 = arith.mulf %169, %211 : vector<1x384xf32>
    %229 = vector.broadcast %228 : vector<1x384xf32> to vector<4x384xf32>
    %230 = arith.mulf %229, %105 : vector<4x384xf32>
    %231 = arith.addf %227, %230 : vector<4x384xf32>
    %232 = arith.mulf %169, %218 : vector<1x384xf32>
    %233 = vector.extract_strided_slice %1 {offsets = [0, 4], sizes = [4, 384], strides = [1, 1]} : vector<4x528xf32> to vector<4x384xf32>
    %234 = vector.broadcast %232 : vector<1x384xf32> to vector<4x384xf32>
    %235 = arith.mulf %234, %233 : vector<4x384xf32>
    %236 = arith.addf %231, %235 : vector<4x384xf32>
    %237 = arith.mulf %176, %197 : vector<1x384xf32>
    %238 = vector.broadcast %237 : vector<1x384xf32> to vector<4x384xf32>
    %239 = arith.mulf %238, %2 : vector<4x384xf32>
    %240 = arith.addf %236, %239 : vector<4x384xf32>
    %241 = arith.mulf %176, %204 : vector<1x384xf32>
    %242 = vector.broadcast %241 : vector<1x384xf32> to vector<4x384xf32>
    %243 = arith.mulf %242, %4 : vector<4x384xf32>
    %244 = arith.addf %240, %243 : vector<4x384xf32>
    %245 = arith.mulf %176, %211 : vector<1x384xf32>
    %246 = vector.broadcast %245 : vector<1x384xf32> to vector<4x384xf32>
    %247 = arith.mulf %246, %6 : vector<4x384xf32>
    %248 = arith.addf %244, %247 : vector<4x384xf32>
    %249 = arith.mulf %176, %218 : vector<1x384xf32>
    %250 = vector.extract_strided_slice %1 {offsets = [0, 28], sizes = [4, 384], strides = [1, 1]} : vector<4x528xf32> to vector<4x384xf32>
    %251 = vector.broadcast %249 : vector<1x384xf32> to vector<4x384xf32>
    %252 = arith.mulf %251, %250 : vector<4x384xf32>
    %253 = arith.addf %248, %252 : vector<4x384xf32>
    %254 = arith.mulf %183, %197 : vector<1x384xf32>
    %255 = vector.broadcast %254 : vector<1x384xf32> to vector<4x384xf32>
    %256 = arith.mulf %255, %8 : vector<4x384xf32>
    %257 = arith.addf %253, %256 : vector<4x384xf32>
    %258 = arith.mulf %183, %204 : vector<1x384xf32>
    %259 = vector.broadcast %258 : vector<1x384xf32> to vector<4x384xf32>
    %260 = arith.mulf %259, %10 : vector<4x384xf32>
    %261 = arith.addf %257, %260 : vector<4x384xf32>
    %262 = arith.mulf %183, %211 : vector<1x384xf32>
    %263 = vector.broadcast %262 : vector<1x384xf32> to vector<4x384xf32>
    %264 = arith.mulf %263, %12 : vector<4x384xf32>
    %265 = arith.addf %261, %264 : vector<4x384xf32>
    %266 = arith.mulf %183, %218 : vector<1x384xf32>
    %267 = vector.extract_strided_slice %1 {offsets = [0, 52], sizes = [4, 384], strides = [1, 1]} : vector<4x528xf32> to vector<4x384xf32>
    %268 = vector.broadcast %266 : vector<1x384xf32> to vector<4x384xf32>
    %269 = arith.mulf %268, %267 : vector<4x384xf32>
    %270 = arith.addf %265, %269 : vector<4x384xf32>
    %271 = arith.mulf %190, %197 : vector<1x384xf32>
    %272 = vector.broadcast %271 : vector<1x384xf32> to vector<4x384xf32>
    %273 = arith.mulf %272, %14 : vector<4x384xf32>
    %274 = arith.addf %270, %273 : vector<4x384xf32>
    %275 = arith.mulf %190, %204 : vector<1x384xf32>
    %276 = vector.broadcast %275 : vector<1x384xf32> to vector<4x384xf32>
    %277 = arith.mulf %276, %16 : vector<4x384xf32>
    %278 = arith.addf %274, %277 : vector<4x384xf32>
    %279 = arith.mulf %190, %211 : vector<1x384xf32>
    %280 = vector.broadcast %279 : vector<1x384xf32> to vector<4x384xf32>
    %281 = arith.mulf %280, %18 : vector<4x384xf32>
    %282 = arith.addf %278, %281 : vector<4x384xf32>
    %283 = arith.mulf %190, %218 : vector<1x384xf32>
    %284 = vector.extract_strided_slice %1 {offsets = [0, 76], sizes = [4, 384], strides = [1, 1]} : vector<4x528xf32> to vector<4x384xf32>
    %285 = vector.broadcast %283 : vector<1x384xf32> to vector<4x384xf32>
    %286 = arith.mulf %285, %284 : vector<4x384xf32>
    %287 = arith.addf %282, %286 : vector<4x384xf32>
    %c4_72 = arith.constant 4 : index
    %c0_73 = arith.constant 0 : index
    %288 = vector.load %arg8[%c4_72, %c0_73] : memref<36x384xf32, #tpu.memory_space<vmem>>, vector<4x384xf32>
    tpu.vector_store %arg8[%c4_72, %c0_73], %287 {strides = array<i32>} : memref<36x384xf32, #tpu.memory_space<vmem>>, vector<4x384xf32>,
    %289 = vector.extract_strided_slice %29 {offsets = [4, 0], sizes = [1, 384], strides = [1, 1]} : vector<18x384xf32> to vector<1x384xf32>
    %290 = vector.extract_strided_slice %29 {offsets = [5, 0], sizes = [1, 384], strides = [1, 1]} : vector<18x384xf32> to vector<1x384xf32>
    %cst_74 = arith.constant -1.000000e+00 : f32
    %291 = vector.broadcast %cst_74 : f32 to vector<1x384xf32>
    %292 = arith.subf %289, %291 : vector<1x384xf32>
    %293 = math.absf %292 : vector<1x384xf32>
    %cst_75 = arith.constant 1.000000e+00 : f32
    %294 = vector.broadcast %cst_75 : f32 to vector<1x384xf32>
    %295 = arith.subf %294, %293 : vector<1x384xf32>
    %cst_76 = arith.constant 0.000000e+00 : f32
    %296 = vector.broadcast %cst_76 : f32 to vector<1x384xf32>
    %297 = arith.maximumf %295, %296 : vector<1x384xf32>
    %cst_77 = arith.constant 0.000000e+00 : f32
    %298 = vector.broadcast %cst_77 : f32 to vector<1x384xf32>
    %299 = arith.subf %289, %298 : vector<1x384xf32>
    %300 = math.absf %299 : vector<1x384xf32>
    %cst_78 = arith.constant 1.000000e+00 : f32
    %301 = vector.broadcast %cst_78 : f32 to vector<1x384xf32>
    %302 = arith.subf %301, %300 : vector<1x384xf32>
    %cst_79 = arith.constant 0.000000e+00 : f32
    %303 = vector.broadcast %cst_79 : f32 to vector<1x384xf32>
    %304 = arith.maximumf %302, %303 : vector<1x384xf32>
    %cst_80 = arith.constant 1.000000e+00 : f32
    %305 = vector.broadcast %cst_80 : f32 to vector<1x384xf32>
    %306 = arith.subf %289, %305 : vector<1x384xf32>
    %307 = math.absf %306 : vector<1x384xf32>
    %cst_81 = arith.constant 1.000000e+00 : f32
    %308 = vector.broadcast %cst_81 : f32 to vector<1x384xf32>
    %309 = arith.subf %308, %307 : vector<1x384xf32>
    %cst_82 = arith.constant 0.000000e+00 : f32
    %310 = vector.broadcast %cst_82 : f32 to vector<1x384xf32>
    %311 = arith.maximumf %309, %310 : vector<1x384xf32>
    %cst_83 = arith.constant 2.000000e+00 : f32
    %312 = vector.broadcast %cst_83 : f32 to vector<1x384xf32>
    %313 = arith.subf %289, %312 : vector<1x384xf32>
    %314 = math.absf %313 : vector<1x384xf32>
    %cst_84 = arith.constant 1.000000e+00 : f32
    %315 = vector.broadcast %cst_84 : f32 to vector<1x384xf32>
    %316 = arith.subf %315, %314 : vector<1x384xf32>
    %cst_85 = arith.constant 0.000000e+00 : f32
    %317 = vector.broadcast %cst_85 : f32 to vector<1x384xf32>
    %318 = arith.maximumf %316, %317 : vector<1x384xf32>
    %cst_86 = arith.constant -1.000000e+00 : f32
    %319 = vector.broadcast %cst_86 : f32 to vector<1x384xf32>
    %320 = arith.subf %290, %319 : vector<1x384xf32>
    %321 = math.absf %320 : vector<1x384xf32>
    %cst_87 = arith.constant 1.000000e+00 : f32
    %322 = vector.broadcast %cst_87 : f32 to vector<1x384xf32>
    %323 = arith.subf %322, %321 : vector<1x384xf32>
    %cst_88 = arith.constant 0.000000e+00 : f32
    %324 = vector.broadcast %cst_88 : f32 to vector<1x384xf32>
    %325 = arith.maximumf %323, %324 : vector<1x384xf32>
    %cst_89 = arith.constant 0.000000e+00 : f32
    %326 = vector.broadcast %cst_89 : f32 to vector<1x384xf32>
    %327 = arith.subf %290, %326 : vector<1x384xf32>
    %328 = math.absf %327 : vector<1x384xf32>
    %cst_90 = arith.constant 1.000000e+00 : f32
    %329 = vector.broadcast %cst_90 : f32 to vector<1x384xf32>
    %330 = arith.subf %329, %328 : vector<1x384xf32>
    %cst_91 = arith.constant 0.000000e+00 : f32
    %331 = vector.broadcast %cst_91 : f32 to vector<1x384xf32>
    %332 = arith.maximumf %330, %331 : vector<1x384xf32>
    %cst_92 = arith.constant 1.000000e+00 : f32
    %333 = vector.broadcast %cst_92 : f32 to vector<1x384xf32>
    %334 = arith.subf %290, %333 : vector<1x384xf32>
    %335 = math.absf %334 : vector<1x384xf32>
    %cst_93 = arith.constant 1.000000e+00 : f32
    %336 = vector.broadcast %cst_93 : f32 to vector<1x384xf32>
    %337 = arith.subf %336, %335 : vector<1x384xf32>
    %cst_94 = arith.constant 0.000000e+00 : f32
    %338 = vector.broadcast %cst_94 : f32 to vector<1x384xf32>
    %339 = arith.maximumf %337, %338 : vector<1x384xf32>
    %cst_95 = arith.constant 2.000000e+00 : f32
    %340 = vector.broadcast %cst_95 : f32 to vector<1x384xf32>
    %341 = arith.subf %290, %340 : vector<1x384xf32>
    %342 = math.absf %341 : vector<1x384xf32>
    %cst_96 = arith.constant 1.000000e+00 : f32
    %343 = vector.broadcast %cst_96 : f32 to vector<1x384xf32>
    %344 = arith.subf %343, %342 : vector<1x384xf32>
    %cst_97 = arith.constant 0.000000e+00 : f32
    %345 = vector.broadcast %cst_97 : f32 to vector<1x384xf32>
    %346 = arith.maximumf %344, %345 : vector<1x384xf32>
    %cst_98 = arith.constant 0.000000e+00 : f32
    %347 = vector.broadcast %cst_98 : f32 to vector<4x384xf32>
    %348 = arith.mulf %297, %325 : vector<1x384xf32>
    %349 = vector.broadcast %348 : vector<1x384xf32> to vector<4x384xf32>
    %350 = arith.mulf %349, %100 : vector<4x384xf32>
    %351 = arith.addf %347, %350 : vector<4x384xf32>
    %352 = arith.mulf %297, %332 : vector<1x384xf32>
    %353 = vector.broadcast %352 : vector<1x384xf32> to vector<4x384xf32>
    %354 = arith.mulf %353, %105 : vector<4x384xf32>
    %355 = arith.addf %351, %354 : vector<4x384xf32>
    %356 = arith.mulf %297, %339 : vector<1x384xf32>
    %357 = vector.broadcast %356 : vector<1x384xf32> to vector<4x384xf32>
    %358 = arith.mulf %357, %233 : vector<4x384xf32>
    %359 = arith.addf %355, %358 : vector<4x384xf32>
    %360 = arith.mulf %297, %346 : vector<1x384xf32>
    %361 = vector.extract_strided_slice %1 {offsets = [0, 5], sizes = [4, 384], strides = [1, 1]} : vector<4x528xf32> to vector<4x384xf32>
    %362 = vector.broadcast %360 : vector<1x384xf32> to vector<4x384xf32>
    %363 = arith.mulf %362, %361 : vector<4x384xf32>
    %364 = arith.addf %359, %363 : vector<4x384xf32>
    %365 = arith.mulf %304, %325 : vector<1x384xf32>
    %366 = vector.broadcast %365 : vector<1x384xf32> to vector<4x384xf32>
    %367 = arith.mulf %366, %4 : vector<4x384xf32>
    %368 = arith.addf %364, %367 : vector<4x384xf32>
    %369 = arith.mulf %304, %332 : vector<1x384xf32>
    %370 = vector.broadcast %369 : vector<1x384xf32> to vector<4x384xf32>
    %371 = arith.mulf %370, %6 : vector<4x384xf32>
    %372 = arith.addf %368, %371 : vector<4x384xf32>
    %373 = arith.mulf %304, %339 : vector<1x384xf32>
    %374 = vector.broadcast %373 : vector<1x384xf32> to vector<4x384xf32>
    %375 = arith.mulf %374, %250 : vector<4x384xf32>
    %376 = arith.addf %372, %375 : vector<4x384xf32>
    %377 = arith.mulf %304, %346 : vector<1x384xf32>
    %378 = vector.extract_strided_slice %1 {offsets = [0, 29], sizes = [4, 384], strides = [1, 1]} : vector<4x528xf32> to vector<4x384xf32>
    %379 = vector.broadcast %377 : vector<1x384xf32> to vector<4x384xf32>
    %380 = arith.mulf %379, %378 : vector<4x384xf32>
    %381 = arith.addf %376, %380 : vector<4x384xf32>
    %382 = arith.mulf %311, %325 : vector<1x384xf32>
    %383 = vector.broadcast %382 : vector<1x384xf32> to vector<4x384xf32>
    %384 = arith.mulf %383, %10 : vector<4x384xf32>
    %385 = arith.addf %381, %384 : vector<4x384xf32>
    %386 = arith.mulf %311, %332 : vector<1x384xf32>
    %387 = vector.broadcast %386 : vector<1x384xf32> to vector<4x384xf32>
    %388 = arith.mulf %387, %12 : vector<4x384xf32>
    %389 = arith.addf %385, %388 : vector<4x384xf32>
    %390 = arith.mulf %311, %339 : vector<1x384xf32>
    %391 = vector.broadcast %390 : vector<1x384xf32> to vector<4x384xf32>
    %392 = arith.mulf %391, %267 : vector<4x384xf32>
    %393 = arith.addf %389, %392 : vector<4x384xf32>
    %394 = arith.mulf %311, %346 : vector<1x384xf32>
    %395 = vector.extract_strided_slice %1 {offsets = [0, 53], sizes = [4, 384], strides = [1, 1]} : vector<4x528xf32> to vector<4x384xf32>
    %396 = vector.broadcast %394 : vector<1x384xf32> to vector<4x384xf32>
    %397 = arith.mulf %396, %395 : vector<4x384xf32>
    %398 = arith.addf %393, %397 : vector<4x384xf32>
    %399 = arith.mulf %318, %325 : vector<1x384xf32>
    %400 = vector.broadcast %399 : vector<1x384xf32> to vector<4x384xf32>
    %401 = arith.mulf %400, %16 : vector<4x384xf32>
    %402 = arith.addf %398, %401 : vector<4x384xf32>
    %403 = arith.mulf %318, %332 : vector<1x384xf32>
    %404 = vector.broadcast %403 : vector<1x384xf32> to vector<4x384xf32>
    %405 = arith.mulf %404, %18 : vector<4x384xf32>
    %406 = arith.addf %402, %405 : vector<4x384xf32>
    %407 = arith.mulf %318, %339 : vector<1x384xf32>
    %408 = vector.broadcast %407 : vector<1x384xf32> to vector<4x384xf32>
    %409 = arith.mulf %408, %284 : vector<4x384xf32>
    %410 = arith.addf %406, %409 : vector<4x384xf32>
    %411 = arith.mulf %318, %346 : vector<1x384xf32>
    %412 = vector.extract_strided_slice %1 {offsets = [0, 77], sizes = [4, 384], strides = [1, 1]} : vector<4x528xf32> to vector<4x384xf32>
    %413 = vector.broadcast %411 : vector<1x384xf32> to vector<4x384xf32>
    %414 = arith.mulf %413, %412 : vector<4x384xf32>
    %415 = arith.addf %410, %414 : vector<4x384xf32>
    %c8_99 = arith.constant 8 : index
    %c0_100 = arith.constant 0 : index
    %416 = vector.load %arg8[%c8_99, %c0_100] : memref<36x384xf32, #tpu.memory_space<vmem>>, vector<4x384xf32>
    tpu.vector_store %arg8[%c8_99, %c0_100], %415 {strides = array<i32>} : memref<36x384xf32, #tpu.memory_space<vmem>>, vector<4x384xf32>,
    %417 = vector.extract_strided_slice %29 {offsets = [6, 0], sizes = [1, 384], strides = [1, 1]} : vector<18x384xf32> to vector<1x384xf32>
    %418 = vector.extract_strided_slice %29 {offsets = [7, 0], sizes = [1, 384], strides = [1, 1]} : vector<18x384xf32> to vector<1x384xf32>
    %cst_101 = arith.constant -1.000000e+00 : f32
    %419 = vector.broadcast %cst_101 : f32 to vector<1x384xf32>
    %420 = arith.subf %417, %419 : vector<1x384xf32>
    %421 = math.absf %420 : vector<1x384xf32>
    %cst_102 = arith.constant 1.000000e+00 : f32
    %422 = vector.broadcast %cst_102 : f32 to vector<1x384xf32>
    %423 = arith.subf %422, %421 : vector<1x384xf32>
    %cst_103 = arith.constant 0.000000e+00 : f32
    %424 = vector.broadcast %cst_103 : f32 to vector<1x384xf32>
    %425 = arith.maximumf %423, %424 : vector<1x384xf32>
    %cst_104 = arith.constant 0.000000e+00 : f32
    %426 = vector.broadcast %cst_104 : f32 to vector<1x384xf32>
    %427 = arith.subf %417, %426 : vector<1x384xf32>
    %428 = math.absf %427 : vector<1x384xf32>
    %cst_105 = arith.constant 1.000000e+00 : f32
    %429 = vector.broadcast %cst_105 : f32 to vector<1x384xf32>
    %430 = arith.subf %429, %428 : vector<1x384xf32>
    %cst_106 = arith.constant 0.000000e+00 : f32
    %431 = vector.broadcast %cst_106 : f32 to vector<1x384xf32>
    %432 = arith.maximumf %430, %431 : vector<1x384xf32>
    %cst_107 = arith.constant 1.000000e+00 : f32
    %433 = vector.broadcast %cst_107 : f32 to vector<1x384xf32>
    %434 = arith.subf %417, %433 : vector<1x384xf32>
    %435 = math.absf %434 : vector<1x384xf32>
    %cst_108 = arith.constant 1.000000e+00 : f32
    %436 = vector.broadcast %cst_108 : f32 to vector<1x384xf32>
    %437 = arith.subf %436, %435 : vector<1x384xf32>
    %cst_109 = arith.constant 0.000000e+00 : f32
    %438 = vector.broadcast %cst_109 : f32 to vector<1x384xf32>
    %439 = arith.maximumf %437, %438 : vector<1x384xf32>
    %cst_110 = arith.constant 2.000000e+00 : f32
    %440 = vector.broadcast %cst_110 : f32 to vector<1x384xf32>
    %441 = arith.subf %417, %440 : vector<1x384xf32>
    %442 = math.absf %441 : vector<1x384xf32>
    %cst_111 = arith.constant 1.000000e+00 : f32
    %443 = vector.broadcast %cst_111 : f32 to vector<1x384xf32>
    %444 = arith.subf %443, %442 : vector<1x384xf32>
    %cst_112 = arith.constant 0.000000e+00 : f32
    %445 = vector.broadcast %cst_112 : f32 to vector<1x384xf32>
    %446 = arith.maximumf %444, %445 : vector<1x384xf32>
    %cst_113 = arith.constant -1.000000e+00 : f32
    %447 = vector.broadcast %cst_113 : f32 to vector<1x384xf32>
    %448 = arith.subf %418, %447 : vector<1x384xf32>
    %449 = math.absf %448 : vector<1x384xf32>
    %cst_114 = arith.constant 1.000000e+00 : f32
    %450 = vector.broadcast %cst_114 : f32 to vector<1x384xf32>
    %451 = arith.subf %450, %449 : vector<1x384xf32>
    %cst_115 = arith.constant 0.000000e+00 : f32
    %452 = vector.broadcast %cst_115 : f32 to vector<1x384xf32>
    %453 = arith.maximumf %451, %452 : vector<1x384xf32>
    %cst_116 = arith.constant 0.000000e+00 : f32
    %454 = vector.broadcast %cst_116 : f32 to vector<1x384xf32>
    %455 = arith.subf %418, %454 : vector<1x384xf32>
    %456 = math.absf %455 : vector<1x384xf32>
    %cst_117 = arith.constant 1.000000e+00 : f32
    %457 = vector.broadcast %cst_117 : f32 to vector<1x384xf32>
    %458 = arith.subf %457, %456 : vector<1x384xf32>
    %cst_118 = arith.constant 0.000000e+00 : f32
    %459 = vector.broadcast %cst_118 : f32 to vector<1x384xf32>
    %460 = arith.maximumf %458, %459 : vector<1x384xf32>
    %cst_119 = arith.constant 1.000000e+00 : f32
    %461 = vector.broadcast %cst_119 : f32 to vector<1x384xf32>
    %462 = arith.subf %418, %461 : vector<1x384xf32>
    %463 = math.absf %462 : vector<1x384xf32>
    %cst_120 = arith.constant 1.000000e+00 : f32
    %464 = vector.broadcast %cst_120 : f32 to vector<1x384xf32>
    %465 = arith.subf %464, %463 : vector<1x384xf32>
    %cst_121 = arith.constant 0.000000e+00 : f32
    %466 = vector.broadcast %cst_121 : f32 to vector<1x384xf32>
    %467 = arith.maximumf %465, %466 : vector<1x384xf32>
    %cst_122 = arith.constant 2.000000e+00 : f32
    %468 = vector.broadcast %cst_122 : f32 to vector<1x384xf32>
    %469 = arith.subf %418, %468 : vector<1x384xf32>
    %470 = math.absf %469 : vector<1x384xf32>
    %cst_123 = arith.constant 1.000000e+00 : f32
    %471 = vector.broadcast %cst_123 : f32 to vector<1x384xf32>
    %472 = arith.subf %471, %470 : vector<1x384xf32>
    %cst_124 = arith.constant 0.000000e+00 : f32
    %473 = vector.broadcast %cst_124 : f32 to vector<1x384xf32>
    %474 = arith.maximumf %472, %473 : vector<1x384xf32>
    %cst_125 = arith.constant 0.000000e+00 : f32
    %475 = vector.broadcast %cst_125 : f32 to vector<4x384xf32>
    %476 = arith.mulf %425, %453 : vector<1x384xf32>
    %477 = vector.broadcast %476 : vector<1x384xf32> to vector<4x384xf32>
    %478 = arith.mulf %477, %110 : vector<4x384xf32>
    %479 = arith.addf %475, %478 : vector<4x384xf32>
    %480 = arith.mulf %425, %460 : vector<1x384xf32>
    %481 = vector.broadcast %480 : vector<1x384xf32> to vector<4x384xf32>
    %482 = arith.mulf %481, %2 : vector<4x384xf32>
    %483 = arith.addf %479, %482 : vector<4x384xf32>
    %484 = arith.mulf %425, %467 : vector<1x384xf32>
    %485 = vector.broadcast %484 : vector<1x384xf32> to vector<4x384xf32>
    %486 = arith.mulf %485, %4 : vector<4x384xf32>
    %487 = arith.addf %483, %486 : vector<4x384xf32>
    %488 = arith.mulf %425, %474 : vector<1x384xf32>
    %489 = vector.broadcast %488 : vector<1x384xf32> to vector<4x384xf32>
    %490 = arith.mulf %489, %6 : vector<4x384xf32>
    %491 = arith.addf %487, %490 : vector<4x384xf32>
    %492 = arith.mulf %432, %453 : vector<1x384xf32>
    %493 = vector.broadcast %492 : vector<1x384xf32> to vector<4x384xf32>
    %494 = arith.mulf %493, %127 : vector<4x384xf32>
    %495 = arith.addf %491, %494 : vector<4x384xf32>
    %496 = arith.mulf %432, %460 : vector<1x384xf32>
    %497 = vector.broadcast %496 : vector<1x384xf32> to vector<4x384xf32>
    %498 = arith.mulf %497, %8 : vector<4x384xf32>
    %499 = arith.addf %495, %498 : vector<4x384xf32>
    %500 = arith.mulf %432, %467 : vector<1x384xf32>
    %501 = vector.broadcast %500 : vector<1x384xf32> to vector<4x384xf32>
    %502 = arith.mulf %501, %10 : vector<4x384xf32>
    %503 = arith.addf %499, %502 : vector<4x384xf32>
    %504 = arith.mulf %432, %474 : vector<1x384xf32>
    %505 = vector.broadcast %504 : vector<1x384xf32> to vector<4x384xf32>
    %506 = arith.mulf %505, %12 : vector<4x384xf32>
    %507 = arith.addf %503, %506 : vector<4x384xf32>
    %508 = arith.mulf %439, %453 : vector<1x384xf32>
    %509 = vector.broadcast %508 : vector<1x384xf32> to vector<4x384xf32>
    %510 = arith.mulf %509, %144 : vector<4x384xf32>
    %511 = arith.addf %507, %510 : vector<4x384xf32>
    %512 = arith.mulf %439, %460 : vector<1x384xf32>
    %513 = vector.broadcast %512 : vector<1x384xf32> to vector<4x384xf32>
    %514 = arith.mulf %513, %14 : vector<4x384xf32>
    %515 = arith.addf %511, %514 : vector<4x384xf32>
    %516 = arith.mulf %439, %467 : vector<1x384xf32>
    %517 = vector.broadcast %516 : vector<1x384xf32> to vector<4x384xf32>
    %518 = arith.mulf %517, %16 : vector<4x384xf32>
    %519 = arith.addf %515, %518 : vector<4x384xf32>
    %520 = arith.mulf %439, %474 : vector<1x384xf32>
    %521 = vector.broadcast %520 : vector<1x384xf32> to vector<4x384xf32>
    %522 = arith.mulf %521, %18 : vector<4x384xf32>
    %523 = arith.addf %519, %522 : vector<4x384xf32>
    %524 = arith.mulf %446, %453 : vector<1x384xf32>
    %525 = vector.extract_strided_slice %1 {offsets = [0, 96], sizes = [4, 384], strides = [1, 1]} : vector<4x528xf32> to vector<4x384xf32>
    %526 = vector.broadcast %524 : vector<1x384xf32> to vector<4x384xf32>
    %527 = arith.mulf %526, %525 : vector<4x384xf32>
    %528 = arith.addf %523, %527 : vector<4x384xf32>
    %529 = arith.mulf %446, %460 : vector<1x384xf32>
    %530 = vector.extract_strided_slice %1 {offsets = [0, 97], sizes = [4, 384], strides = [1, 1]} : vector<4x528xf32> to vector<4x384xf32>
    %531 = vector.broadcast %529 : vector<1x384xf32> to vector<4x384xf32>
    %532 = arith.mulf %531, %530 : vector<4x384xf32>
    %533 = arith.addf %528, %532 : vector<4x384xf32>
    %534 = arith.mulf %446, %467 : vector<1x384xf32>
    %535 = vector.extract_strided_slice %1 {offsets = [0, 98], sizes = [4, 384], strides = [1, 1]} : vector<4x528xf32> to vector<4x384xf32>
    %536 = vector.broadcast %534 : vector<1x384xf32> to vector<4x384xf32>
    %537 = arith.mulf %536, %535 : vector<4x384xf32>
    %538 = arith.addf %533, %537 : vector<4x384xf32>
    %539 = arith.mulf %446, %474 : vector<1x384xf32>
    %540 = vector.extract_strided_slice %1 {offsets = [0, 99], sizes = [4, 384], strides = [1, 1]} : vector<4x528xf32> to vector<4x384xf32>
    %541 = vector.broadcast %539 : vector<1x384xf32> to vector<4x384xf32>
    %542 = arith.mulf %541, %540 : vector<4x384xf32>
    %543 = arith.addf %538, %542 : vector<4x384xf32>
    %c12_126 = arith.constant 12 : index
    %c0_127 = arith.constant 0 : index
    %544 = vector.load %arg8[%c12_126, %c0_127] : memref<36x384xf32, #tpu.memory_space<vmem>>, vector<4x384xf32>
    tpu.vector_store %arg8[%c12_126, %c0_127], %543 {strides = array<i32>} : memref<36x384xf32, #tpu.memory_space<vmem>>, vector<4x384xf32>,
    %545 = vector.extract_strided_slice %29 {offsets = [8, 0], sizes = [1, 384], strides = [1, 1]} : vector<18x384xf32> to vector<1x384xf32>
    %546 = vector.extract_strided_slice %29 {offsets = [9, 0], sizes = [1, 384], strides = [1, 1]} : vector<18x384xf32> to vector<1x384xf32>
    %cst_128 = arith.constant -1.000000e+00 : f32
    %547 = vector.broadcast %cst_128 : f32 to vector<1x384xf32>
    %548 = arith.subf %545, %547 : vector<1x384xf32>
    %549 = math.absf %548 : vector<1x384xf32>
    %cst_129 = arith.constant 1.000000e+00 : f32
    %550 = vector.broadcast %cst_129 : f32 to vector<1x384xf32>
    %551 = arith.subf %550, %549 : vector<1x384xf32>
    %cst_130 = arith.constant 0.000000e+00 : f32
    %552 = vector.broadcast %cst_130 : f32 to vector<1x384xf32>
    %553 = arith.maximumf %551, %552 : vector<1x384xf32>
    %cst_131 = arith.constant 0.000000e+00 : f32
    %554 = vector.broadcast %cst_131 : f32 to vector<1x384xf32>
    %555 = arith.subf %545, %554 : vector<1x384xf32>
    %556 = math.absf %555 : vector<1x384xf32>
    %cst_132 = arith.constant 1.000000e+00 : f32
    %557 = vector.broadcast %cst_132 : f32 to vector<1x384xf32>
    %558 = arith.subf %557, %556 : vector<1x384xf32>
    %cst_133 = arith.constant 0.000000e+00 : f32
    %559 = vector.broadcast %cst_133 : f32 to vector<1x384xf32>
    %560 = arith.maximumf %558, %559 : vector<1x384xf32>
    %cst_134 = arith.constant 1.000000e+00 : f32
    %561 = vector.broadcast %cst_134 : f32 to vector<1x384xf32>
    %562 = arith.subf %545, %561 : vector<1x384xf32>
    %563 = math.absf %562 : vector<1x384xf32>
    %cst_135 = arith.constant 1.000000e+00 : f32
    %564 = vector.broadcast %cst_135 : f32 to vector<1x384xf32>
    %565 = arith.subf %564, %563 : vector<1x384xf32>
    %cst_136 = arith.constant 0.000000e+00 : f32
    %566 = vector.broadcast %cst_136 : f32 to vector<1x384xf32>
    %567 = arith.maximumf %565, %566 : vector<1x384xf32>
    %cst_137 = arith.constant 2.000000e+00 : f32
    %568 = vector.broadcast %cst_137 : f32 to vector<1x384xf32>
    %569 = arith.subf %545, %568 : vector<1x384xf32>
    %570 = math.absf %569 : vector<1x384xf32>
    %cst_138 = arith.constant 1.000000e+00 : f32
    %571 = vector.broadcast %cst_138 : f32 to vector<1x384xf32>
    %572 = arith.subf %571, %570 : vector<1x384xf32>
    %cst_139 = arith.constant 0.000000e+00 : f32
    %573 = vector.broadcast %cst_139 : f32 to vector<1x384xf32>
    %574 = arith.maximumf %572, %573 : vector<1x384xf32>
    %cst_140 = arith.constant -1.000000e+00 : f32
    %575 = vector.broadcast %cst_140 : f32 to vector<1x384xf32>
    %576 = arith.subf %546, %575 : vector<1x384xf32>
    %577 = math.absf %576 : vector<1x384xf32>
    %cst_141 = arith.constant 1.000000e+00 : f32
    %578 = vector.broadcast %cst_141 : f32 to vector<1x384xf32>
    %579 = arith.subf %578, %577 : vector<1x384xf32>
    %cst_142 = arith.constant 0.000000e+00 : f32
    %580 = vector.broadcast %cst_142 : f32 to vector<1x384xf32>
    %581 = arith.maximumf %579, %580 : vector<1x384xf32>
    %cst_143 = arith.constant 0.000000e+00 : f32
    %582 = vector.broadcast %cst_143 : f32 to vector<1x384xf32>
    %583 = arith.subf %546, %582 : vector<1x384xf32>
    %584 = math.absf %583 : vector<1x384xf32>
    %cst_144 = arith.constant 1.000000e+00 : f32
    %585 = vector.broadcast %cst_144 : f32 to vector<1x384xf32>
    %586 = arith.subf %585, %584 : vector<1x384xf32>
    %cst_145 = arith.constant 0.000000e+00 : f32
    %587 = vector.broadcast %cst_145 : f32 to vector<1x384xf32>
    %588 = arith.maximumf %586, %587 : vector<1x384xf32>
    %cst_146 = arith.constant 1.000000e+00 : f32
    %589 = vector.broadcast %cst_146 : f32 to vector<1x384xf32>
    %590 = arith.subf %546, %589 : vector<1x384xf32>
    %591 = math.absf %590 : vector<1x384xf32>
    %cst_147 = arith.constant 1.000000e+00 : f32
    %592 = vector.broadcast %cst_147 : f32 to vector<1x384xf32>
    %593 = arith.subf %592, %591 : vector<1x384xf32>
    %cst_148 = arith.constant 0.000000e+00 : f32
    %594 = vector.broadcast %cst_148 : f32 to vector<1x384xf32>
    %595 = arith.maximumf %593, %594 : vector<1x384xf32>
    %cst_149 = arith.constant 2.000000e+00 : f32
    %596 = vector.broadcast %cst_149 : f32 to vector<1x384xf32>
    %597 = arith.subf %546, %596 : vector<1x384xf32>
    %598 = math.absf %597 : vector<1x384xf32>
    %cst_150 = arith.constant 1.000000e+00 : f32
    %599 = vector.broadcast %cst_150 : f32 to vector<1x384xf32>
    %600 = arith.subf %599, %598 : vector<1x384xf32>
    %cst_151 = arith.constant 0.000000e+00 : f32
    %601 = vector.broadcast %cst_151 : f32 to vector<1x384xf32>
    %602 = arith.maximumf %600, %601 : vector<1x384xf32>
    %cst_152 = arith.constant 0.000000e+00 : f32
    %603 = vector.broadcast %cst_152 : f32 to vector<4x384xf32>
    %604 = arith.mulf %553, %581 : vector<1x384xf32>
    %605 = vector.broadcast %604 : vector<1x384xf32> to vector<4x384xf32>
    %606 = arith.mulf %605, %2 : vector<4x384xf32>
    %607 = arith.addf %603, %606 : vector<4x384xf32>
    %608 = arith.mulf %553, %588 : vector<1x384xf32>
    %609 = vector.broadcast %608 : vector<1x384xf32> to vector<4x384xf32>
    %610 = arith.mulf %609, %4 : vector<4x384xf32>
    %611 = arith.addf %607, %610 : vector<4x384xf32>
    %612 = arith.mulf %553, %595 : vector<1x384xf32>
    %613 = vector.broadcast %612 : vector<1x384xf32> to vector<4x384xf32>
    %614 = arith.mulf %613, %6 : vector<4x384xf32>
    %615 = arith.addf %611, %614 : vector<4x384xf32>
    %616 = arith.mulf %553, %602 : vector<1x384xf32>
    %617 = vector.broadcast %616 : vector<1x384xf32> to vector<4x384xf32>
    %618 = arith.mulf %617, %250 : vector<4x384xf32>
    %619 = arith.addf %615, %618 : vector<4x384xf32>
    %620 = arith.mulf %560, %581 : vector<1x384xf32>
    %621 = vector.broadcast %620 : vector<1x384xf32> to vector<4x384xf32>
    %622 = arith.mulf %621, %8 : vector<4x384xf32>
    %623 = arith.addf %619, %622 : vector<4x384xf32>
    %624 = arith.mulf %560, %588 : vector<1x384xf32>
    %625 = vector.broadcast %624 : vector<1x384xf32> to vector<4x384xf32>
    %626 = arith.mulf %625, %10 : vector<4x384xf32>
    %627 = arith.addf %623, %626 : vector<4x384xf32>
    %628 = arith.mulf %560, %595 : vector<1x384xf32>
    %629 = vector.broadcast %628 : vector<1x384xf32> to vector<4x384xf32>
    %630 = arith.mulf %629, %12 : vector<4x384xf32>
    %631 = arith.addf %627, %630 : vector<4x384xf32>
    %632 = arith.mulf %560, %602 : vector<1x384xf32>
    %633 = vector.broadcast %632 : vector<1x384xf32> to vector<4x384xf32>
    %634 = arith.mulf %633, %267 : vector<4x384xf32>
    %635 = arith.addf %631, %634 : vector<4x384xf32>
    %636 = arith.mulf %567, %581 : vector<1x384xf32>
    %637 = vector.broadcast %636 : vector<1x384xf32> to vector<4x384xf32>
    %638 = arith.mulf %637, %14 : vector<4x384xf32>
    %639 = arith.addf %635, %638 : vector<4x384xf32>
    %640 = arith.mulf %567, %588 : vector<1x384xf32>
    %641 = vector.broadcast %640 : vector<1x384xf32> to vector<4x384xf32>
    %642 = arith.mulf %641, %16 : vector<4x384xf32>
    %643 = arith.addf %639, %642 : vector<4x384xf32>
    %644 = arith.mulf %567, %595 : vector<1x384xf32>
    %645 = vector.broadcast %644 : vector<1x384xf32> to vector<4x384xf32>
    %646 = arith.mulf %645, %18 : vector<4x384xf32>
    %647 = arith.addf %643, %646 : vector<4x384xf32>
    %648 = arith.mulf %567, %602 : vector<1x384xf32>
    %649 = vector.broadcast %648 : vector<1x384xf32> to vector<4x384xf32>
    %650 = arith.mulf %649, %284 : vector<4x384xf32>
    %651 = arith.addf %647, %650 : vector<4x384xf32>
    %652 = arith.mulf %574, %581 : vector<1x384xf32>
    %653 = vector.broadcast %652 : vector<1x384xf32> to vector<4x384xf32>
    %654 = arith.mulf %653, %530 : vector<4x384xf32>
    %655 = arith.addf %651, %654 : vector<4x384xf32>
    %656 = arith.mulf %574, %588 : vector<1x384xf32>
    %657 = vector.broadcast %656 : vector<1x384xf32> to vector<4x384xf32>
    %658 = arith.mulf %657, %535 : vector<4x384xf32>
    %659 = arith.addf %655, %658 : vector<4x384xf32>
    %660 = arith.mulf %574, %595 : vector<1x384xf32>
    %661 = vector.broadcast %660 : vector<1x384xf32> to vector<4x384xf32>
    %662 = arith.mulf %661, %540 : vector<4x384xf32>
    %663 = arith.addf %659, %662 : vector<4x384xf32>
    %664 = arith.mulf %574, %602 : vector<1x384xf32>
    %665 = vector.extract_strided_slice %1 {offsets = [0, 100], sizes = [4, 384], strides = [1, 1]} : vector<4x528xf32> to vector<4x384xf32>
    %666 = vector.broadcast %664 : vector<1x384xf32> to vector<4x384xf32>
    %667 = arith.mulf %666, %665 : vector<4x384xf32>
    %668 = arith.addf %663, %667 : vector<4x384xf32>
    %c16_153 = arith.constant 16 : index
    %c0_154 = arith.constant 0 : index
    %669 = vector.load %arg8[%c16_153, %c0_154] : memref<36x384xf32, #tpu.memory_space<vmem>>, vector<4x384xf32>
    tpu.vector_store %arg8[%c16_153, %c0_154], %668 {strides = array<i32>} : memref<36x384xf32, #tpu.memory_space<vmem>>, vector<4x384xf32>,
    %670 = vector.extract_strided_slice %29 {offsets = [10, 0], sizes = [1, 384], strides = [1, 1]} : vector<18x384xf32> to vector<1x384xf32>
    %671 = vector.extract_strided_slice %29 {offsets = [11, 0], sizes = [1, 384], strides = [1, 1]} : vector<18x384xf32> to vector<1x384xf32>
    %cst_155 = arith.constant -1.000000e+00 : f32
    %672 = vector.broadcast %cst_155 : f32 to vector<1x384xf32>
    %673 = arith.subf %670, %672 : vector<1x384xf32>
    %674 = math.absf %673 : vector<1x384xf32>
    %cst_156 = arith.constant 1.000000e+00 : f32
    %675 = vector.broadcast %cst_156 : f32 to vector<1x384xf32>
    %676 = arith.subf %675, %674 : vector<1x384xf32>
    %cst_157 = arith.constant 0.000000e+00 : f32
    %677 = vector.broadcast %cst_157 : f32 to vector<1x384xf32>
    %678 = arith.maximumf %676, %677 : vector<1x384xf32>
    %cst_158 = arith.constant 0.000000e+00 : f32
    %679 = vector.broadcast %cst_158 : f32 to vector<1x384xf32>
    %680 = arith.subf %670, %679 : vector<1x384xf32>
    %681 = math.absf %680 : vector<1x384xf32>
    %cst_159 = arith.constant 1.000000e+00 : f32
    %682 = vector.broadcast %cst_159 : f32 to vector<1x384xf32>
    %683 = arith.subf %682, %681 : vector<1x384xf32>
    %cst_160 = arith.constant 0.000000e+00 : f32
    %684 = vector.broadcast %cst_160 : f32 to vector<1x384xf32>
    %685 = arith.maximumf %683, %684 : vector<1x384xf32>
    %cst_161 = arith.constant 1.000000e+00 : f32
    %686 = vector.broadcast %cst_161 : f32 to vector<1x384xf32>
    %687 = arith.subf %670, %686 : vector<1x384xf32>
    %688 = math.absf %687 : vector<1x384xf32>
    %cst_162 = arith.constant 1.000000e+00 : f32
    %689 = vector.broadcast %cst_162 : f32 to vector<1x384xf32>
    %690 = arith.subf %689, %688 : vector<1x384xf32>
    %cst_163 = arith.constant 0.000000e+00 : f32
    %691 = vector.broadcast %cst_163 : f32 to vector<1x384xf32>
    %692 = arith.maximumf %690, %691 : vector<1x384xf32>
    %cst_164 = arith.constant 2.000000e+00 : f32
    %693 = vector.broadcast %cst_164 : f32 to vector<1x384xf32>
    %694 = arith.subf %670, %693 : vector<1x384xf32>
    %695 = math.absf %694 : vector<1x384xf32>
    %cst_165 = arith.constant 1.000000e+00 : f32
    %696 = vector.broadcast %cst_165 : f32 to vector<1x384xf32>
    %697 = arith.subf %696, %695 : vector<1x384xf32>
    %cst_166 = arith.constant 0.000000e+00 : f32
    %698 = vector.broadcast %cst_166 : f32 to vector<1x384xf32>
    %699 = arith.maximumf %697, %698 : vector<1x384xf32>
    %cst_167 = arith.constant -1.000000e+00 : f32
    %700 = vector.broadcast %cst_167 : f32 to vector<1x384xf32>
    %701 = arith.subf %671, %700 : vector<1x384xf32>
    %702 = math.absf %701 : vector<1x384xf32>
    %cst_168 = arith.constant 1.000000e+00 : f32
    %703 = vector.broadcast %cst_168 : f32 to vector<1x384xf32>
    %704 = arith.subf %703, %702 : vector<1x384xf32>
    %cst_169 = arith.constant 0.000000e+00 : f32
    %705 = vector.broadcast %cst_169 : f32 to vector<1x384xf32>
    %706 = arith.maximumf %704, %705 : vector<1x384xf32>
    %cst_170 = arith.constant 0.000000e+00 : f32
    %707 = vector.broadcast %cst_170 : f32 to vector<1x384xf32>
    %708 = arith.subf %671, %707 : vector<1x384xf32>
    %709 = math.absf %708 : vector<1x384xf32>
    %cst_171 = arith.constant 1.000000e+00 : f32
    %710 = vector.broadcast %cst_171 : f32 to vector<1x384xf32>
    %711 = arith.subf %710, %709 : vector<1x384xf32>
    %cst_172 = arith.constant 0.000000e+00 : f32
    %712 = vector.broadcast %cst_172 : f32 to vector<1x384xf32>
    %713 = arith.maximumf %711, %712 : vector<1x384xf32>
    %cst_173 = arith.constant 1.000000e+00 : f32
    %714 = vector.broadcast %cst_173 : f32 to vector<1x384xf32>
    %715 = arith.subf %671, %714 : vector<1x384xf32>
    %716 = math.absf %715 : vector<1x384xf32>
    %cst_174 = arith.constant 1.000000e+00 : f32
    %717 = vector.broadcast %cst_174 : f32 to vector<1x384xf32>
    %718 = arith.subf %717, %716 : vector<1x384xf32>
    %cst_175 = arith.constant 0.000000e+00 : f32
    %719 = vector.broadcast %cst_175 : f32 to vector<1x384xf32>
    %720 = arith.maximumf %718, %719 : vector<1x384xf32>
    %cst_176 = arith.constant 2.000000e+00 : f32
    %721 = vector.broadcast %cst_176 : f32 to vector<1x384xf32>
    %722 = arith.subf %671, %721 : vector<1x384xf32>
    %723 = math.absf %722 : vector<1x384xf32>
    %cst_177 = arith.constant 1.000000e+00 : f32
    %724 = vector.broadcast %cst_177 : f32 to vector<1x384xf32>
    %725 = arith.subf %724, %723 : vector<1x384xf32>
    %cst_178 = arith.constant 0.000000e+00 : f32
    %726 = vector.broadcast %cst_178 : f32 to vector<1x384xf32>
    %727 = arith.maximumf %725, %726 : vector<1x384xf32>
    %cst_179 = arith.constant 0.000000e+00 : f32
    %728 = vector.broadcast %cst_179 : f32 to vector<4x384xf32>
    %729 = arith.mulf %678, %706 : vector<1x384xf32>
    %730 = vector.broadcast %729 : vector<1x384xf32> to vector<4x384xf32>
    %731 = arith.mulf %730, %4 : vector<4x384xf32>
    %732 = arith.addf %728, %731 : vector<4x384xf32>
    %733 = arith.mulf %678, %713 : vector<1x384xf32>
    %734 = vector.broadcast %733 : vector<1x384xf32> to vector<4x384xf32>
    %735 = arith.mulf %734, %6 : vector<4x384xf32>
    %736 = arith.addf %732, %735 : vector<4x384xf32>
    %737 = arith.mulf %678, %720 : vector<1x384xf32>
    %738 = vector.broadcast %737 : vector<1x384xf32> to vector<4x384xf32>
    %739 = arith.mulf %738, %250 : vector<4x384xf32>
    %740 = arith.addf %736, %739 : vector<4x384xf32>
    %741 = arith.mulf %678, %727 : vector<1x384xf32>
    %742 = vector.broadcast %741 : vector<1x384xf32> to vector<4x384xf32>
    %743 = arith.mulf %742, %378 : vector<4x384xf32>
    %744 = arith.addf %740, %743 : vector<4x384xf32>
    %745 = arith.mulf %685, %706 : vector<1x384xf32>
    %746 = vector.broadcast %745 : vector<1x384xf32> to vector<4x384xf32>
    %747 = arith.mulf %746, %10 : vector<4x384xf32>
    %748 = arith.addf %744, %747 : vector<4x384xf32>
    %749 = arith.mulf %685, %713 : vector<1x384xf32>
    %750 = vector.broadcast %749 : vector<1x384xf32> to vector<4x384xf32>
    %751 = arith.mulf %750, %12 : vector<4x384xf32>
    %752 = arith.addf %748, %751 : vector<4x384xf32>
    %753 = arith.mulf %685, %720 : vector<1x384xf32>
    %754 = vector.broadcast %753 : vector<1x384xf32> to vector<4x384xf32>
    %755 = arith.mulf %754, %267 : vector<4x384xf32>
    %756 = arith.addf %752, %755 : vector<4x384xf32>
    %757 = arith.mulf %685, %727 : vector<1x384xf32>
    %758 = vector.broadcast %757 : vector<1x384xf32> to vector<4x384xf32>
    %759 = arith.mulf %758, %395 : vector<4x384xf32>
    %760 = arith.addf %756, %759 : vector<4x384xf32>
    %761 = arith.mulf %692, %706 : vector<1x384xf32>
    %762 = vector.broadcast %761 : vector<1x384xf32> to vector<4x384xf32>
    %763 = arith.mulf %762, %16 : vector<4x384xf32>
    %764 = arith.addf %760, %763 : vector<4x384xf32>
    %765 = arith.mulf %692, %713 : vector<1x384xf32>
    %766 = vector.broadcast %765 : vector<1x384xf32> to vector<4x384xf32>
    %767 = arith.mulf %766, %18 : vector<4x384xf32>
    %768 = arith.addf %764, %767 : vector<4x384xf32>
    %769 = arith.mulf %692, %720 : vector<1x384xf32>
    %770 = vector.broadcast %769 : vector<1x384xf32> to vector<4x384xf32>
    %771 = arith.mulf %770, %284 : vector<4x384xf32>
    %772 = arith.addf %768, %771 : vector<4x384xf32>
    %773 = arith.mulf %692, %727 : vector<1x384xf32>
    %774 = vector.broadcast %773 : vector<1x384xf32> to vector<4x384xf32>
    %775 = arith.mulf %774, %412 : vector<4x384xf32>
    %776 = arith.addf %772, %775 : vector<4x384xf32>
    %777 = arith.mulf %699, %706 : vector<1x384xf32>
    %778 = vector.broadcast %777 : vector<1x384xf32> to vector<4x384xf32>
    %779 = arith.mulf %778, %535 : vector<4x384xf32>
    %780 = arith.addf %776, %779 : vector<4x384xf32>
    %781 = arith.mulf %699, %713 : vector<1x384xf32>
    %782 = vector.broadcast %781 : vector<1x384xf32> to vector<4x384xf32>
    %783 = arith.mulf %782, %540 : vector<4x384xf32>
    %784 = arith.addf %780, %783 : vector<4x384xf32>
    %785 = arith.mulf %699, %720 : vector<1x384xf32>
    %786 = vector.broadcast %785 : vector<1x384xf32> to vector<4x384xf32>
    %787 = arith.mulf %786, %665 : vector<4x384xf32>
    %788 = arith.addf %784, %787 : vector<4x384xf32>
    %789 = arith.mulf %699, %727 : vector<1x384xf32>
    %790 = vector.extract_strided_slice %1 {offsets = [0, 101], sizes = [4, 384], strides = [1, 1]} : vector<4x528xf32> to vector<4x384xf32>
    %791 = vector.broadcast %789 : vector<1x384xf32> to vector<4x384xf32>
    %792 = arith.mulf %791, %790 : vector<4x384xf32>
    %793 = arith.addf %788, %792 : vector<4x384xf32>
    %c20_180 = arith.constant 20 : index
    %c0_181 = arith.constant 0 : index
    %794 = vector.load %arg8[%c20_180, %c0_181] : memref<36x384xf32, #tpu.memory_space<vmem>>, vector<4x384xf32>
    tpu.vector_store %arg8[%c20_180, %c0_181], %793 {strides = array<i32>} : memref<36x384xf32, #tpu.memory_space<vmem>>, vector<4x384xf32>,
    %795 = vector.extract_strided_slice %29 {offsets = [12, 0], sizes = [1, 384], strides = [1, 1]} : vector<18x384xf32> to vector<1x384xf32>
    %796 = vector.extract_strided_slice %29 {offsets = [13, 0], sizes = [1, 384], strides = [1, 1]} : vector<18x384xf32> to vector<1x384xf32>
    %cst_182 = arith.constant -1.000000e+00 : f32
    %797 = vector.broadcast %cst_182 : f32 to vector<1x384xf32>
    %798 = arith.subf %795, %797 : vector<1x384xf32>
    %799 = math.absf %798 : vector<1x384xf32>
    %cst_183 = arith.constant 1.000000e+00 : f32
    %800 = vector.broadcast %cst_183 : f32 to vector<1x384xf32>
    %801 = arith.subf %800, %799 : vector<1x384xf32>
    %cst_184 = arith.constant 0.000000e+00 : f32
    %802 = vector.broadcast %cst_184 : f32 to vector<1x384xf32>
    %803 = arith.maximumf %801, %802 : vector<1x384xf32>
    %cst_185 = arith.constant 0.000000e+00 : f32
    %804 = vector.broadcast %cst_185 : f32 to vector<1x384xf32>
    %805 = arith.subf %795, %804 : vector<1x384xf32>
    %806 = math.absf %805 : vector<1x384xf32>
    %cst_186 = arith.constant 1.000000e+00 : f32
    %807 = vector.broadcast %cst_186 : f32 to vector<1x384xf32>
    %808 = arith.subf %807, %806 : vector<1x384xf32>
    %cst_187 = arith.constant 0.000000e+00 : f32
    %809 = vector.broadcast %cst_187 : f32 to vector<1x384xf32>
    %810 = arith.maximumf %808, %809 : vector<1x384xf32>
    %cst_188 = arith.constant 1.000000e+00 : f32
    %811 = vector.broadcast %cst_188 : f32 to vector<1x384xf32>
    %812 = arith.subf %795, %811 : vector<1x384xf32>
    %813 = math.absf %812 : vector<1x384xf32>
    %cst_189 = arith.constant 1.000000e+00 : f32
    %814 = vector.broadcast %cst_189 : f32 to vector<1x384xf32>
    %815 = arith.subf %814, %813 : vector<1x384xf32>
    %cst_190 = arith.constant 0.000000e+00 : f32
    %816 = vector.broadcast %cst_190 : f32 to vector<1x384xf32>
    %817 = arith.maximumf %815, %816 : vector<1x384xf32>
    %cst_191 = arith.constant 2.000000e+00 : f32
    %818 = vector.broadcast %cst_191 : f32 to vector<1x384xf32>
    %819 = arith.subf %795, %818 : vector<1x384xf32>
    %820 = math.absf %819 : vector<1x384xf32>
    %cst_192 = arith.constant 1.000000e+00 : f32
    %821 = vector.broadcast %cst_192 : f32 to vector<1x384xf32>
    %822 = arith.subf %821, %820 : vector<1x384xf32>
    %cst_193 = arith.constant 0.000000e+00 : f32
    %823 = vector.broadcast %cst_193 : f32 to vector<1x384xf32>
    %824 = arith.maximumf %822, %823 : vector<1x384xf32>
    %cst_194 = arith.constant -1.000000e+00 : f32
    %825 = vector.broadcast %cst_194 : f32 to vector<1x384xf32>
    %826 = arith.subf %796, %825 : vector<1x384xf32>
    %827 = math.absf %826 : vector<1x384xf32>
    %cst_195 = arith.constant 1.000000e+00 : f32
    %828 = vector.broadcast %cst_195 : f32 to vector<1x384xf32>
    %829 = arith.subf %828, %827 : vector<1x384xf32>
    %cst_196 = arith.constant 0.000000e+00 : f32
    %830 = vector.broadcast %cst_196 : f32 to vector<1x384xf32>
    %831 = arith.maximumf %829, %830 : vector<1x384xf32>
    %cst_197 = arith.constant 0.000000e+00 : f32
    %832 = vector.broadcast %cst_197 : f32 to vector<1x384xf32>
    %833 = arith.subf %796, %832 : vector<1x384xf32>
    %834 = math.absf %833 : vector<1x384xf32>
    %cst_198 = arith.constant 1.000000e+00 : f32
    %835 = vector.broadcast %cst_198 : f32 to vector<1x384xf32>
    %836 = arith.subf %835, %834 : vector<1x384xf32>
    %cst_199 = arith.constant 0.000000e+00 : f32
    %837 = vector.broadcast %cst_199 : f32 to vector<1x384xf32>
    %838 = arith.maximumf %836, %837 : vector<1x384xf32>
    %cst_200 = arith.constant 1.000000e+00 : f32
    %839 = vector.broadcast %cst_200 : f32 to vector<1x384xf32>
    %840 = arith.subf %796, %839 : vector<1x384xf32>
    %841 = math.absf %840 : vector<1x384xf32>
    %cst_201 = arith.constant 1.000000e+00 : f32
    %842 = vector.broadcast %cst_201 : f32 to vector<1x384xf32>
    %843 = arith.subf %842, %841 : vector<1x384xf32>
    %cst_202 = arith.constant 0.000000e+00 : f32
    %844 = vector.broadcast %cst_202 : f32 to vector<1x384xf32>
    %845 = arith.maximumf %843, %844 : vector<1x384xf32>
    %cst_203 = arith.constant 2.000000e+00 : f32
    %846 = vector.broadcast %cst_203 : f32 to vector<1x384xf32>
    %847 = arith.subf %796, %846 : vector<1x384xf32>
    %848 = math.absf %847 : vector<1x384xf32>
    %cst_204 = arith.constant 1.000000e+00 : f32
    %849 = vector.broadcast %cst_204 : f32 to vector<1x384xf32>
    %850 = arith.subf %849, %848 : vector<1x384xf32>
    %cst_205 = arith.constant 0.000000e+00 : f32
    %851 = vector.broadcast %cst_205 : f32 to vector<1x384xf32>
    %852 = arith.maximumf %850, %851 : vector<1x384xf32>
    %cst_206 = arith.constant 0.000000e+00 : f32
    %853 = vector.broadcast %cst_206 : f32 to vector<4x384xf32>
    %854 = arith.mulf %803, %831 : vector<1x384xf32>
    %855 = vector.broadcast %854 : vector<1x384xf32> to vector<4x384xf32>
    %856 = arith.mulf %855, %127 : vector<4x384xf32>
    %857 = arith.addf %853, %856 : vector<4x384xf32>
    %858 = arith.mulf %803, %838 : vector<1x384xf32>
    %859 = vector.broadcast %858 : vector<1x384xf32> to vector<4x384xf32>
    %860 = arith.mulf %859, %8 : vector<4x384xf32>
    %861 = arith.addf %857, %860 : vector<4x384xf32>
    %862 = arith.mulf %803, %845 : vector<1x384xf32>
    %863 = vector.broadcast %862 : vector<1x384xf32> to vector<4x384xf32>
    %864 = arith.mulf %863, %10 : vector<4x384xf32>
    %865 = arith.addf %861, %864 : vector<4x384xf32>
    %866 = arith.mulf %803, %852 : vector<1x384xf32>
    %867 = vector.broadcast %866 : vector<1x384xf32> to vector<4x384xf32>
    %868 = arith.mulf %867, %12 : vector<4x384xf32>
    %869 = arith.addf %865, %868 : vector<4x384xf32>
    %870 = arith.mulf %810, %831 : vector<1x384xf32>
    %871 = vector.broadcast %870 : vector<1x384xf32> to vector<4x384xf32>
    %872 = arith.mulf %871, %144 : vector<4x384xf32>
    %873 = arith.addf %869, %872 : vector<4x384xf32>
    %874 = arith.mulf %810, %838 : vector<1x384xf32>
    %875 = vector.broadcast %874 : vector<1x384xf32> to vector<4x384xf32>
    %876 = arith.mulf %875, %14 : vector<4x384xf32>
    %877 = arith.addf %873, %876 : vector<4x384xf32>
    %878 = arith.mulf %810, %845 : vector<1x384xf32>
    %879 = vector.broadcast %878 : vector<1x384xf32> to vector<4x384xf32>
    %880 = arith.mulf %879, %16 : vector<4x384xf32>
    %881 = arith.addf %877, %880 : vector<4x384xf32>
    %882 = arith.mulf %810, %852 : vector<1x384xf32>
    %883 = vector.broadcast %882 : vector<1x384xf32> to vector<4x384xf32>
    %884 = arith.mulf %883, %18 : vector<4x384xf32>
    %885 = arith.addf %881, %884 : vector<4x384xf32>
    %886 = arith.mulf %817, %831 : vector<1x384xf32>
    %887 = vector.broadcast %886 : vector<1x384xf32> to vector<4x384xf32>
    %888 = arith.mulf %887, %525 : vector<4x384xf32>
    %889 = arith.addf %885, %888 : vector<4x384xf32>
    %890 = arith.mulf %817, %838 : vector<1x384xf32>
    %891 = vector.broadcast %890 : vector<1x384xf32> to vector<4x384xf32>
    %892 = arith.mulf %891, %530 : vector<4x384xf32>
    %893 = arith.addf %889, %892 : vector<4x384xf32>
    %894 = arith.mulf %817, %845 : vector<1x384xf32>
    %895 = vector.broadcast %894 : vector<1x384xf32> to vector<4x384xf32>
    %896 = arith.mulf %895, %535 : vector<4x384xf32>
    %897 = arith.addf %893, %896 : vector<4x384xf32>
    %898 = arith.mulf %817, %852 : vector<1x384xf32>
    %899 = vector.broadcast %898 : vector<1x384xf32> to vector<4x384xf32>
    %900 = arith.mulf %899, %540 : vector<4x384xf32>
    %901 = arith.addf %897, %900 : vector<4x384xf32>
    %902 = arith.mulf %824, %831 : vector<1x384xf32>
    %903 = vector.extract_strided_slice %1 {offsets = [0, 120], sizes = [4, 384], strides = [1, 1]} : vector<4x528xf32> to vector<4x384xf32>
    %904 = vector.broadcast %902 : vector<1x384xf32> to vector<4x384xf32>
    %905 = arith.mulf %904, %903 : vector<4x384xf32>
    %906 = arith.addf %901, %905 : vector<4x384xf32>
    %907 = arith.mulf %824, %838 : vector<1x384xf32>
    %908 = vector.extract_strided_slice %1 {offsets = [0, 121], sizes = [4, 384], strides = [1, 1]} : vector<4x528xf32> to vector<4x384xf32>
    %909 = vector.broadcast %907 : vector<1x384xf32> to vector<4x384xf32>
    %910 = arith.mulf %909, %908 : vector<4x384xf32>
    %911 = arith.addf %906, %910 : vector<4x384xf32>
    %912 = arith.mulf %824, %845 : vector<1x384xf32>
    %913 = vector.extract_strided_slice %1 {offsets = [0, 122], sizes = [4, 384], strides = [1, 1]} : vector<4x528xf32> to vector<4x384xf32>
    %914 = vector.broadcast %912 : vector<1x384xf32> to vector<4x384xf32>
    %915 = arith.mulf %914, %913 : vector<4x384xf32>
    %916 = arith.addf %911, %915 : vector<4x384xf32>
    %917 = arith.mulf %824, %852 : vector<1x384xf32>
    %918 = vector.extract_strided_slice %1 {offsets = [0, 123], sizes = [4, 384], strides = [1, 1]} : vector<4x528xf32> to vector<4x384xf32>
    %919 = vector.broadcast %917 : vector<1x384xf32> to vector<4x384xf32>
    %920 = arith.mulf %919, %918 : vector<4x384xf32>
    %921 = arith.addf %916, %920 : vector<4x384xf32>
    %c24_207 = arith.constant 24 : index
    %c0_208 = arith.constant 0 : index
    %922 = vector.load %arg8[%c24_207, %c0_208] : memref<36x384xf32, #tpu.memory_space<vmem>>, vector<4x384xf32>
    tpu.vector_store %arg8[%c24_207, %c0_208], %921 {strides = array<i32>} : memref<36x384xf32, #tpu.memory_space<vmem>>, vector<4x384xf32>,
    %923 = vector.extract_strided_slice %29 {offsets = [14, 0], sizes = [1, 384], strides = [1, 1]} : vector<18x384xf32> to vector<1x384xf32>
    %924 = vector.extract_strided_slice %29 {offsets = [15, 0], sizes = [1, 384], strides = [1, 1]} : vector<18x384xf32> to vector<1x384xf32>
    %cst_209 = arith.constant -1.000000e+00 : f32
    %925 = vector.broadcast %cst_209 : f32 to vector<1x384xf32>
    %926 = arith.subf %923, %925 : vector<1x384xf32>
    %927 = math.absf %926 : vector<1x384xf32>
    %cst_210 = arith.constant 1.000000e+00 : f32
    %928 = vector.broadcast %cst_210 : f32 to vector<1x384xf32>
    %929 = arith.subf %928, %927 : vector<1x384xf32>
    %cst_211 = arith.constant 0.000000e+00 : f32
    %930 = vector.broadcast %cst_211 : f32 to vector<1x384xf32>
    %931 = arith.maximumf %929, %930 : vector<1x384xf32>
    %cst_212 = arith.constant 0.000000e+00 : f32
    %932 = vector.broadcast %cst_212 : f32 to vector<1x384xf32>
    %933 = arith.subf %923, %932 : vector<1x384xf32>
    %934 = math.absf %933 : vector<1x384xf32>
    %cst_213 = arith.constant 1.000000e+00 : f32
    %935 = vector.broadcast %cst_213 : f32 to vector<1x384xf32>
    %936 = arith.subf %935, %934 : vector<1x384xf32>
    %cst_214 = arith.constant 0.000000e+00 : f32
    %937 = vector.broadcast %cst_214 : f32 to vector<1x384xf32>
    %938 = arith.maximumf %936, %937 : vector<1x384xf32>
    %cst_215 = arith.constant 1.000000e+00 : f32
    %939 = vector.broadcast %cst_215 : f32 to vector<1x384xf32>
    %940 = arith.subf %923, %939 : vector<1x384xf32>
    %941 = math.absf %940 : vector<1x384xf32>
    %cst_216 = arith.constant 1.000000e+00 : f32
    %942 = vector.broadcast %cst_216 : f32 to vector<1x384xf32>
    %943 = arith.subf %942, %941 : vector<1x384xf32>
    %cst_217 = arith.constant 0.000000e+00 : f32
    %944 = vector.broadcast %cst_217 : f32 to vector<1x384xf32>
    %945 = arith.maximumf %943, %944 : vector<1x384xf32>
    %cst_218 = arith.constant 2.000000e+00 : f32
    %946 = vector.broadcast %cst_218 : f32 to vector<1x384xf32>
    %947 = arith.subf %923, %946 : vector<1x384xf32>
    %948 = math.absf %947 : vector<1x384xf32>
    %cst_219 = arith.constant 1.000000e+00 : f32
    %949 = vector.broadcast %cst_219 : f32 to vector<1x384xf32>
    %950 = arith.subf %949, %948 : vector<1x384xf32>
    %cst_220 = arith.constant 0.000000e+00 : f32
    %951 = vector.broadcast %cst_220 : f32 to vector<1x384xf32>
    %952 = arith.maximumf %950, %951 : vector<1x384xf32>
    %cst_221 = arith.constant -1.000000e+00 : f32
    %953 = vector.broadcast %cst_221 : f32 to vector<1x384xf32>
    %954 = arith.subf %924, %953 : vector<1x384xf32>
    %955 = math.absf %954 : vector<1x384xf32>
    %cst_222 = arith.constant 1.000000e+00 : f32
    %956 = vector.broadcast %cst_222 : f32 to vector<1x384xf32>
    %957 = arith.subf %956, %955 : vector<1x384xf32>
    %cst_223 = arith.constant 0.000000e+00 : f32
    %958 = vector.broadcast %cst_223 : f32 to vector<1x384xf32>
    %959 = arith.maximumf %957, %958 : vector<1x384xf32>
    %cst_224 = arith.constant 0.000000e+00 : f32
    %960 = vector.broadcast %cst_224 : f32 to vector<1x384xf32>
    %961 = arith.subf %924, %960 : vector<1x384xf32>
    %962 = math.absf %961 : vector<1x384xf32>
    %cst_225 = arith.constant 1.000000e+00 : f32
    %963 = vector.broadcast %cst_225 : f32 to vector<1x384xf32>
    %964 = arith.subf %963, %962 : vector<1x384xf32>
    %cst_226 = arith.constant 0.000000e+00 : f32
    %965 = vector.broadcast %cst_226 : f32 to vector<1x384xf32>
    %966 = arith.maximumf %964, %965 : vector<1x384xf32>
    %cst_227 = arith.constant 1.000000e+00 : f32
    %967 = vector.broadcast %cst_227 : f32 to vector<1x384xf32>
    %968 = arith.subf %924, %967 : vector<1x384xf32>
    %969 = math.absf %968 : vector<1x384xf32>
    %cst_228 = arith.constant 1.000000e+00 : f32
    %970 = vector.broadcast %cst_228 : f32 to vector<1x384xf32>
    %971 = arith.subf %970, %969 : vector<1x384xf32>
    %cst_229 = arith.constant 0.000000e+00 : f32
    %972 = vector.broadcast %cst_229 : f32 to vector<1x384xf32>
    %973 = arith.maximumf %971, %972 : vector<1x384xf32>
    %cst_230 = arith.constant 2.000000e+00 : f32
    %974 = vector.broadcast %cst_230 : f32 to vector<1x384xf32>
    %975 = arith.subf %924, %974 : vector<1x384xf32>
    %976 = math.absf %975 : vector<1x384xf32>
    %cst_231 = arith.constant 1.000000e+00 : f32
    %977 = vector.broadcast %cst_231 : f32 to vector<1x384xf32>
    %978 = arith.subf %977, %976 : vector<1x384xf32>
    %cst_232 = arith.constant 0.000000e+00 : f32
    %979 = vector.broadcast %cst_232 : f32 to vector<1x384xf32>
    %980 = arith.maximumf %978, %979 : vector<1x384xf32>
    %cst_233 = arith.constant 0.000000e+00 : f32
    %981 = vector.broadcast %cst_233 : f32 to vector<4x384xf32>
    %982 = arith.mulf %931, %959 : vector<1x384xf32>
    %983 = vector.broadcast %982 : vector<1x384xf32> to vector<4x384xf32>
    %984 = arith.mulf %983, %8 : vector<4x384xf32>
    %985 = arith.addf %981, %984 : vector<4x384xf32>
    %986 = arith.mulf %931, %966 : vector<1x384xf32>
    %987 = vector.broadcast %986 : vector<1x384xf32> to vector<4x384xf32>
    %988 = arith.mulf %987, %10 : vector<4x384xf32>
    %989 = arith.addf %985, %988 : vector<4x384xf32>
    %990 = arith.mulf %931, %973 : vector<1x384xf32>
    %991 = vector.broadcast %990 : vector<1x384xf32> to vector<4x384xf32>
    %992 = arith.mulf %991, %12 : vector<4x384xf32>
    %993 = arith.addf %989, %992 : vector<4x384xf32>
    %994 = arith.mulf %931, %980 : vector<1x384xf32>
    %995 = vector.broadcast %994 : vector<1x384xf32> to vector<4x384xf32>
    %996 = arith.mulf %995, %267 : vector<4x384xf32>
    %997 = arith.addf %993, %996 : vector<4x384xf32>
    %998 = arith.mulf %938, %959 : vector<1x384xf32>
    %999 = vector.broadcast %998 : vector<1x384xf32> to vector<4x384xf32>
    %1000 = arith.mulf %999, %14 : vector<4x384xf32>
    %1001 = arith.addf %997, %1000 : vector<4x384xf32>
    %1002 = arith.mulf %938, %966 : vector<1x384xf32>
    %1003 = vector.broadcast %1002 : vector<1x384xf32> to vector<4x384xf32>
    %1004 = arith.mulf %1003, %16 : vector<4x384xf32>
    %1005 = arith.addf %1001, %1004 : vector<4x384xf32>
    %1006 = arith.mulf %938, %973 : vector<1x384xf32>
    %1007 = vector.broadcast %1006 : vector<1x384xf32> to vector<4x384xf32>
    %1008 = arith.mulf %1007, %18 : vector<4x384xf32>
    %1009 = arith.addf %1005, %1008 : vector<4x384xf32>
    %1010 = arith.mulf %938, %980 : vector<1x384xf32>
    %1011 = vector.broadcast %1010 : vector<1x384xf32> to vector<4x384xf32>
    %1012 = arith.mulf %1011, %284 : vector<4x384xf32>
    %1013 = arith.addf %1009, %1012 : vector<4x384xf32>
    %1014 = arith.mulf %945, %959 : vector<1x384xf32>
    %1015 = vector.broadcast %1014 : vector<1x384xf32> to vector<4x384xf32>
    %1016 = arith.mulf %1015, %530 : vector<4x384xf32>
    %1017 = arith.addf %1013, %1016 : vector<4x384xf32>
    %1018 = arith.mulf %945, %966 : vector<1x384xf32>
    %1019 = vector.broadcast %1018 : vector<1x384xf32> to vector<4x384xf32>
    %1020 = arith.mulf %1019, %535 : vector<4x384xf32>
    %1021 = arith.addf %1017, %1020 : vector<4x384xf32>
    %1022 = arith.mulf %945, %973 : vector<1x384xf32>
    %1023 = vector.broadcast %1022 : vector<1x384xf32> to vector<4x384xf32>
    %1024 = arith.mulf %1023, %540 : vector<4x384xf32>
    %1025 = arith.addf %1021, %1024 : vector<4x384xf32>
    %1026 = arith.mulf %945, %980 : vector<1x384xf32>
    %1027 = vector.broadcast %1026 : vector<1x384xf32> to vector<4x384xf32>
    %1028 = arith.mulf %1027, %665 : vector<4x384xf32>
    %1029 = arith.addf %1025, %1028 : vector<4x384xf32>
    %1030 = arith.mulf %952, %959 : vector<1x384xf32>
    %1031 = vector.broadcast %1030 : vector<1x384xf32> to vector<4x384xf32>
    %1032 = arith.mulf %1031, %908 : vector<4x384xf32>
    %1033 = arith.addf %1029, %1032 : vector<4x384xf32>
    %1034 = arith.mulf %952, %966 : vector<1x384xf32>
    %1035 = vector.broadcast %1034 : vector<1x384xf32> to vector<4x384xf32>
    %1036 = arith.mulf %1035, %913 : vector<4x384xf32>
    %1037 = arith.addf %1033, %1036 : vector<4x384xf32>
    %1038 = arith.mulf %952, %973 : vector<1x384xf32>
    %1039 = vector.broadcast %1038 : vector<1x384xf32> to vector<4x384xf32>
    %1040 = arith.mulf %1039, %918 : vector<4x384xf32>
    %1041 = arith.addf %1037, %1040 : vector<4x384xf32>
    %1042 = arith.mulf %952, %980 : vector<1x384xf32>
    %1043 = vector.extract_strided_slice %1 {offsets = [0, 124], sizes = [4, 384], strides = [1, 1]} : vector<4x528xf32> to vector<4x384xf32>
    %1044 = vector.broadcast %1042 : vector<1x384xf32> to vector<4x384xf32>
    %1045 = arith.mulf %1044, %1043 : vector<4x384xf32>
    %1046 = arith.addf %1041, %1045 : vector<4x384xf32>
    %c28_234 = arith.constant 28 : index
    %c0_235 = arith.constant 0 : index
    %1047 = vector.load %arg8[%c28_234, %c0_235] : memref<36x384xf32, #tpu.memory_space<vmem>>, vector<4x384xf32>
    tpu.vector_store %arg8[%c28_234, %c0_235], %1046 {strides = array<i32>} : memref<36x384xf32, #tpu.memory_space<vmem>>, vector<4x384xf32>,
    %1048 = vector.extract_strided_slice %29 {offsets = [16, 0], sizes = [1, 384], strides = [1, 1]} : vector<18x384xf32> to vector<1x384xf32>
    %1049 = vector.extract_strided_slice %29 {offsets = [17, 0], sizes = [1, 384], strides = [1, 1]} : vector<18x384xf32> to vector<1x384xf32>
    %cst_236 = arith.constant -1.000000e+00 : f32
    %1050 = vector.broadcast %cst_236 : f32 to vector<1x384xf32>
    %1051 = arith.subf %1048, %1050 : vector<1x384xf32>
    %1052 = math.absf %1051 : vector<1x384xf32>
    %cst_237 = arith.constant 1.000000e+00 : f32
    %1053 = vector.broadcast %cst_237 : f32 to vector<1x384xf32>
    %1054 = arith.subf %1053, %1052 : vector<1x384xf32>
    %cst_238 = arith.constant 0.000000e+00 : f32
    %1055 = vector.broadcast %cst_238 : f32 to vector<1x384xf32>
    %1056 = arith.maximumf %1054, %1055 : vector<1x384xf32>
    %cst_239 = arith.constant 0.000000e+00 : f32
    %1057 = vector.broadcast %cst_239 : f32 to vector<1x384xf32>
    %1058 = arith.subf %1048, %1057 : vector<1x384xf32>
    %1059 = math.absf %1058 : vector<1x384xf32>
    %cst_240 = arith.constant 1.000000e+00 : f32
    %1060 = vector.broadcast %cst_240 : f32 to vector<1x384xf32>
    %1061 = arith.subf %1060, %1059 : vector<1x384xf32>
    %cst_241 = arith.constant 0.000000e+00 : f32
    %1062 = vector.broadcast %cst_241 : f32 to vector<1x384xf32>
    %1063 = arith.maximumf %1061, %1062 : vector<1x384xf32>
    %cst_242 = arith.constant 1.000000e+00 : f32
    %1064 = vector.broadcast %cst_242 : f32 to vector<1x384xf32>
    %1065 = arith.subf %1048, %1064 : vector<1x384xf32>
    %1066 = math.absf %1065 : vector<1x384xf32>
    %cst_243 = arith.constant 1.000000e+00 : f32
    %1067 = vector.broadcast %cst_243 : f32 to vector<1x384xf32>
    %1068 = arith.subf %1067, %1066 : vector<1x384xf32>
    %cst_244 = arith.constant 0.000000e+00 : f32
    %1069 = vector.broadcast %cst_244 : f32 to vector<1x384xf32>
    %1070 = arith.maximumf %1068, %1069 : vector<1x384xf32>
    %cst_245 = arith.constant 2.000000e+00 : f32
    %1071 = vector.broadcast %cst_245 : f32 to vector<1x384xf32>
    %1072 = arith.subf %1048, %1071 : vector<1x384xf32>
    %1073 = math.absf %1072 : vector<1x384xf32>
    %cst_246 = arith.constant 1.000000e+00 : f32
    %1074 = vector.broadcast %cst_246 : f32 to vector<1x384xf32>
    %1075 = arith.subf %1074, %1073 : vector<1x384xf32>
    %cst_247 = arith.constant 0.000000e+00 : f32
    %1076 = vector.broadcast %cst_247 : f32 to vector<1x384xf32>
    %1077 = arith.maximumf %1075, %1076 : vector<1x384xf32>
    %cst_248 = arith.constant -1.000000e+00 : f32
    %1078 = vector.broadcast %cst_248 : f32 to vector<1x384xf32>
    %1079 = arith.subf %1049, %1078 : vector<1x384xf32>
    %1080 = math.absf %1079 : vector<1x384xf32>
    %cst_249 = arith.constant 1.000000e+00 : f32
    %1081 = vector.broadcast %cst_249 : f32 to vector<1x384xf32>
    %1082 = arith.subf %1081, %1080 : vector<1x384xf32>
    %cst_250 = arith.constant 0.000000e+00 : f32
    %1083 = vector.broadcast %cst_250 : f32 to vector<1x384xf32>
    %1084 = arith.maximumf %1082, %1083 : vector<1x384xf32>
    %cst_251 = arith.constant 0.000000e+00 : f32
    %1085 = vector.broadcast %cst_251 : f32 to vector<1x384xf32>
    %1086 = arith.subf %1049, %1085 : vector<1x384xf32>
    %1087 = math.absf %1086 : vector<1x384xf32>
    %cst_252 = arith.constant 1.000000e+00 : f32
    %1088 = vector.broadcast %cst_252 : f32 to vector<1x384xf32>
    %1089 = arith.subf %1088, %1087 : vector<1x384xf32>
    %cst_253 = arith.constant 0.000000e+00 : f32
    %1090 = vector.broadcast %cst_253 : f32 to vector<1x384xf32>
    %1091 = arith.maximumf %1089, %1090 : vector<1x384xf32>
    %cst_254 = arith.constant 1.000000e+00 : f32
    %1092 = vector.broadcast %cst_254 : f32 to vector<1x384xf32>
    %1093 = arith.subf %1049, %1092 : vector<1x384xf32>
    %1094 = math.absf %1093 : vector<1x384xf32>
    %cst_255 = arith.constant 1.000000e+00 : f32
    %1095 = vector.broadcast %cst_255 : f32 to vector<1x384xf32>
    %1096 = arith.subf %1095, %1094 : vector<1x384xf32>
    %cst_256 = arith.constant 0.000000e+00 : f32
    %1097 = vector.broadcast %cst_256 : f32 to vector<1x384xf32>
    %1098 = arith.maximumf %1096, %1097 : vector<1x384xf32>
    %cst_257 = arith.constant 2.000000e+00 : f32
    %1099 = vector.broadcast %cst_257 : f32 to vector<1x384xf32>
    %1100 = arith.subf %1049, %1099 : vector<1x384xf32>
    %1101 = math.absf %1100 : vector<1x384xf32>
    %cst_258 = arith.constant 1.000000e+00 : f32
    %1102 = vector.broadcast %cst_258 : f32 to vector<1x384xf32>
    %1103 = arith.subf %1102, %1101 : vector<1x384xf32>
    %cst_259 = arith.constant 0.000000e+00 : f32
    %1104 = vector.broadcast %cst_259 : f32 to vector<1x384xf32>
    %1105 = arith.maximumf %1103, %1104 : vector<1x384xf32>
    %cst_260 = arith.constant 0.000000e+00 : f32
    %1106 = vector.broadcast %cst_260 : f32 to vector<4x384xf32>
    %1107 = arith.mulf %1056, %1084 : vector<1x384xf32>
    %1108 = vector.broadcast %1107 : vector<1x384xf32> to vector<4x384xf32>
    %1109 = arith.mulf %1108, %10 : vector<4x384xf32>
    %1110 = arith.addf %1106, %1109 : vector<4x384xf32>
    %1111 = arith.mulf %1056, %1091 : vector<1x384xf32>
    %1112 = vector.broadcast %1111 : vector<1x384xf32> to vector<4x384xf32>
    %1113 = arith.mulf %1112, %12 : vector<4x384xf32>
    %1114 = arith.addf %1110, %1113 : vector<4x384xf32>
    %1115 = arith.mulf %1056, %1098 : vector<1x384xf32>
    %1116 = vector.broadcast %1115 : vector<1x384xf32> to vector<4x384xf32>
    %1117 = arith.mulf %1116, %267 : vector<4x384xf32>
    %1118 = arith.addf %1114, %1117 : vector<4x384xf32>
    %1119 = arith.mulf %1056, %1105 : vector<1x384xf32>
    %1120 = vector.broadcast %1119 : vector<1x384xf32> to vector<4x384xf32>
    %1121 = arith.mulf %1120, %395 : vector<4x384xf32>
    %1122 = arith.addf %1118, %1121 : vector<4x384xf32>
    %1123 = arith.mulf %1063, %1084 : vector<1x384xf32>
    %1124 = vector.broadcast %1123 : vector<1x384xf32> to vector<4x384xf32>
    %1125 = arith.mulf %1124, %16 : vector<4x384xf32>
    %1126 = arith.addf %1122, %1125 : vector<4x384xf32>
    %1127 = arith.mulf %1063, %1091 : vector<1x384xf32>
    %1128 = vector.broadcast %1127 : vector<1x384xf32> to vector<4x384xf32>
    %1129 = arith.mulf %1128, %18 : vector<4x384xf32>
    %1130 = arith.addf %1126, %1129 : vector<4x384xf32>
    %1131 = arith.mulf %1063, %1098 : vector<1x384xf32>
    %1132 = vector.broadcast %1131 : vector<1x384xf32> to vector<4x384xf32>
    %1133 = arith.mulf %1132, %284 : vector<4x384xf32>
    %1134 = arith.addf %1130, %1133 : vector<4x384xf32>
    %1135 = arith.mulf %1063, %1105 : vector<1x384xf32>
    %1136 = vector.broadcast %1135 : vector<1x384xf32> to vector<4x384xf32>
    %1137 = arith.mulf %1136, %412 : vector<4x384xf32>
    %1138 = arith.addf %1134, %1137 : vector<4x384xf32>
    %1139 = arith.mulf %1070, %1084 : vector<1x384xf32>
    %1140 = vector.broadcast %1139 : vector<1x384xf32> to vector<4x384xf32>
    %1141 = arith.mulf %1140, %535 : vector<4x384xf32>
    %1142 = arith.addf %1138, %1141 : vector<4x384xf32>
    %1143 = arith.mulf %1070, %1091 : vector<1x384xf32>
    %1144 = vector.broadcast %1143 : vector<1x384xf32> to vector<4x384xf32>
    %1145 = arith.mulf %1144, %540 : vector<4x384xf32>
    %1146 = arith.addf %1142, %1145 : vector<4x384xf32>
    %1147 = arith.mulf %1070, %1098 : vector<1x384xf32>
    %1148 = vector.broadcast %1147 : vector<1x384xf32> to vector<4x384xf32>
    %1149 = arith.mulf %1148, %665 : vector<4x384xf32>
    %1150 = arith.addf %1146, %1149 : vector<4x384xf32>
    %1151 = arith.mulf %1070, %1105 : vector<1x384xf32>
    %1152 = vector.broadcast %1151 : vector<1x384xf32> to vector<4x384xf32>
    %1153 = arith.mulf %1152, %790 : vector<4x384xf32>
    %1154 = arith.addf %1150, %1153 : vector<4x384xf32>
    %1155 = arith.mulf %1077, %1084 : vector<1x384xf32>
    %1156 = vector.broadcast %1155 : vector<1x384xf32> to vector<4x384xf32>
    %1157 = arith.mulf %1156, %913 : vector<4x384xf32>
    %1158 = arith.addf %1154, %1157 : vector<4x384xf32>
    %1159 = arith.mulf %1077, %1091 : vector<1x384xf32>
    %1160 = vector.broadcast %1159 : vector<1x384xf32> to vector<4x384xf32>
    %1161 = arith.mulf %1160, %918 : vector<4x384xf32>
    %1162 = arith.addf %1158, %1161 : vector<4x384xf32>
    %1163 = arith.mulf %1077, %1098 : vector<1x384xf32>
    %1164 = vector.broadcast %1163 : vector<1x384xf32> to vector<4x384xf32>
    %1165 = arith.mulf %1164, %1043 : vector<4x384xf32>
    %1166 = arith.addf %1162, %1165 : vector<4x384xf32>
    %1167 = arith.mulf %1077, %1105 : vector<1x384xf32>
    %1168 = vector.extract_strided_slice %1 {offsets = [0, 125], sizes = [4, 384], strides = [1, 1]} : vector<4x528xf32> to vector<4x384xf32>
    %1169 = vector.broadcast %1167 : vector<1x384xf32> to vector<4x384xf32>
    %1170 = arith.mulf %1169, %1168 : vector<4x384xf32>
    %1171 = arith.addf %1166, %1170 : vector<4x384xf32>
    %c32_261 = arith.constant 32 : index
    %c0_262 = arith.constant 0 : index
    %1172 = vector.load %arg8[%c32_261, %c0_262] : memref<36x384xf32, #tpu.memory_space<vmem>>, vector<4x384xf32>
    tpu.vector_store %arg8[%c32_261, %c0_262], %1171 {strides = array<i32>} : memref<36x384xf32, #tpu.memory_space<vmem>>, vector<4x384xf32>,
    %c0_263 = arith.constant 0 : index
    %c0_264 = arith.constant 0 : index
    %1173 = vector.load %arg4[%c0_263, %c0_264] : memref<8x36xf32, #tpu.memory_space<vmem>>, vector<8x36xf32>
    %c0_265 = arith.constant 0 : index
    %c0_266 = arith.constant 0 : index
    %1174 = vector.load %arg8[%c0_265, %c0_266] : memref<36x384xf32, #tpu.memory_space<vmem>>, vector<36x384xf32>
    %cst_267 = arith.constant dense<0.000000e+00> : vector<8x384xf32>
    %1175 = tpu.matmul %1173, %1174, %cst_267 {dimension_numbers = #tpu.dot_dimension_numbers<[1], [0], [0], [1], [0, 0, 1, 1], [], []>} : vector<8x36xf32>, vector<36x384xf32>, vector<8x384xf32> -> vector<8x384xf32>
    %c0_268 = arith.constant 0 : index
    %c0_269 = arith.constant 0 : index
    %1176 = vector.load %arg5[%c0_268, %c0_269] : memref<8x1xf32, #tpu.memory_space<vmem>>, vector<8x1xf32>
    %1177 = vector.broadcast %1176 : vector<8x1xf32> to vector<8x384xf32>
    %1178 = arith.addf %1175, %1177 : vector<8x384xf32>
    %c0_270 = arith.constant 0 : index
    %c0_271 = arith.constant 0 : index
    %c0_272 = arith.constant 0 : index
    %1179 = vector.load %arg6[%c0_270, %c0_271, %c0_272] : memref<1x8x384xf32, #tpu.memory_space<vmem>>, vector<1x8x384xf32>
    %1180 = vector.shape_cast %1179 : vector<1x8x384xf32> to vector<8x384xf32>
    %1181 = vector.shape_cast %1178 : vector<8x384xf32> to vector<1x8x384xf32>
    tpu.vector_store %arg6[%c0_270, %c0_271, %c0_272], %1181 {strides = array<i32>} : memref<1x8x384xf32, #tpu.memory_space<vmem>>, vector<1x8x384xf32>,
    return
  }
  func.func @transform_0(%arg0: i32) -> (i32, i32, i32) {
    %c0_i32 = arith.constant 0 : i32
    %c0_i32_0 = arith.constant 0 : i32
    %c0_i32_1 = arith.constant 0 : i32
    return %arg0, %c0_i32, %c0_i32_0 : i32, i32, i32
  }
  func.func @transform_1(%arg0: i32) -> (i32, i32) {
    %c0_i32 = arith.constant 0 : i32
    %c0_i32_0 = arith.constant 0 : i32
    %c0_i32_1 = arith.constant 0 : i32
    return %c0_i32, %c0_i32_0 : i32, i32
  }
  func.func @transform_2(%arg0: i32) -> (i32, i32) {
    %c0_i32 = arith.constant 0 : i32
    %c0_i32_0 = arith.constant 0 : i32
    %c0_i32_1 = arith.constant 0 : i32
    return %c0_i32, %c0_i32_0 : i32, i32
  }
  func.func @transform_3(%arg0: i32) -> (i32, i32) {
    %c0_i32 = arith.constant 0 : i32
    %c0_i32_0 = arith.constant 0 : i32
    %c0_i32_1 = arith.constant 0 : i32
    return %c0_i32, %c0_i32_0 : i32, i32
  }
  func.func @transform_4(%arg0: i32) -> (i32, i32) {
    %c0_i32 = arith.constant 0 : i32
    %c0_i32_0 = arith.constant 0 : i32
    %c0_i32_1 = arith.constant 0 : i32
    return %c0_i32, %c0_i32_0 : i32, i32
  }
  func.func @transform_5(%arg0: i32) -> (i32, i32, i32) {
    %c0_i32 = arith.constant 0 : i32
    %c0_i32_0 = arith.constant 0 : i32
    %c0_i32_1 = arith.constant 0 : i32
    return %arg0, %c0_i32, %c0_i32_0 : i32, i32, i32
  }
}

</mosaic_0001>

<bundles_post_ra>
// kernel: tpu_custom_call.1
= control target key start
LH: loop header
LB: loop body
LE: loop exit
PB: predicated region body
PF: predicated region fallthrough
CT: control target
= control target key end

     0   :  { %10 = vsyncpa [#allocation5], 0  ;;  %s7861_s0 = inlined_call_operand.hbm [shape: f32[2,4,528], index: 0, kind: input, shape index: {}]   ;;  %s7862_s1 = inlined_call_operand.vmem [shape: f32[18,36], index: 1, kind: input, shape index: {}]   ;;  %s7863_s2 = inlined_call_operand.vmem [shape: f32[18,1], index: 2, kind: input, shape index: {}]   ;;  %s7864_s3 = inlined_call_operand.vmem [shape: f32[8,36], index: 3, kind: input, shape index: {}]   ;;  %s7865_s4 = inlined_call_operand.vmem [shape: f32[8,1], index: 4, kind: input, shape index: {}]   ;;  %s7866_s5 = inlined_call_operand.hbm [shape: f32[2,8,384], index: 5, kind: output, shape index: {}]  }
   0x1   :  { %12 = vsyncpa [#allocation5 + $0x1], 0 }
   0x2   :  { %13 = vsyncpa [#allocation6], 0 }
   0x3   :  { %15 = vsyncpa [#allocation6 + $0x1], 0  ;;  %s4749_s18 = smov 0   ;;  %s4751_s19 = smov 0  }
   0x4   :  { %s4753_s20 = smov 0   ;;  %s4755_s21 = smov 0  }
   0x5 LB: > { %s4770_s22 = sadd.s32 4294967295, %s4677_s21   ;;  %s4384_s23 = sadd.s32 4294967294, %s4677_s21   ;;  %s4677_s21 = sphi %s4755_s21, %s8736_s21   ;;  %s4673_s20 = sphi %s4753_s20, %s8735_s20   ;;  %s4669_s19 = sphi %s4751_s19, %s8734_s19   ;;  %s4665_s18 = sphi %s4749_s18, %s8733_s18  }
   0x6   : > { %s4774_s24 = sadd.s32 1, %s4677_s21   ;;  %s28_s25 = sadd.s32 1, %s4673_s20 }
   0x7   : > { %s25_s26 = ssub.s32 %s4677_s21, %s4774_s24  ;;  %p35_p0 = scmp.ne.s32.totalorder %s4673_s20, %s4669_s19 }
   0x8   : > { %p26_p1 = scmp.eq.s32.totalorder %s25_s26, 0  ;;  %p36_p2 = scmp.eq.s32.totalorder %s4677_s21, 0 }
   0x9   : > { %p41_p3 = scmp.ne.s32.totalorder %s4669_s19, %s4665_s18  ;;  %p42_p4 = scmp.eq.s32.totalorder %s4770_s22, 0 }
   0xa   : > { %s4786_s27 = scalar_select %p26_p1, %s4673_s20, %s28_s25  }
   0xb   : > { %p37_p5 = por %p36_p2, %p35_p0  ;;  %p4788_p6 = por %p42_p4, %p41_p3 }
   0xc   : > { %p149_p7 = scmp.eq.s32.totalorder %s4770_s22, 1  ;;  %p155_p8 = scmp.eq.s32.totalorder %s4384_s23, 1 }
   0xd   : > { %s8156_s28 = scalar_select %p4788_p6, 1, 0 }
   0xe   : > { %p4505_p10 = scmp.lt.s32.totalorder %s4677_s21, 2  ;;  %p4795_p11 = por %p149_p7, %p35_p0 }
   0xf   : > { %p4799_p12 = por %p155_p8, %p41_p3  ;;  %s187_s6 = sand.u32 1, %s4673_s20  }
  0x10   : > { %s8157_s29 = scalar_select %p4795_p11, 1, 0 }
  0x11   : > { %s8158_s30 = scalar_select %p4799_p12, 1, 0 }
  0x12   : > { %s4489_s7 = smul.u32 320, %s4677_s21  ;;  %p4810_p13 = pnand %p4505_p10, %p37_p5 }
  0x13   : > { %s4488_s8 = smul.u32 20, %s187_s6  ;;  %s188_s15 = scalar_lea.sflag [#allocation5], %s187_s6 }
  0x14   : > { %s4808_s11 = scalar_lea.hbm %s7861_s0, %s4489_s7  ;;  %p4587_p3 = pneg %p4810_p13 }
  0x15   : > { %s191_s13 = scalar_lea.vmem [#allocation4], %s4488_s8  ;;  %s4585_s16 = scalar_lea.hbm %s4808_s11, 320 }
  0x16   : > { %s199_s14 = sshll.u32 %s191_s13, 4  ;;  %p4586_p2 = scmp.ne.s32.totalorder %s4808_s11, %s4585_s16  ;;  %s200_s14 = int_to_ptr.vmem [resolvable:$true] %s199_s14 }
  0x17   : > { %s4590_s25 = scalar_lea.hbm %s7861_s0, 640  ;;  %p4591_p5 = scmp.lt.s32.totalorder %s4808_s11, %s7861_s0 }
  0x18   : > { %p4588_p4 = pnand %p4587_p3, %p4586_p2  ;;  %p4592_p8 = scmp.lt.s32.totalorder %s4590_s25, %s4585_s16 }
  0x1a   : > { %p4589_p7 = pneg %p4588_p4  ;;  %p4593_p10 = por %p4592_p8, %p4591_p5 }
  0x1c   : > { %p4594_p9 = pnand %p4593_p10, %p4589_p7 }
  0x1e   : > { %4597 = shalt.err (!%p4594_p9)
}
  0x1f   : > { %s4598_s8 = scalar_lea.vmem %s200_s14, 320  ;;  %s4679_s6 = smov [#allocation4]  }
  0x20   : > { %p4599_p0 = scmp.ne.s32.totalorder %s200_s14, %s4598_s8  ;;  %s4603_s9 = sshll.u32 %s4679_s6, 4  ;;  %s4604_s9 = int_to_ptr.vmem [resolvable:$false] %s4603_s9 }
  0x21   : > { %s4605_s10 = scalar_lea.vmem %s4604_s9, 640  ;;  %p4606_p2 = scmp.lt.s32.totalorder %s200_s14, %s4604_s9 }
  0x22   : > { %p4601_p1 = pnand %p4599_p0, %p4587_p3  ;;  %p4607_p4 = scmp.lt.s32.totalorder %s4605_s10, %s4598_s8 }
  0x24   : > { %p4602_p12 = pneg %p4601_p1  ;;  %p4608_p11 = por %p4607_p4, %p4606_p2 }
  0x26   : > { %p4609_p6 = pnand %p4608_p11, %p4602_p12 }
  0x28   : > { %4612 = shalt.err (!%p4609_p6)
}
  0x29   : > { %4500 = dma.hbm_to_vmem [thread:$0]  (!%p4810_p13), %s4808_s11, 320, %s200_s14, %s188_s15  }
  0x2a   : > { %p8160_p9 = scmp.lt.s32.totalorder %s4677_s21, 3  ;;  %p8161_p7 = scmp.ge.s32.totalorder %s4677_s21, 1 }
  0x2c   : > { %p205_p5 = pnand %p8161_p7, %p8160_p9 }
  0x2e   : > { %208 = sbr.rel (%p205_p5) target bundleno = 1082 (0x43a), region = 40 }
  0x33   : > { %s4835_s13 = sand.u32 1, %s4669_s19   ;;  %p8162_p6 = scmp.ne.s32.totalorder %s8156_s28, 0 }
  0x34   : > { %s4490_s16 = smul.u32 20, %s4835_s13  ;;  %s211_s17 = scalar_lea.sflag [#allocation5], %s4835_s13 }
  0x36   : > { %s4839_s23 = scalar_lea.vmem [#allocation4], %s4490_s16 }
  0x37   : > { %4656 = dma.done.wait (%p8162_p6), %s211_s17, 320  }
  0x38   : > { %4658 = vsyncadd (%p8162_p6), %s211_s17, 4294966976  ;;  %v4680_v0 = vmov 0   ;;  %v4846_v1 = vld [vmem:[%s4839_s23 + $0x8] sm:$0xff]  ;;  %v4849_v2 = vld [vmem:[%s4839_s23] sm:$0xff]  ;;  %s4681_s11 = smov 53   ;;  %s4682_s12 = smov 55  }
  0x39   : > { %4578 = vset.pattern.permute.xlu1 %v4680_v0  ;;  %4577 = vset.pattern.permute.xlu0 %v4680_v0  ;;  %s4683_s28 = smov 54   ;;  %v4861_v3 = vcombine.high %v4849_v2, %v4849_v2  ;;  %v266_v4 = vcombine.low %v4846_v1, %v4846_v1  ;;  %v265_v5 = vcombine.low %v4849_v2, %v4849_v2  ;;  %s4684_s14 = smov 78   ;;  %v7869_v6 = vmov 0.0   ;;  %v431_v8 = vld [vmem:[%s7863_s2 + $0x10] sm:$0x3]  ;;  %v430_v9 = vld [vmem:[%s7863_s2 + $0x8] sm:$0xff] }
  0x3a   : > { %397 = vrot.lane.b32.xlu0 %v4846_v1, %s4681_s11  ;;  %393 = vrot.lane.b32.xlu1 %v4849_v2, %s4681_s11  ;;  %s4685_s15 = smov 77   ;;  %s4686_s25 = smov 101   ;;  %v4893_v7 = vcombine.high %v4846_v1, %v4846_v1  ;;  %vm4691_vm0 = vmmov 0   ;;  %v429_v10 = vld [vmem:[%s7863_s2] sm:$0xff]  ;;  %vm365_vm1 = vcmask 449536   ;;  %vm401_vm2 = vcmask 433152  }
  0x3b   : > { %8163 = vst [vmem:[#allocation10_spill] sm:$0xff] %v4861_v3  ;;  %4456 = vmatprep.subr.mxu1 %v7869_v6  ;;  %531 = vmatprep.mubr.f32.mxu0 %v7869_v6  ;;  %s4688_s26 = smov 79   ;;  %s4689_s7 = smov 103   ;;  %vm383_vm3 = vcmask 441344   ;;  %vm7904_vm4 = vcmask 1043456   ;;  %vm329_vm5 = vcmask 637952  }
  0x3c   : > { %s4690_s8 = smov 102   ;;  %4466 = vmatprep.mubr.msk.f32.mxu1 %vm4691_vm0, %v7869_v6  ;;  %s4699_s6 = smov 125   ;;  %vm347_vm6 = vcmask 629760   ;;  %vm293_vm7 = vcmask 826368   ;;  %vm311_vm8 = vcmask 646144   ;;  %vm255_vm9 = vcmask 842752  }
  0x3d   : > { %s4700_s9 = smov 99   ;;  %s4701_s10 = smov 56   ;;  %vm275_vm10 = vcmask 834560   ;;  %vm7891_vm11 = vcmask 293888   ;;  %vm1807_vm12 = vcmask 613376   ;;  %vm991_vm13 = vcmask 654336  }
  0x3e   : > { %361 = vrot.lane.b32.xlu0 %v4846_v1, %s4682_s12  ;;  %377 = vrot.lane.b32.xlu1 %v4849_v2, %s4683_s28  ;;  %s4702_s16 = smov 124   ;;  %s4703_s17 = smov 52   ;;  %vm1447_vm14 = vcmask 621568   ;;  %vm756_vm15 = vcmask 1039360  }
  0x3f   : > { %p8730_p12 = scmp.ne.s32.totalorder %s8157_s29, 0 }
  0x42   : > { %359 = vrot.lane.b32.xlu1 %v4861_v3, %s4682_s12  ;;  %395 = vrot.lane.b32.xlu0 %v4861_v3, %s4681_s11 }
  0x46   : > { %357 = vrot.lane.b32.xlu1 %v4849_v2, %s4682_s12  ;;  %379 = vrot.lane.b32.xlu0 %v266_v4, %s4683_s28 }
  0x4a   : > { %323 = vrot.lane.b32.xlu1 %v4861_v3, %s4684_s14  ;;  %375 = vrot.lane.b32.xlu0 %v265_v5, %s4683_s28 }
  0x4e   : > { %341 = vrot.lane.b32.xlu1 %v4849_v2, %s4685_s15  ;;  %325 = vrot.lane.b32.xlu0 %v4846_v1, %s4684_s14 }
  0x52   : > { %321 = vrot.lane.b32.xlu1 %v4849_v2, %s4684_s14  ;;  %343 = vrot.lane.b32.xlu0 %v266_v4, %s4685_s15 }
  0x56   : > { %287 = vrot.lane.b32.xlu1 %v4861_v3, %s4686_s25  ;;  %339 = vrot.lane.b32.xlu0 %v265_v5, %s4685_s15 }
  0x5a   : > { %305 = vrot.lane.b32.xlu1 %v4849_v2, %s4688_s26  ;;  %289 = vrot.lane.b32.xlu0 %v4846_v1, %s4686_s25 }
  0x5e   : > { %399 = vrot.lane.b32.xlu1 %v4893_v7, %s4681_s11  ;;  %307 = vrot.lane.b32.xlu0 %v266_v4, %s4688_s26  ;;  %s4713_s11 = smov 6  }
  0x62   : > { %303 = vrot.lane.b32.xlu1 %v265_v5, %s4688_s26  ;;  %285 = vrot.lane.b32.xlu0 %v4849_v2, %s4686_s25 }
  0x66   : > { %251 = vrot.lane.b32.xlu1 %v4846_v1, %s4689_s7  ;;  %249 = vrot.lane.b32.xlu0 %v4861_v3, %s4689_s7 }
  0x6a   : > { %271 = vrot.lane.b32.xlu1 %v266_v4, %s4690_s8  ;;  %269 = vrot.lane.b32.xlu0 %v4849_v2, %s4690_s8 }
  0x6e   : > { %381 = vrot.lane.b32.xlu1 %v4846_v1, %s4683_s28  ;;  %363 = vrot.lane.b32.xlu0 %v4893_v7, %s4682_s12  ;;  %s4692_s12 = smov 80  }
  0x72   : > { %267 = vrot.lane.b32.xlu1 %v265_v5, %s4690_s8  ;;  %247 = vrot.lane.b32.xlu0 %v4849_v2, %s4689_s7 }
  0x76   : > { %345 = vrot.lane.b32.xlu1 %v4846_v1, %s4685_s15  ;;  %327 = vrot.lane.b32.xlu0 %v4893_v7, %s4684_s14  ;;  %s4693_s14 = smov 76  }
  0x7a   : > { %309 = vrot.lane.b32.xlu1 %v4846_v1, %s4688_s26  ;;  %291 = vrot.lane.b32.xlu0 %v4893_v7, %s4686_s25  ;;  %s4694_s25 = smov 104  }
  0x7e   : > { %273 = vrot.lane.b32.xlu1 %v4846_v1, %s4690_s8  ;;  %253 = vrot.lane.b32.xlu0 %v4893_v7, %s4689_s7  ;;  %s4695_s7 = smov 100  }
  0x82   : > { %444 = vperm.xlu1 %4578, %v431_v8   ;;  %439 = vperm.xlu0 %4577, %v430_v9  }
  0x86   : > { %434 = vperm.xlu1 %4578, %v429_v10   ;;  %1019 = vrot.lane.b32.xlu0 %v4861_v3, %s4688_s26 }
  0x8a   : > { %931 = vrot.lane.b32.xlu0 %v4861_v3, %s4690_s8  ;;  %1071 = vrot.lane.b32.xlu1 %v4861_v3, %s4685_s15 }
  0x8e   : > { %987 = vrot.lane.b32.xlu0 %v4846_v1, %s4692_s12  ;;  %985 = vrot.lane.b32.xlu1 %v4861_v3, %s4692_s12 }
  0x92   : > { %1443 = vrot.lane.b32.xlu0 %v4846_v1, %s4693_s14  ;;  %1441 = vrot.lane.b32.xlu1 %v4861_v3, %s4693_s14 }
  0x96   : > { %1021 = vrot.lane.b32.xlu0 %v4893_v7, %s4688_s26  ;;  %983 = vrot.lane.b32.xlu1 %v4849_v2, %s4692_s12  ;;  %s4696_s26 = smov 75  }
  0x9a   : > { %1439 = vrot.lane.b32.xlu0 %v4849_v2, %s4693_s14  ;;  %1073 = vrot.lane.b32.xlu1 %v4893_v7, %s4685_s15  ;;  %s4697_s15 = smov 127  }
  0x9e   : > { %878 = vrot.lane.b32.xlu0 %v4846_v1, %s4694_s25  ;;  %876 = vrot.lane.b32.xlu1 %v4861_v3, %s4694_s25 }
  0xa2   : > { %1356 = vrot.lane.b32.xlu0 %v4846_v1, %s4695_s7  ;;  %1354 = vrot.lane.b32.xlu1 %v4861_v3, %s4695_s7 }
  0xa6   : > { %1803 = vrot.lane.b32.xlu0 %v4846_v1, %s4696_s26  ;;  %1801 = vrot.lane.b32.xlu1 %v4861_v3, %s4696_s26 }
  0xaa   : > { %933 = vrot.lane.b32.xlu0 %v4893_v7, %s4690_s8  ;;  %874 = vrot.lane.b32.xlu1 %v4849_v2, %s4694_s25  ;;  %s4698_s8 = smov 126  }
  0xac   : > { %v4964_v11 = vpop.permute.xlu0 %397  ;;  %v394_v12 = vpop.permute.xlu1 %393 }
  0xae   : > { %1352 = vrot.lane.b32.xlu0 %v4849_v2, %s4695_s7  ;;  %989 = vrot.lane.b32.xlu1 %v4893_v7, %s4692_s12  ;;  %s4704_s12 = smov 123  }
  0xb0   : > { %v4969_v13 = vpop.permute.xlu0 %361  ;;  %v4971_v14 = vpop.permute.xlu1 %377 }
  0xb2   : > { %1799 = vrot.lane.b32.xlu0 %v4849_v2, %s4696_s26  ;;  %1445 = vrot.lane.b32.xlu1 %v4893_v7, %s4693_s14  ;;  %s4715_s14 = smov 5  }
  0xb4   : > { %v360_v15 = vpop.permute.xlu1 %359  ;;  %v396_v16 = vpop.permute.xlu0 %395 }
  0xb5   : > { %v4978_v17 = vsel %vm365_vm1, %v360_v15, %v4969_v13  ;;  %v4981_v18 = vsel %vm401_vm2, %v394_v12, %v396_v16  ;;  %v4985_v19 = vsel %vm401_vm2, %v396_v16, %v4964_v11 }
  0xb6   : > { %8164 = vst [vmem:[#allocation11_spill] sm:$0xff] %v4978_v17  ;;  %8165 = vst [vmem:[#allocation12_spill] sm:$0xff] %v4981_v18  ;;  %752 = vrot.lane.b32.xlu0 %v4846_v1, %s4697_s15  ;;  %750 = vrot.lane.b32.xlu1 %v4861_v3, %s4697_s15 }
  0xb7   : > { %8166 = vst [vmem:[#allocation13_spill] sm:$0xff] %v4985_v19  ;;  %373 = vst [vmem:[#allocation2 + $0x10] sm:$0xf] %v4978_v17 }
  0xb8   : > { %408 = vst [vmem:[#allocation2 + $0x60] sm:$0xf] %v4981_v18  ;;  %409 = vst [vmem:[#allocation2 + $0x70] sm:$0xf] %v4985_v19  ;;  %v358_v20 = vpop.permute.xlu1 %357  ;;  %v4994_v21 = vpop.permute.xlu0 %379 }
  0xb9   : > { %v4997_v22 = vsel %vm365_vm1, %v358_v20, %v360_v15  ;;  %v385_v23 = vsel %vm383_vm3, %v4971_v14, %v4994_v21 }
  0xba   : > { %8167 = vst [vmem:[#allocation14_spill] sm:$0xff] %v4997_v22  ;;  %372 = vst [vmem:[#allocation2 + $0x20] sm:$0xf] %v4997_v22  ;;  %797 = vrot.lane.b32.xlu0 %v4846_v1, %s4698_s8  ;;  %795 = vrot.lane.b32.xlu1 %v4861_v3, %s4698_s8 }
  0xbb   : > { %391 = vst [vmem:[#allocation2 + $0x10] sm:$0xf0] %v385_v23 }
  0xbc   : > { %v324_v24 = vpop.permute.xlu1 %323  ;;  %v376_v25 = vpop.permute.xlu0 %375 }
  0xbd   : > { %v384_v26 = vsel %vm383_vm3, %v376_v25, %v4971_v14  ;;  %v411_v25 = vld [vmem:[%s7862_s1] sm:$0xff] }
  0xbe   : > { %390 = vst [vmem:[#allocation2 + $0x20] sm:$0xf0] %v384_v26  ;;  %842 = vrot.lane.b32.xlu0 %v4846_v1, %s4699_s6  ;;  %840 = vrot.lane.b32.xlu1 %v4861_v3, %s4699_s6 }
  0xbf   : > { %v427_v27 = vld [vmem:[#allocation2 + $0x70] sm:$0xf]  ;;  %v426_v28 = vld [vmem:[#allocation2 + $0x60] sm:$0xf] }
  0xc0   : > { %4389 = vmatprep.subr.msk.mxu0 %vm7904_vm4, %v427_v27  ;;  %v5015_v29 = vpop.permute.xlu1 %341  ;;  %v5017_v30 = vpop.permute.xlu0 %325 }
  0xc1   : > { %4390 = vmatpush1.msk.msra.mxu0 %vm7904_vm4, %v426_v28  ;;  %v5021_v31 = vsel %vm329_vm5, %v324_v24, %v5017_v30 }
  0xc2   : > { %8168 = vst [vmem:[#allocation15_spill] sm:$0xff] %v5021_v31  ;;  %v424_v32 = vld [vmem:[#allocation2 + $0x10] sm:$0xff]  ;;  %337 = vst [vmem:[#allocation2 + $0x48] sm:$0xf] %v5021_v31  ;;  %1714 = vrot.lane.b32.xlu0 %v4861_v3, %s4700_s9  ;;  %1159 = vrot.lane.b32.xlu1 %v4861_v3, %s4683_s28 }
  0xc3   : > { %491 = vmatprep.subr.mxu0 %v424_v32 }
  0xc4   : > { %v322_v33 = vpop.permute.xlu1 %321  ;;  %v5028_v34 = vpop.permute.xlu0 %343 }
  0xc5   : > { %v5031_v35 = vsel %vm329_vm5, %v322_v33, %v324_v24  ;;  %v349_v36 = vsel %vm347_vm6, %v5015_v29, %v5028_v34  ;;  %v423_v37 = vld [vmem:[#allocation2 + $0x20] sm:$0xff]  ;;  %v412_v33 = vld [vmem:[%s7862_s1 + $0x8] sm:$0xff] }
  0xc6   : > { %8169 = vst [vmem:[#allocation16_spill] sm:$0xff] %v5031_v35  ;;  %336 = vst [vmem:[#allocation2 + $0x8] sm:$0xf] %v5031_v35  ;;  %748 = vrot.lane.b32.xlu0 %v4849_v2, %s4697_s15  ;;  %492 = vmatpush1.msra.mxu0 %v423_v37 }
  0xc7   : > { %355 = vst [vmem:[#allocation2 + $0x48] sm:$0xf0] %v349_v36  ;;  %1716 = vrot.lane.b32.xlu1 %v4846_v1, %s4700_s9 }
  0xc8   : > { %v288_v38 = vpop.permute.xlu1 %287  ;;  %v340_v39 = vpop.permute.xlu0 %339 }
  0xc9   : > { %v348_v40 = vsel %vm347_vm6, %v340_v39, %v5015_v29 }
  0xca   : > { %354 = vst [vmem:[#allocation2 + $0x8] sm:$0xf0] %v348_v40  ;;  %838 = vrot.lane.b32.xlu0 %v4849_v2, %s4699_s6 }
  0xcb   : > { %793 = vrot.lane.b32.xlu1 %v4849_v2, %s4698_s8 }
  0xcc   : > { %v5047_v41 = vpop.permute.xlu1 %305  ;;  %v5049_v42 = vpop.permute.xlu0 %289 }
  0xcd   : > { %v5053_v43 = vsel %vm293_vm7, %v288_v38, %v5049_v42 }
  0xce   : > { %8170 = vst [vmem:[#allocation17_spill] sm:$0xff] %v5053_v43  ;;  %v421_v44 = vld [vmem:[#allocation2 + $0x48] sm:$0xff]  ;;  %301 = vst [vmem:[#allocation2 + $0x50] sm:$0xf] %v5053_v43  ;;  %1358 = vrot.lane.b32.xlu0 %v4893_v7, %s4695_s7  ;;  %s4717_s7 = smov 3  }
  0xcf   : > { %493 = vmatprep.subr.mxu0 %v421_v44  ;;  %880 = vrot.lane.b32.xlu1 %v4893_v7, %s4694_s25  ;;  %s4716_s25 = smov 4  }
  0xd0   : > { %v400_v45 = vpop.permute.xlu1 %399  ;;  %v5060_v46 = vpop.permute.xlu0 %307 }
  0xd1   : > { %v5064_v47 = vsel %vm401_vm2, %v4964_v11, %v400_v45  ;;  %v313_v48 = vsel %vm311_vm8, %v5047_v41, %v5060_v46  ;;  %v420_v49 = vld [vmem:[#allocation2 + $0x8] sm:$0xff]  ;;  %vm7910_vm2 = vcmask 809984  }
  0xd2   : > { %8171 = vst [vmem:[#allocation18_spill] sm:$0xff] %v5064_v47  ;;  %410 = vst [vmem:[#allocation2 + $0x28] sm:$0xf] %v5064_v47  ;;  %1805 = vrot.lane.b32.xlu0 %v4893_v7, %s4696_s26  ;;  %494 = vmatpush1.msra.mxu0 %v420_v49 }
  0xd3   : > { %319 = vst [vmem:[#allocation2 + $0x50] sm:$0xf0] %v313_v48  ;;  %1712 = vrot.lane.b32.xlu1 %v4849_v2, %s4700_s9 }
  0xd4   : > { %v304_v50 = vpop.permute.xlu1 %303  ;;  %v286_v51 = vpop.permute.xlu0 %285 }
  0xd5   : > { %v312_v52 = vsel %vm311_vm8, %v304_v50, %v5047_v41  ;;  %v5077_v53 = vsel %vm293_vm7, %v286_v51, %v288_v38  ;;  %v413_v38 = vld [vmem:[%s7862_s1 + $0x10] sm:$0x3] }
  0xd6   : > { %8172 = vst [vmem:[#allocation19_spill] sm:$0xff] %v5077_v53  ;;  %318 = vst [vmem:[#allocation2 + $0x18] sm:$0xf0] %v312_v52  ;;  %1106 = vrot.lane.b32.xlu0 %v4846_v1, %s4701_s10 }
  0xd7   : > { %300 = vst [vmem:[#allocation2 + $0x18] sm:$0xf] %v5077_v53  ;;  %1104 = vrot.lane.b32.xlu1 %v4861_v3, %s4701_s10 }
  0xd8   : > { %v5084_v54 = vpop.permute.xlu1 %251  ;;  %v250_v55 = vpop.permute.xlu0 %249 }
  0xd9   : > { %v5088_v56 = vsel %vm255_vm9, %v250_v55, %v5084_v54  ;;  %v428_v57 = vld [vmem:[#allocation2 + $0x28] sm:$0xf] }
  0xda   : > { %8173 = vst [vmem:[#allocation20_spill] sm:$0xff] %v5088_v56  ;;  %v418_v58 = vld [vmem:[#allocation2 + $0x50] sm:$0xff]  ;;  %263 = vst [vmem:[#allocation2] sm:$0xf] %v5088_v56  ;;  %4457 = vmatpush3.msk.msra.mxu1 %vm7904_vm4, %v428_v57  ;;  %1269 = vrot.lane.b32.xlu0 %v4846_v1, %s4702_s16  ;;  %vm7937_vm4 = vcmask 1006592  }
  0xdb   : > { %495 = vmatprep.subr.mxu0 %v418_v58  ;;  %1267 = vrot.lane.b32.xlu1 %v4861_v3, %s4702_s16 }
  0xdc   : > { %v272_v59 = vpop.permute.xlu1 %271  ;;  %v5096_v60 = vpop.permute.xlu0 %269  ;;  %4458 = vmatprep.subr.mxu1 %v7869_v6 }
  0xdd   : > { %v277_v61 = vsel %vm275_vm10, %v5096_v60, %v272_v59 }
  0xde   : > { %v417_v62 = vld [vmem:[#allocation2 + $0x18] sm:$0xff]  ;;  %283 = vst [vmem:[#allocation2] sm:$0xf0] %v277_v61  ;;  %799 = vrot.lane.b32.xlu0 %v4893_v7, %s4698_s8  ;;  %s4706_s8 = smov 31  }
  0xdf   : > { %496 = vmatpush1.msra.mxu0 %v417_v62  ;;  %754 = vrot.lane.b32.xlu1 %v4893_v7, %s4697_s15  ;;  %s4705_s15 = smov 51  }
  0xe0   : > { %v5105_v63 = vpop.permute.xlu1 %381  ;;  %v364_v0 = vpop.permute.xlu0 %363 }
  0xe1   : > { %v386_v4 = vsel %vm383_vm3, %v4994_v21, %v5105_v63  ;;  %v5112_v5 = vsel %vm365_vm1, %v4969_v13, %v364_v0  ;;  %vm846_vm1 = vcmask 1022976  }
  0xe2   : > { %8174 = vst [vmem:[#allocation21_spill] sm:$0xff] %v5112_v5  ;;  %392 = vst [vmem:[#allocation2 + $0x38] sm:$0xf0] %v386_v4  ;;  %1102 = vrot.lane.b32.xlu0 %v4849_v2, %s4701_s10 }
  0xe3   : > { %374 = vst [vmem:[#allocation2 + $0x38] sm:$0xf] %v5112_v5  ;;  %844 = vrot.lane.b32.xlu1 %v4893_v7, %s4699_s6  ;;  %s4707_s6 = smov 30  }
  0xe4   : > { %v268_v8 = vpop.permute.xlu1 %267  ;;  %v248_v9 = vpop.permute.xlu0 %247 }
  0xe5   : > { %v276_v10 = vsel %vm275_vm10, %v268_v8, %v5096_v60  ;;  %v5122_v11 = vsel %vm255_vm9, %v248_v9, %v250_v55  ;;  %v415_v12 = vld [vmem:[#allocation2] sm:$0xff] }
  0xe6   : > { %8175 = vst [vmem:[#allocation22_spill] sm:$0xff] %v5122_v11  ;;  %282 = vst [vmem:[#allocation2 + $0x30] sm:$0xf0] %v276_v10  ;;  %1265 = vrot.lane.b32.xlu0 %v4849_v2, %s4702_s16  ;;  %497 = vmatprep.subr.mxu0 %v415_v12 }
  0xe7   : > { %262 = vst [vmem:[#allocation2 + $0x30] sm:$0xf] %v5122_v11  ;;  %1161 = vrot.lane.b32.xlu1 %v4893_v7, %s4683_s28  ;;  %s4712_s28 = smov 7  }
  0xe8   : > { %v5129_v13 = vpop.permute.xlu1 %345  ;;  %v328_v15 = vpop.permute.xlu0 %327 }
  0xe9   : > { %v350_v16 = vsel %vm347_vm6, %v5028_v34, %v5129_v13  ;;  %v5136_v20 = vsel %vm329_vm5, %v5017_v30, %v328_v15  ;;  %vm882_vm5 = vcmask 850944  }
  0xea   : > { %8176 = vst [vmem:[#allocation23_spill] sm:$0xff] %v5136_v20  ;;  %v425_v21 = vld [vmem:[#allocation2 + $0x38] sm:$0xff]  ;;  %356 = vst [vmem:[#allocation2 + $0x40] sm:$0xf0] %v350_v16  ;;  %1528 = vrot.lane.b32.xlu0 %v4861_v3, %s4703_s17 }
  0xeb   : > { %338 = vst [vmem:[#allocation2 + $0x40] sm:$0xf] %v5136_v20  ;;  %4459 = vmatpush3.msra.mxu1 %v425_v21  ;;  %1718 = vrot.lane.b32.xlu1 %v4893_v7, %s4700_s9  ;;  %s4708_s9 = smov 32  }
  0xec   : > { %4460 = vmatprep.subr.mxu1 %v7869_v6  ;;  %v5144_v23 = vpop.permute.xlu1 %309  ;;  %v292_v24 = vpop.permute.xlu0 %291 }
  0xed   : > { %v314_v26 = vsel %vm311_vm8, %v5060_v46, %v5144_v23  ;;  %v5154_v27 = vsel %vm293_vm7, %v5049_v42, %v292_v24  ;;  %vm1360_vm7 = vcmask 818176  }
  0xee   : > { %8177 = vst [vmem:[#allocation24_spill] sm:$0xff] %v5154_v27  ;;  %v414_v28 = vld [vmem:[#allocation2 + $0x30] sm:$0xff]  ;;  %320 = vst [vmem:[#allocation2 + $0x68] sm:$0xf0] %v314_v26  ;;  %1627 = vrot.lane.b32.xlu0 %v4861_v3, %s4704_s12 }
  0xef   : > { %302 = vst [vmem:[#allocation2 + $0x68] sm:$0xf] %v5154_v27  ;;  %498 = vmatpush1.msra.mxu0 %v414_v28  ;;  %1530 = vrot.lane.b32.xlu1 %v4846_v1, %s4703_s17 }
  0xf0   : > { %4391 = vmatmul.mubr.msk.f32.vlgmr.msra.gmra.mxu0 %vm7891_vm11, %v411_v25  ;;  %v5162_v30 = vpop.permute.xlu1 %273  ;;  %v254_v32 = vpop.permute.xlu0 %253 }
  0xf1   : > { %537 = vmatprep.mubr.f32.mxu0 %v7869_v6  ;;  %v278_v34 = vsel %vm275_vm10, %v272_v59, %v5162_v30  ;;  %v5172_v36 = vsel %vm255_vm9, %v5084_v54, %v254_v32  ;;  %vm7917_vm9 = vcmask 457728  }
  0xf2   : > { %8178 = vst [vmem:[#allocation25_spill] sm:$0xff] %v5172_v36  ;;  %v422_v37 = vld [vmem:[#allocation2 + $0x40] sm:$0xff]  ;;  %284 = vst [vmem:[#allocation2 + $0x58] sm:$0xf0] %v278_v34  ;;  %1108 = vrot.lane.b32.xlu0 %v4893_v7, %s4701_s10  ;;  %s4709_s10 = smov 29  }
  0xf3   : > { %264 = vst [vmem:[#allocation2 + $0x58] sm:$0xf] %v5172_v36  ;;  %4461 = vmatpush3.msra.mxu1 %v422_v37  ;;  %1629 = vrot.lane.b32.xlu1 %v4846_v1, %s4704_s12 }
  0xf4   : > { %4392 = vmatmul.mubr.msk.f32.gmra.mxu0 %vm7891_vm11, %v412_v33  ;;  %4462 = vmatprep.subr.mxu1 %v7869_v6 }
  0xf5   : > { %543 = vmatprep.mubr.f32.mxu0 %v7869_v6 }
  0xf6   : > { %v419_v39 = vld [vmem:[#allocation2 + $0x68] sm:$0xff]  ;;  %1526 = vrot.lane.b32.xlu0 %v4849_v2, %s4703_s17 }
  0xf7   : > { %4463 = vmatpush3.msra.mxu1 %v419_v39  ;;  %1271 = vrot.lane.b32.xlu1 %v4893_v7, %s4702_s16  ;;  %s4710_s16 = smov 28  }
  0xf8   : > { %4393 = vmatmul.mubr.msk.f32.gmra.mxu0 %vm7891_vm11, %v413_v38  ;;  %4464 = vmatprep.subr.mxu1 %v7869_v6 }
  0xf9   : > { %4219 = vmatprep.mubr.f32.mxu0 %v7869_v6 }
  0xfa   : > { %v416_v40 = vld [vmem:[#allocation2 + $0x58] sm:$0xff]  ;;  %1888 = vrot.lane.b32.xlu0 %v4861_v3, %s4705_s15 }
  0xfb   : > { %4465 = vmatpush3.msra.mxu1 %v416_v40  ;;  %1625 = vrot.lane.b32.xlu1 %v4849_v2, %s4704_s12 }
  0xfc   : > { %4467 = vmatmul.mubr.msk.f32.vlgmr.msra.gmra.mxu1 %vm7891_vm11, %v411_v25  ;;  %4475 = vmatprep.subr.mxu1 %v7869_v6 }
  0xfd   : > { %4469 = vmatprep.mubr.msk.f32.mxu1 %vm4691_vm0, %v7869_v6  ;;  %v5200_v42 = vpop.permute.xlu1 %444  ;;  %v5202_v44 = vpop.permute.xlu0 %439 }
  0xfe   : > { %8179 = vst [vmem:[#allocation26_spill] sm:$0xff] %v5200_v42  ;;  %8180 = vst [vmem:[#allocation27_spill] sm:$0xff] %v5202_v44  ;;  %1532 = vrot.lane.b32.xlu0 %v4893_v7, %s4703_s17  ;;  %s4711_s17 = smov 27  }
  0xff   : > { %1890 = vrot.lane.b32.xlu1 %v4846_v1, %s4705_s15 }
 0x100   : > { %4470 = vmatmul.mubr.msk.f32.gmra.mxu1 %vm7891_vm11, %v412_v33 }
 0x101   : > { %4472 = vmatprep.mubr.msk.f32.mxu1 %vm4691_vm0, %v7869_v6  ;;  %v5211_v45 = vpop.permute.xlu1 %434  ;;  %v5213_v46 = vpop.permute.xlu0 %1019 }
 0x102   : > { %8181 = vst [vmem:[#allocation28_spill] sm:$0xff] %v5211_v45  ;;  %1886 = vrot.lane.b32.xlu0 %v4849_v2, %s4705_s15 }
 0x103   : > { %1631 = vrot.lane.b32.xlu1 %v4893_v7, %s4704_s12  ;;  %s4714_s12 = smov 8  }
 0x104   : > { %4473 = vmatmul.mubr.msk.f32.gmra.mxu1 %vm7891_vm11, %v413_v38  ;;  %vm7915_vm11 = vcmask 1014784  }
 0x105   : > { %4485 = vmatprep.mubr.msk.f32.mxu1 %vm4691_vm0, %v7869_v6  ;;  %v5222_v48 = vpop.permute.xlu1 %1071  ;;  %v5224_v49 = vpop.permute.xlu0 %931  ;;  %vm801_vm0 = vcmask 1031168  }
 0x106   : > { %2175 = vrot.lane.b32.xlu0 %v4846_v1, %s4706_s8 }
 0x107   : > { %2173 = vrot.lane.b32.xlu1 %v4861_v3, %s4706_s8 }
 0x109   : > { %v5228_v50 = vpop.permute.xlu1 %985  ;;  %v5230_v51 = vpop.permute.xlu0 %987 }
 0x10a   : > { %2208 = vrot.lane.b32.xlu0 %v4846_v1, %s4707_s6 }
 0x10b   : > { %2206 = vrot.lane.b32.xlu1 %v4861_v3, %s4707_s6 }
 0x10d   : > { %v5234_v52 = vpop.permute.xlu1 %1441  ;;  %v5236_v54 = vpop.permute.xlu0 %1443 }
 0x10e   : > { %2171 = vrot.lane.b32.xlu0 %v4849_v2, %s4706_s8 }
 0x10f   : > { %1892 = vrot.lane.b32.xlu1 %v4893_v7, %s4705_s15 }
 0x111   : > { %v5241_v55 = vpop.permute.xlu1 %983  ;;  %v5243_v57 = vpop.permute.xlu0 %1021 }
 0x112   : > { %2140 = vrot.lane.b32.xlu0 %v4861_v3, %s4708_s9 }
 0x113   : > { %2204 = vrot.lane.b32.xlu1 %v4849_v2, %s4707_s6 }
 0x115   : > { %v5247_v58 = vpop.permute.xlu1 %1073  ;;  %v5249_v59 = vpop.permute.xlu0 %1439 }
 0x116   : > { %2239 = vrot.lane.b32.xlu0 %v4861_v3, %s4709_s10 }
 0x117   : > { %2142 = vrot.lane.b32.xlu1 %v4846_v1, %s4708_s9 }
 0x119   : > { %v5253_v61 = vpop.permute.xlu1 %876  ;;  %v5255_v62 = vpop.permute.xlu0 %878 }
 0x11a   : > { %2138 = vrot.lane.b32.xlu0 %v4849_v2, %s4708_s9 }
 0x11b   : > { %2241 = vrot.lane.b32.xlu1 %v4846_v1, %s4709_s10 }
 0x11d   : > { %v5259_v0 = vpop.permute.xlu1 %1354  ;;  %v5261_v4 = vpop.permute.xlu0 %1356 }
 0x11e   : > { %2210 = vrot.lane.b32.xlu0 %v4893_v7, %s4707_s6  ;;  %s4491_s6 = smul.u32 24, %s4835_s13 }
 0x11f   : > { %2177 = vrot.lane.b32.xlu1 %v4893_v7, %s4706_s8 }
 0x121   : > { %v1802_v8 = vpop.permute.xlu1 %1801  ;;  %v5265_v9 = vpop.permute.xlu0 %1803 }
 0x122   : > { %v5269_v10 = vsel %vm1807_vm12, %v1802_v8, %v5265_v9  ;;  %2683 = vrot.lane.b32.xlu0 %v4861_v3, %s4710_s16 }
 0x123   : > { %8182 = vst [vmem:[#allocation29_spill] sm:$0xff] %v5269_v10  ;;  %2237 = vrot.lane.b32.xlu1 %v4849_v2, %s4709_s10 }
 0x125   : > { %v5273_v12 = vpop.permute.xlu1 %874  ;;  %v5275_v15 = vpop.permute.xlu0 %933 }
 0x126   : > { %2144 = vrot.lane.b32.xlu0 %v4893_v7, %s4708_s9  ;;  %s4492_s9 = smul.u32 384, %s4770_s22  ;;  %s4718_s22 = smov [#allocation7]  }
 0x127   : > { %2685 = vrot.lane.b32.xlu1 %v4846_v1, %s4710_s16 }
 0x129   : > { %v990_v16 = vpop.permute.xlu1 %989  ;;  %v5279_v21 = vpop.permute.xlu0 %1352 }
 0x12a   : > { %v5283_v24 = vsel %vm991_vm13, %v5230_v51, %v990_v16  ;;  %2681 = vrot.lane.b32.xlu0 %v4849_v2, %s4710_s16 }
 0x12b   : > { %8183 = vst [vmem:[#allocation30_spill] sm:$0xff] %v5283_v24  ;;  %2243 = vrot.lane.b32.xlu1 %v4893_v7, %s4709_s10  ;;  %s240_s10 = scalar_lea.vmem [#allocation7], %s4491_s6 }
 0x12d   : > { %v1446_v25 = vpop.permute.xlu1 %1445  ;;  %v1800_v26 = vpop.permute.xlu0 %1799 }
 0x12e   : > { %v5289_v28 = vsel %vm1447_vm14, %v5236_v54, %v1446_v25  ;;  %v5292_v32 = vsel %vm1807_vm12, %v1800_v26, %v1802_v8  ;;  %2991 = vrot.lane.b32.xlu0 %v4846_v1, %s4711_s17 }
 0x12f   : > { %8184 = vst [vmem:[#allocation31_spill] sm:$0xff] %v5289_v28  ;;  %8185 = vst [vmem:[#allocation32_spill] sm:$0xff] %v5292_v32  ;;  %2989 = vrot.lane.b32.xlu1 %v4861_v3, %s4711_s17 }
 0x131   : > { %v5296_v33 = vpop.permute.xlu1 %750  ;;  %v5298_v34 = vpop.permute.xlu0 %752 }
 0x132   : > { %v5303_v37 = vsel %vm756_vm15, %v5296_v33, %v5298_v34  ;;  %2987 = vrot.lane.b32.xlu0 %v4849_v2, %s4711_s17 }
 0x133   : > { %8186 = vst [vmem:[#allocation33_spill] sm:$0xff] %v5303_v37  ;;  %2687 = vrot.lane.b32.xlu1 %v4893_v7, %s4710_s16  ;;  %s4314_s16 = sshll.u32 %s240_s10, 4  ;;  %s4315_s16 = int_to_ptr.vmem [resolvable:$true] %s4314_s16 }
 0x135   : > { %v5307_v38 = vpop.permute.xlu1 %795  ;;  %v798_v39 = vpop.permute.xlu0 %797 }
 0x136   : > { %v5311_v40 = vsel %vm801_vm0, %v5307_v38, %v798_v39  ;;  %3285 = vrot.lane.b32.xlu0 %v4846_v1, %s4712_s28 }
 0x137   : > { %8187 = vst [vmem:[#allocation34_spill] sm:$0xff] %v5311_v40  ;;  %3283 = vrot.lane.b32.xlu1 %v4861_v3, %s4712_s28 }
 0x139   : > { %v5317_v8 = vpop.permute.xlu1 %840  ;;  %v843_v16 = vpop.permute.xlu0 %842 }
 0x13a   : > { %v5321_v25 = vsel %vm846_vm1, %v5317_v8, %v843_v16  ;;  %3318 = vrot.lane.b32.xlu0 %v4846_v1, %s4713_s11 }
 0x13b   : > { %8188 = vst [vmem:[#allocation35_spill] sm:$0xff] %v5321_v25  ;;  %3316 = vrot.lane.b32.xlu1 %v4861_v3, %s4713_s11 }
 0x13d   : > { %v5325_v26 = vpop.permute.xlu1 %1159  ;;  %v5327_v6 = vpop.permute.xlu0 %1714 }
 0x13e   : > { %3281 = vrot.lane.b32.xlu0 %v4849_v2, %s4712_s28 }
 0x13f   : > { %2993 = vrot.lane.b32.xlu1 %v4893_v7, %s4711_s17 }
 0x141   : > { %v1717_v28 = vpop.permute.xlu1 %1716  ;;  %v5332_v47 = vpop.permute.xlu0 %748 }
 0x142   : > { %v5336_v5 = vsel %vm7910_vm2, %v5327_v6, %v1717_v28  ;;  %3250 = vrot.lane.b32.xlu0 %v4861_v3, %s4714_s12 }
 0x143   : > { %8189 = vst [vmem:[#allocation36_spill] sm:$0xff] %v5336_v5  ;;  %3314 = vrot.lane.b32.xlu1 %v4849_v2, %s4713_s11 }
 0x145   : > { %v5341_v20 = vpop.permute.xlu1 %793  ;;  %v5343_v24 = vpop.permute.xlu0 %838 }
 0x146   : > { %3349 = vrot.lane.b32.xlu0 %v4861_v3, %s4715_s14 }
 0x147   : > { %3252 = vrot.lane.b32.xlu1 %v4846_v1, %s4714_s12 }
 0x149   : > { %v881_v27 = vpop.permute.xlu1 %880  ;;  %v1359_v36 = vpop.permute.xlu0 %1358 }
 0x14a   : > { %v5351_v42 = vsel %vm882_vm5, %v5255_v62, %v881_v27  ;;  %v5355_v10 = vsel %vm1360_vm7, %v5261_v4, %v1359_v36  ;;  %3248 = vrot.lane.b32.xlu0 %v4849_v2, %s4714_s12 }
 0x14b   : > { %8190 = vst [vmem:[#allocation37_spill] sm:$0xff] %v5351_v42  ;;  %8191 = vst [vmem:[#allocation38_spill] sm:$0xff] %v5355_v10  ;;  %3351 = vrot.lane.b32.xlu1 %v4846_v1, %s4715_s14 }
 0x14d   : > { %v5361_v5 = vpop.permute.xlu1 %1712  ;;  %v1806_v19 = vpop.permute.xlu0 %1805 }
 0x14e   : > { %v5365_v17 = vsel %vm1807_vm12, %v5265_v9, %v1806_v19  ;;  %3320 = vrot.lane.b32.xlu0 %v4893_v7, %s4713_s11  ;;  %vm7938_vm12 = vcmask 424960   ;;  %s7824_s11 = scalar_lea.hbm %s7866_s5, %s4492_s9 }
 0x14f   : > { %8192 = vst [vmem:[#allocation39_spill] sm:$0xff] %v5365_v17  ;;  %3287 = vrot.lane.b32.xlu1 %v4893_v7, %s4712_s28 }
 0x151   : > { %v5370_v27 = vpop.permute.xlu1 %1104  ;;  %v1107_v36 = vpop.permute.xlu0 %1106 }
 0x152   : > { %v5374_v10 = vsel %vm7917_vm9, %v5370_v27, %v1107_v36  ;;  %3655 = vrot.lane.b32.xlu0 %v4861_v3, %s4716_s25 }
 0x153   : > { %8193 = vst [vmem:[#allocation40_spill] sm:$0xff] %v5374_v10  ;;  %3347 = vrot.lane.b32.xlu1 %v4849_v2, %s4715_s14 }
 0x155   : > { %v5379_v19 = vpop.permute.xlu1 %1267  ;;  %v1270_v9 = vpop.permute.xlu0 %1269 }
 0x156   : > { %v5383_v17 = vsel %vm7915_vm11, %v5379_v19, %v1270_v9  ;;  %3254 = vrot.lane.b32.xlu0 %v4893_v7, %s4714_s12  ;;  %s4300_s12 = scalar_lea.sflag [#allocation6], %s4835_s13 }
 0x157   : > { %8194 = vst [vmem:[#allocation41_spill] sm:$0xff] %v5383_v17  ;;  %3657 = vrot.lane.b32.xlu1 %v4846_v1, %s4716_s25 }
 0x159   : > { %v755_v42 = vpop.permute.xlu1 %754  ;;  %v800_v10 = vpop.permute.xlu0 %799 }
 0x15a   : > { %v5390_v31 = vsel %vm756_vm15, %v5298_v34, %v755_v42  ;;  %v5393_v43 = vsel %vm801_vm0, %v798_v39, %v800_v10  ;;  %3653 = vrot.lane.b32.xlu0 %v4849_v2, %s4716_s25  ;;  %v4137_v34 = vld [vmem:[%s7865_s4] sm:$0xff] }
 0x15b   : > { %8195 = vst [vmem:[#allocation42_spill] sm:$0xff] %v5390_v31  ;;  %8196 = vst [vmem:[#allocation43_spill] sm:$0xff] %v5393_v43  ;;  %3353 = vrot.lane.b32.xlu1 %v4893_v7, %s4715_s14  ;;  %s4613_s14 = scalar_lea.vmem %s4315_s16, 384 }
 0x15c   : > { %p4614_p11 = scmp.ne.s32.totalorder %s4315_s16, %s4613_s14 }
 0x15d   : > { %v845_v17 = vpop.permute.xlu1 %844  ;;  %v5398_v56 = vpop.permute.xlu0 %1102 }
 0x15e   : > { %v5401_v25 = vsel %vm846_vm1, %v843_v16, %v845_v17  ;;  %4101 = vrot.lane.b32.xlu0 %v4846_v1, %s4717_s7  ;;  %p4615_p13 = pnand %p4614_p11, %p8730_p12 }
 0x15f   : > { %8197 = vst [vmem:[#allocation44_spill] sm:$0xff] %v5401_v25  ;;  %4099 = vrot.lane.b32.xlu1 %v4861_v3, %s4717_s7 }
 0x160   : > { %p4616_p0 = pneg %p4615_p13 }
 0x161   : > { %v5405_v42 = vpop.permute.xlu1 %1161  ;;  %v5407_v10 = vpop.permute.xlu0 %1265 }
 0x162   : > { %4097 = vrot.lane.b32.xlu0 %v4849_v2, %s4717_s7 }
 0x163   : > { %3659 = vrot.lane.b32.xlu1 %v4893_v7, %s4716_s25  ;;  %s4617_s25 = sshll.u32 %s4718_s22, 4  ;;  %s4618_s25 = int_to_ptr.vmem [resolvable:$false] %s4617_s25 }
 0x164   : > { %p4620_p1 = scmp.lt.s32.totalorder %s4315_s16, %s4618_s25 }
 0x165   : > { %v1719_v39 = vpop.permute.xlu1 %1718  ;;  %v5414_v17 = vpop.permute.xlu0 %1528 }
 0x166   : > { %v5417_v16 = vsel %vm7910_vm2, %v1717_v28, %v1719_v39  ;;  %4140 = vperm.xlu0 %4577, %v4137_v34   ;;  %vm7934_vm2 = vcmask 416768  }
 0x167   : > { %8198 = vst [vmem:[#allocation45_spill] sm:$0xff] %v5417_v16  ;;  %4103 = vrot.lane.b32.xlu1 %v4893_v7, %s4717_s7  ;;  %s4619_s7 = scalar_lea.vmem %s4618_s25, 768 }
 0x168   : > { %p4621_p3 = scmp.lt.s32.totalorder %s4619_s7, %s4613_s14 }
 0x169   : > { %v1531_v1 = vpop.permute.xlu1 %1530  ;;  %v5420_v25 = vpop.permute.xlu0 %1627 }
 0x16a   : > { %v5424_v2 = vsel %vm7938_vm12, %v5414_v17, %v1531_v1  ;;  %p4622_p8 = por %p4621_p3, %p4620_p1 }
 0x16b   : > { %8199 = vst [vmem:[#allocation46_spill] sm:$0xff] %v5424_v2 }
 0x16c   : > { %p4623_p10 = pnand %p4622_p8, %p4616_p0 }
 0x16d   : > { %v1630_v43 = vpop.permute.xlu1 %1629  ;;  %v1109_v31 = vpop.permute.xlu0 %1108 }
 0x16e   : > { %v5428_v40 = vsel %vm7937_vm4, %v5420_v25, %v1630_v43  ;;  %v5431_v28 = vsel %vm7917_vm9, %v1107_v36, %v1109_v31  ;;  %vm2212_vm9 = vcmask 244736  }
 0x16f   : > { %8200 = vst [vmem:[#allocation47_spill] sm:$0xff] %v5428_v40  ;;  %8201 = vst [vmem:[#allocation48_spill] sm:$0xff] %v5431_v28 }
 0x171   : > { %v1272_v34 = vpop.permute.xlu1 %1271  ;;  %v5433_v39 = vpop.permute.xlu0 %1526 }
 0x172   : > { %v5436_v7 = vsel %vm7915_vm11, %v1270_v9, %v1272_v34  ;;  %vm2179_vm11 = vcmask 252928  }
 0x173   : > { %8202 = vst [vmem:[#allocation49_spill] sm:$0xff] %v5436_v7 }
 0x175   : > { %v5438_v16 = vpop.permute.xlu1 %1625  ;;  %v5440_v37 = vpop.permute.xlu0 %1888 }
 0x179   : > { %v1891_v2 = vpop.permute.xlu1 %1890  ;;  %v1533_v3 = vpop.permute.xlu0 %1532 }
 0x17a   : > { %v5444_v32 = vsel %vm7934_vm2, %v5440_v37, %v1891_v2  ;;  %v5447_v31 = vsel %vm7938_vm12, %v1531_v1, %v1533_v3  ;;  %vm7942_vm12 = vcmask 236544  }
 0x17b   : > { %8203 = vst [vmem:[#allocation50_spill] sm:$0xff] %v5444_v32  ;;  %8204 = vst [vmem:[#allocation51_spill] sm:$0xff] %v5447_v31 }
 0x17d   : > { %v1632_v36 = vpop.permute.xlu1 %1631  ;;  %v5449_v28 = vpop.permute.xlu0 %1886 }
 0x17e   : > { %v5452_v9 = vsel %vm7937_vm4, %v1630_v43, %v1632_v36  ;;  %vm2689_vm4 = vcmask 228352  }
 0x17f   : > { %8205 = vst [vmem:[#allocation52_spill] sm:$0xff] %v5452_v9 }
 0x181   : > { %v5454_v34 = vpop.permute.xlu1 %2173  ;;  %v2176_v7 = vpop.permute.xlu0 %2175 }
 0x182   : > { %v5458_v40 = vsel %vm2179_vm11, %v5454_v34, %v2176_v7 }
 0x183   : > { %8206 = vst [vmem:[#allocation53_spill] sm:$0xff] %v5458_v40 }
 0x185   : > { %v5460_v18 = vpop.permute.xlu1 %2206  ;;  %v2209_v32 = vpop.permute.xlu0 %2208 }
 0x186   : > { %v5464_v3 = vsel %vm2212_vm9, %v5460_v18, %v2209_v32 }
 0x187   : > { %8207 = vst [vmem:[#allocation54_spill] sm:$0xff] %v5464_v3 }
 0x189   : > { %v1893_v1 = vpop.permute.xlu1 %1892  ;;  %v5466_v31 = vpop.permute.xlu0 %2171 }
 0x18a   : > { %v5469_v43 = vsel %vm7934_vm2, %v1891_v2, %v1893_v1  ;;  %vm2146_vm2 = vcmask 261120  }
 0x18b   : > { %8208 = vst [vmem:[#allocation55_spill] sm:$0xff] %v5469_v43 }
 0x18d   : > { %v5471_v36 = vpop.permute.xlu1 %2204  ;;  %v5473_v9 = vpop.permute.xlu0 %2140 }
 0x18e   : > { %8209 = vst [vmem:[#allocation56_spill] sm:$0xff] %v5471_v36  ;;  %8210 = vst [vmem:[#allocation57_spill] sm:$0xff] %v5473_v9 }
 0x191   : > { %v5475_v35 = vpop.permute.xlu1 %2142  ;;  %v5477_v40 = vpop.permute.xlu0 %2239 }
 0x192   : > { %8211 = vst [vmem:[#allocation58_spill] sm:$0xff] %v5477_v40 }
 0x195   : > { %v5479_v22 = vpop.permute.xlu1 %2241  ;;  %v5481_v53 = vpop.permute.xlu0 %2138 }
 0x196   : > { %8212 = vst [vmem:[#allocation59_spill] sm:$0xff] %v5481_v53 }
 0x199   : > { %v2178_v11 = vpop.permute.xlu1 %2177  ;;  %v2211_v3 = vpop.permute.xlu0 %2210 }
 0x19a   : > { %v5484_v44 = vsel %vm2179_vm11, %v2176_v7, %v2178_v11  ;;  %v5487_v2 = vsel %vm2212_vm9, %v2209_v32, %v2211_v3  ;;  %v705_v3 = vlaneseq }
 0x19b   : > { %8213 = vst [vmem:[#allocation60_spill] sm:$0xff] %v5484_v44  ;;  %8214 = vst [vmem:[#allocation61_spill] sm:$0xff] %v5487_v2 }
 0x19d   : > { %v5489_v1 = vpop.permute.xlu1 %2237  ;;  %v5491_v43 = vpop.permute.xlu0 %2683 }
 0x1a1   : > { %v5493_v9 = vpop.permute.xlu1 %2685  ;;  %v2145_v40 = vpop.permute.xlu0 %2144 }
 0x1a2   : > { %v5497_v36 = vsel %vm2146_vm2, %v5475_v35, %v2145_v40  ;;  %v5514_v40 = vsel %vm311_vm8, %v5047_v41, %v5213_v46  ;;  %v5534_v41 = vsel %vm275_vm10, %v5096_v60, %v5224_v49  ;;  %v5554_v60 = vsel %vm991_vm13, %v5241_v55, %v5228_v50 }
 0x1a3   : > { %8215 = vst [vmem:[#allocation62_spill] sm:$0xff] %v5497_v36  ;;  %8220 = vst [vmem:[#allocation67_spill] sm:$0xff] %v5514_v40  ;;  %v5519_v36 = vsel %vm311_vm8, %v5213_v46, %v5144_v23  ;;  %v5539_v46 = vsel %vm275_vm10, %v5224_v49, %v5162_v30  ;;  %v5559_v49 = vsel %vm311_vm8, %v5144_v23, %v5243_v57  ;;  %vm8245_vm8 = vcmask 457728  }
 0x1a4   : > { %8221 = vst [vmem:[#allocation68_spill] sm:$0xff] %v5519_v36  ;;  %8224 = vst [vmem:[#allocation71_spill] sm:$0xff] %v5534_v41  ;;  %v5579_v23 = vsel %vm1360_vm7, %v5259_v0, %v5261_v4 }
 0x1a5   : > { %v2244_v53 = vpop.permute.xlu1 %2243  ;;  %v2682_v11 = vpop.permute.xlu0 %2681  ;;  %8225 = vst [vmem:[#allocation72_spill] sm:$0xff] %v5539_v46  ;;  %8228 = vst [vmem:[#allocation75_spill] sm:$0xff] %v5554_v60 }
 0x1a6   : > { %v5501_v32 = vsel %vm7942_vm12, %v5479_v22, %v2244_v53  ;;  %v5505_v7 = vsel %vm2689_vm4, %v2682_v11, %v5491_v43  ;;  %v5524_v53 = vsel %vm347_vm6, %v5015_v29, %v5222_v48  ;;  %v5529_v11 = vsel %vm347_vm6, %v5222_v48, %v5129_v13  ;;  %8229 = vst [vmem:[#allocation76_spill] sm:$0xff] %v5559_v49 }
 0x1a7   : > { %8216 = vst [vmem:[#allocation63_spill] sm:$0xff] %v5501_v32  ;;  %8217 = vst [vmem:[#allocation64_spill] sm:$0xff] %v5505_v7  ;;  %vm2995_vm12 = vcmask 220160   ;;  %v706_v32 = vshrl.u32 %v705_v3, 7  ;;  %v5544_v29 = vsel %vm991_vm13, %v5228_v50, %v5230_v51  ;;  %v5549_v48 = vsel %vm1447_vm14, %v5234_v52, %v5236_v54 }
 0x1a8   : > { %8222 = vst [vmem:[#allocation69_spill] sm:$0xff] %v5524_v53  ;;  %8223 = vst [vmem:[#allocation70_spill] sm:$0xff] %v5529_v11  ;;  %v5564_v51 = vsel %vm347_vm6, %v5129_v13, %v5247_v58  ;;  %v5569_v54 = vsel %vm1447_vm14, %v5249_v59, %v5234_v52  ;;  %v5574_v50 = vsel %vm882_vm5, %v5253_v61, %v5255_v62  ;;  %vm8243_vm6 = vcmask 809984  }
 0x1a9   : > { %v5507_v2 = vpop.permute.xlu1 %2989  ;;  %v5509_v44 = vpop.permute.xlu0 %2991  ;;  %8226 = vst [vmem:[#allocation73_spill] sm:$0xff] %v5544_v29  ;;  %8227 = vst [vmem:[#allocation74_spill] sm:$0xff] %v5549_v48  ;;  %v5584_v13 = vsel %vm882_vm5, %v5273_v12, %v5253_v61  ;;  %v5597_v58 = vsel %vm275_vm10, %v5162_v30, %v5275_v15  ;;  %v5602_v59 = vsel %vm1360_vm7, %v5279_v21, %v5259_v0  ;;  %v5609_v4 = vsub.s32 0, %v706_v32  ;;  %v8275_v29 = vld [vmem:[#allocation22_spill] sm:$0xff] }
 0x1aa   : > { %8218 = vst [vmem:[#allocation65_spill] sm:$0xff] %v5507_v2  ;;  %8219 = vst [vmem:[#allocation66_spill] sm:$0xff] %v5509_v44  ;;  %v5607_v61 = vsel %vm383_vm3, %v4971_v14, %v5325_v26  ;;  %v5614_v12 = vsel %vm383_vm3, %v5325_v26, %v5105_v63  ;;  %v5619_v30 = vsel %vm756_vm15, %v5332_v47, %v5296_v33  ;;  %v5622_v15 = vsub.s32 2, %v706_v32 }
 0x1ab   : > { %8230 = vst [vmem:[#allocation77_spill] sm:$0xff] %v5564_v51  ;;  %8231 = vst [vmem:[#allocation78_spill] sm:$0xff] %v5569_v54  ;;  %v5627_v14 = vsel %vm801_vm0, %v5341_v20, %v5307_v38  ;;  %v5632_v21 = vsel %vm846_vm1, %v5343_v24, %v5317_v8  ;;  %v5637_v26 = vsel %vm8243_vm6, %v5361_v5, %v5327_v6  ;;  %v5639_v47 = vsub.s32 4, %v706_v32  ;;  %v8269_v51 = vld [vmem:[#allocation27_spill] sm:$0xff] }
 0x1ac   : > { %8232 = vst [vmem:[#allocation79_spill] sm:$0xff] %v5574_v50  ;;  %8233 = vst [vmem:[#allocation80_spill] sm:$0xff] %v5579_v23  ;;  %v5646_v38 = vsub.s32 6, %v706_v32  ;;  %v5652_v24 = vsel %vm383_vm3, %v5105_v63, %v5405_v42  ;;  %vm8249_vm10 = vcmask 1014784   ;;  %vm8250_vm13 = vcmask 424960  }
 0x1ad   : > { %v2688_v55 = vpop.permute.xlu1 %2687  ;;  %v2988_v3 = vpop.permute.xlu0 %2987  ;;  %8234 = vst [vmem:[#allocation81_spill] sm:$0xff] %v5584_v13  ;;  %8237 = vst [vmem:[#allocation84_spill] sm:$0xff] %v5597_v58  ;;  %v5657_v6 = vsel %vm8249_vm10, %v5407_v10, %v5379_v19  ;;  %vm8252_vm14 = vcmask 1006592   ;;  %vm8253_vm3 = vcmask 416768   ;;  %v5677_v10 = vsel %vm2179_vm11, %v5466_v31, %v5454_v34  ;;  %v8263_v31 = vld [vmem:[#allocation59_spill] sm:$0xff] }
 0x1ae   : > { %v5588_v52 = vsel %vm2689_vm4, %v5493_v9, %v2688_v55  ;;  %v5592_v57 = vsel %vm2995_vm12, %v2988_v3, %v5507_v2  ;;  %8238 = vst [vmem:[#allocation85_spill] sm:$0xff] %v5602_v59  ;;  %8239 = vst [vmem:[#allocation86_spill] sm:$0xff] %v5607_v61  ;;  %v5644_v55 = vsel %vm8245_vm8, %v5398_v56, %v5370_v27  ;;  %vm8261_vm15 = vcmask 236544  }
 0x1af   : > { %8235 = vst [vmem:[#allocation82_spill] sm:$0xff] %v5588_v52  ;;  %8236 = vst [vmem:[#allocation83_spill] sm:$0xff] %v5592_v57  ;;  %v5662_v56 = vsel %vm8250_vm13, %v5433_v39, %v5414_v17  ;;  %v5667_v5 = vsel %vm8252_vm14, %v5438_v16, %v5420_v25  ;;  %v5672_v19 = vsel %vm8253_vm3, %v5449_v28, %v5440_v37  ;;  %v8256_v17 = vld [vmem:[#allocation56_spill] sm:$0xff]  ;;  %v8258_v39 = vld [vmem:[#allocation57_spill] sm:$0xff]  ;;  %vm3322_vm0 = vcmask 48128  }
 0x1b0   : > { %v533_v62 = vpop.f32.mrf.mxu0  ;;  %8240 = vst [vmem:[#allocation87_spill] sm:$0xff] %v5609_v4  ;;  %8241 = vst [vmem:[#allocation88_spill] sm:$0xff] %v5614_v12  ;;  %v5682_v25 = vsel %vm2212_vm9, %v8256_v17, %v5460_v18  ;;  %v8260_v28 = vld [vmem:[#allocation58_spill] sm:$0xff]  ;;  %v5697_v34 = vsel %vm2146_vm2, %v8263_v31, %v8258_v39  ;;  %vm3256_vm1 = vcmask 64512   ;;  %vm3661_vm5 = vcmask 31744  }
 0x1b1   : > { %v534_v0 = vadd.f32 %v533_v62, %v5211_v45  ;;  %8242 = vst [vmem:[#allocation89_spill] sm:$0xff] %v5622_v15  ;;  %8244 = vst [vmem:[#allocation90_spill] sm:$0xff] %v5637_v26  ;;  %v5687_v62 = vsel %vm2146_vm2, %v8258_v39, %v5475_v35  ;;  %v5709_v39 = vsel %vm2689_vm4, %v5491_v43, %v5493_v9  ;;  %vm3289_vm4 = vcmask 56320  }
 0x1b2   : > { %v535_v33 = vpop.f32.mrf.mxu0  ;;  %8246 = vst [vmem:[#allocation91_spill] sm:$0xff] %v5644_v55  ;;  %8247 = vst [vmem:[#allocation92_spill] sm:$0xff] %v5646_v38  ;;  %vm3355_vm2 = vcmask 39936   ;;  %vm4105_vm7 = vcmask 23552   ;;  %vm8724_vm9 = vcmask 1043456   ;;  %vm8728_vm8 = vcmask 293888  }
 0x1b3   : > { %v4398_v20 = vclamps-f32 %v534_v0, 1.0  ;;  %v536_v3 = vadd.f32 %v535_v33, %v5211_v45  ;;  %8248 = vst [vmem:[#allocation93_spill] sm:$0xff] %v5652_v24  ;;  %8251 = vst [vmem:[#allocation94_spill] sm:$0xff] %v5662_v56 }
 0x1b4   : > { %v539_v42 = vpop.f32.mrf.mxu0  ;;  %8254 = vst [vmem:[#allocation95_spill] sm:$0xff] %v5672_v19  ;;  %8255 = vst [vmem:[#allocation96_spill] sm:$0xff] %v5677_v10 }
 0x1b5   : > { %v4407_v8 = vadd.f32 1.0, %v4398_v20  ;;  %v660_v27 = vand.u32 2147483647, %v4398_v20  ;;  %v4410_v32 = vadd.f32 -1.0, %v4398_v20  ;;  %v4413_v63 = vadd.f32 -2.0, %v4398_v20  ;;  %8257 = vst [vmem:[#allocation56_spill] sm:$0xff] %v5682_v25  ;;  %vm8265_vm11 = vmmov %vm8261_vm15 }
 0x1b6   : > { %v4399_v16 = vclamps-f32 %v536_v3, 1.0  ;;  %8259 = vst [vmem:[#allocation57_spill] sm:$0xff] %v5687_v62  ;;  %v5692_v20 = vsel %vm8261_vm15, %v8260_v28, %v5479_v22  ;;  %8264 = vst [vmem:[#allocation59_spill] sm:$0xff] %v5697_v34  ;;  %v541_v24 = vpop.f32.mrf.mxu0  ;;  %v5712_v49 = vadd.f32 %v539_v42, %v8269_v51 }
 0x1b7   : > { %v651_v0 = vand.u32 2147483647, %v4407_v8  ;;  %v663_v33 = vsub.f32 1.0, %v660_v27  ;;  %v672_v37 = vand.u32 2147483647, %v4410_v32  ;;  %8262 = vst [vmem:[#allocation58_spill] sm:$0xff] %v5692_v20  ;;  %v5702_v8 = vsel %vm8265_vm11, %v5489_v1, %v8260_v28  ;;  %vm8726_vm6 = vmmov %vm8724_vm9 }
 0x1b8   : > { %v684_v18 = vand.u32 2147483647, %v4413_v63  ;;  %v4408_v3 = vadd.f32 1.0, %v4399_v16  ;;  %v661_v35 = vand.u32 2147483647, %v4399_v16  ;;  %8266 = vst [vmem:[#allocation97_spill] sm:$0xff] %v5702_v8  ;;  %v5715_v1 = vadd.f32 %v541_v24, %v8269_v51  ;;  %vm8729_vm10 = vmmov %vm8728_vm8 }
 0x1b9   : > { %v654_v17 = vsub.f32 1.0, %v651_v0  ;;  %v666_v52 = vmax.f32 %v663_v33, 0.0  ;;  %v675_v57 = vsub.f32 1.0, %v672_v37  ;;  %v4411_v22 = vadd.f32 -1.0, %v4399_v16  ;;  %8268 = vst [vmem:[#allocation99_spill] sm:$0xff] %v5709_v39  ;;  %8270 = vst [vmem:[#allocation100_spill] sm:$0xff] %v5712_v49 }
 0x1ba   : > { %v687_v27 = vsub.f32 1.0, %v684_v18  ;;  %v5704_v32 = vadd.f32 -2.0, %v4399_v16  ;;  %v652_v31 = vand.u32 2147483647, %v4408_v3  ;;  %8271 = vst [vmem:[#allocation101_spill] sm:$0xff] %v5715_v1  ;;  %v664_v58 = vsub.f32 1.0, %v661_v35 }
 0x1bb   : > { %v657_v63 = vmax.f32 %v654_v17, 0.0  ;;  %v678_v0 = vmax.f32 %v675_v57, 0.0  ;;  %v727_v33 = vrot.slane %v666_v52, 1  ;;  %v673_v9 = vand.u32 2147483647, %v4411_v22  ;;  %v8276_v8 = vld [vmem:[#allocation19_spill] sm:$0xff] }
 0x1bc   : > { %8267 = vst [vmem:[#allocation98_spill] sm:$0xff] %v5704_v32  ;;  %v690_v37 = vmax.f32 %v687_v27, 0.0  ;;  %v655_v51 = vsub.f32 1.0, %v652_v31  ;;  %v5742_v20 = vmax.f32 %v664_v58, 0.0  ;;  %v4583_v31 = vld [vmem:[%s4839_s23] sm:$0xff] }
 0x1bd   : > { %v696_v28 = vrot.slane %v657_v63, 1  ;;  %v5717_v18 = vmul.f32 %v727_v33, %v657_v63  ;;  %v772_v16 = vrot.slane %v678_v0, 1  ;;  %v5719_v7 = vmul.f32 %v727_v33, %v666_v52 }
 0x1be   : > { %v817_v45 = vrot.slane %v690_v37, 1  ;;  %v5740_v39 = vmul.f32 %v727_v33, %v678_v0  ;;  %8272 = vst [vmem:[#allocation102_spill] sm:$0xff] %v5742_v20  ;;  %v5747_v44 = vmul.f32 %v727_v33, %v690_v37 }
 0x1bf   : > { %v5722_v57 = vmul.f32 %v696_v28, %v657_v63  ;;  %v739_v42 = vrot.slane %v5717_v18, %v5609_v4  ;;  %v5726_v3 = vmul.f32 %v772_v16, %v657_v63  ;;  %v5728_v24 = vmul.f32 %v696_v28, %v666_v52 }
 0x1c0   : > { %v5730_v17 = vmul.f32 %v817_v45, %v657_v63  ;;  %v5732_v27 = vmul.f32 %v772_v16, %v666_v52  ;;  %v5734_v35 = vmul.f32 %v817_v45, %v666_v52  ;;  %v901_v63 = vrot.slane %v5719_v7, %v5609_v4 }
 0x1c1   : > { %v708_v22 = vrot.slane %v5722_v57, %v5609_v4  ;;  %v784_v43 = vrot.slane %v5726_v3, %v5609_v4  ;;  %v763_v2 = vmul.f32 %v5619_v30, %v739_v42  ;;  %v5749_v52 = vsub.f32 1.0, %v673_v9 }
 0x1c2   : > { %v829_v48 = vrot.slane %v5730_v17, %v5609_v4  ;;  %v865_v23 = vrot.slane %v5728_v24, %v5609_v4  ;;  %v5756_v12 = vmul.f32 %v696_v28, %v678_v0  ;;  %v922_v42 = vrot.slane %v5732_v27, %v5609_v4 }
 0x1c3   : > { %8273 = vst [vmem:[#allocation103_spill] sm:$0xff] %v5749_v52  ;;  %v718_v62 = vmul.f32 %v4583_v31, %v708_v22  ;;  %v808_v58 = vmul.f32 %v5627_v14, %v784_v43  ;;  %v953_v33 = vrot.slane %v5734_v35, %v5609_v4  ;;  %v5763_v9 = vmax.f32 %v655_v51, 0.0 }
 0x1c4   : > { %v1010_v22 = vrot.slane %v5740_v39, %v5609_v4  ;;  %v5767_v31 = vmul.f32 %v772_v16, %v678_v0  ;;  %v5769_v36 = vmul.f32 %v817_v45, %v678_v0  ;;  %v910_v46 = vmul.f32 %v901_v63, %v8275_v29 }
 0x1c5   : > { %8274 = vst [vmem:[#allocation104_spill] sm:$0xff] %v5763_v9  ;;  %v766_v11 = vadd.f32 %v763_v2, %v718_v62  ;;  %v974_v43 = vrot.slane %v5756_v12, %v5609_v4  ;;  %v5774_v1 = vmul.f32 %v696_v28, %v690_v37  ;;  %v1129_v49 = vrot.slane %v5747_v44, %v5609_v4 }
 0x1c6   : > { %v853_v2 = vmul.f32 %v5632_v21, %v829_v48  ;;  %v889_v62 = vmul.f32 %v5584_v13, %v865_v23  ;;  %v5780_v50 = vmul.f32 %v772_v16, %v690_v37  ;;  %v941_v0 = vmul.f32 %v5534_v41, %v922_v42  ;;  %v8279_v13 = vld [vmem:[#allocation12_spill] sm:$0xff] }
 0x1c7   : > { %v811_v51 = vadd.f32 %v808_v58, %v766_v11  ;;  %v962_v25 = vmul.f32 %v953_v33, %v8276_v8  ;;  %v1041_v63 = vrot.slane %v5767_v31, %v5609_v4  ;;  %v1062_v28 = vrot.slane %v5769_v36, %v5609_v4  ;;  %v8277_v58 = vld [vmem:[#allocation14_spill] sm:$0xff] }
 0x1c8   : > { %v1029_v34 = vmul.f32 %v5514_v40, %v1010_v22  ;;  %v5789_v11 = vmul.f32 %v817_v45, %v690_v37  ;;  %v1202_v48 = vrot.slane %v5722_v57, %v5622_v15  ;;  %v998_v23 = vmul.f32 %v5554_v60, %v974_v43 }
 0x1c9   : > { %v856_v10 = vadd.f32 %v853_v2, %v811_v51  ;;  %v1093_v16 = vrot.slane %v5774_v1, %v5609_v4  ;;  %v5797_v42 = vmul.f32 %v1129_v49, %v8277_v58  ;;  %v1220_v33 = vrot.slane %v5717_v18, %v5622_v15  ;;  %v8278_v51 = vld [vmem:[#allocation16_spill] sm:$0xff] }
 0x1ca   : > { %v1150_v22 = vrot.slane %v5780_v50, %v5609_v4  ;;  %v1211_v45 = vmul.f32 %v1202_v48, %v5619_v30  ;;  %v1238_v37 = vrot.slane %v5726_v3, %v5622_v15  ;;  %v1050_v43 = vmul.f32 %v1041_v63, %v8278_v51 }
 0x1cb   : > { %v892_v20 = vadd.f32 %v889_v62, %v856_v10  ;;  %v1081_v2 = vmul.f32 %v5524_v53, %v1062_v28  ;;  %v1229_v9 = vmul.f32 %v1220_v33, %v5627_v14  ;;  %v1256_v49 = vrot.slane %v5730_v17, %v5622_v15 }
 0x1cc   : > { %v1181_v10 = vrot.slane %v5789_v11, %v5609_v4  ;;  %v1289_v62 = vrot.slane %v5728_v24, %v5622_v15  ;;  %v1307_v30 = vrot.slane %v5719_v7, %v5622_v15  ;;  %v1247_v63 = vmul.f32 %v1238_v37, %v5632_v21 }
 0x1cd   : > { %v913_v32 = vadd.f32 %v910_v46, %v892_v20  ;;  %v1232_v48 = vadd.f32 %v1229_v9, %v1211_v45  ;;  %v1325_v28 = vrot.slane %v5732_v27, %v5622_v15  ;;  %v1343_v33 = vrot.slane %v5734_v35, %v5622_v15 }
 0x1ce   : > { %v1117_v46 = vmul.f32 %v5644_v55, %v1093_v16  ;;  %v1376_v20 = vrot.slane %v5756_v12, %v5622_v15  ;;  %v1394_v4 = vrot.slane %v5740_v39, %v5622_v15  ;;  %v1169_v60 = vmul.f32 %v5607_v61, %v1150_v22 }
 0x1cf   : > { %v944_v52 = vadd.f32 %v941_v0, %v913_v32  ;;  %v1250_v9 = vadd.f32 %v1247_v63, %v1232_v48  ;;  %v1280_v45 = vmul.f32 %v5657_v6, %v1256_v49  ;;  %v1412_v37 = vrot.slane %v5767_v31, %v5622_v15 }
 0x1d0   : > { %v5832_v38 = vmul.f32 %v1181_v10, %v8279_v13  ;;  %v1298_v32 = vmul.f32 %v1289_v62, %v8275_v29  ;;  %v1430_v0 = vrot.slane %v5769_v36, %v5622_v15  ;;  %v1316_v55 = vmul.f32 %v1307_v30, %v5534_v41 }
 0x1d1   : > { %v965_v19 = vadd.f32 %v962_v25, %v944_v52  ;;  %v1283_v16 = vadd.f32 %v1280_v45, %v1250_v9  ;;  %v1334_v22 = vmul.f32 %v1325_v28, %v8276_v8  ;;  %v1367_v48 = vmul.f32 %v5602_v59, %v1343_v33 }
 0x1d2   : > { %v1385_v63 = vmul.f32 %v1376_v20, %v5514_v40  ;;  %v1403_v25 = vmul.f32 %v1394_v4, %v8278_v51  ;;  %v1463_v52 = vrot.slane %v5774_v1, %v5622_v15  ;;  %v1421_v62 = vmul.f32 %v1412_v37, %v5524_v53 }
 0x1d3   : > { %v1001_v49 = vadd.f32 %v998_v23, %v965_v19  ;;  %v1301_v10 = vadd.f32 %v1298_v32, %v1283_v16  ;;  %v1562_v9 = vrot.slane %v5722_v57, %v5639_v47  ;;  %v1580_v30 = vrot.slane %v5717_v18, %v5639_v47 }
 0x1d4   : > { %v1454_v33 = vmul.f32 %v5569_v54, %v1430_v0  ;;  %v1481_v19 = vrot.slane %v5747_v44, %v5622_v15  ;;  %v1598_v4 = vrot.slane %v5726_v3, %v5639_v47  ;;  %v1616_v37 = vrot.slane %v5730_v17, %v5639_v47 }
 0x1d5   : > { %v1032_v28 = vadd.f32 %v1029_v34, %v1001_v49  ;;  %v1319_v23 = vadd.f32 %v1316_v55, %v1301_v10  ;;  %v1571_v20 = vmul.f32 %v1562_v9, %v5627_v14  ;;  %v1589_v45 = vmul.f32 %v1580_v30, %v5632_v21 }
 0x1d6   : > { %v1472_v16 = vmul.f32 %v1463_v52, %v8277_v58  ;;  %v1499_v34 = vrot.slane %v5780_v50, %v5622_v15  ;;  %v1517_v0 = vrot.slane %v5789_v11, %v5622_v15  ;;  %v1607_v55 = vmul.f32 %v1598_v4, %v5657_v6 }
 0x1d7   : > { %v1053_v32 = vadd.f32 %v1050_v43, %v1032_v28  ;;  %v1337_v49 = vadd.f32 %v1334_v22, %v1319_v23  ;;  %v1592_v40 = vadd.f32 %v1589_v45, %v1571_v20  ;;  %v1649_v14 = vrot.slane %v5728_v24, %v5639_v47 }
 0x1d8   : > { %v1490_v10 = vmul.f32 %v1481_v19, %v5607_v61  ;;  %v1640_v43 = vmul.f32 %v5667_v5, %v1616_v37  ;;  %v1667_v52 = vrot.slane %v5719_v7, %v5639_v47  ;;  %v1685_v28 = vrot.slane %v5732_v27, %v5639_v47 }
 0x1d9   : > { %v1084_v21 = vadd.f32 %v1081_v2, %v1053_v32  ;;  %v1370_v9 = vadd.f32 %v1367_v48, %v1337_v49  ;;  %v1610_v30 = vadd.f32 %v1607_v55, %v1592_v40  ;;  %v1703_v22 = vrot.slane %v5734_v35, %v5639_v47 }
 0x1da   : > { %v1508_v4 = vmul.f32 %v1499_v34, %v8279_v13  ;;  %v1736_v2 = vrot.slane %v5756_v12, %v5639_v47  ;;  %v1754_v5 = vrot.slane %v5740_v39, %v5639_v47  ;;  %v1541_v23 = vmul.f32 %v5662_v56, %v1517_v0 }
 0x1db   : > { %v1120_v6 = vadd.f32 %v1117_v46, %v1084_v21  ;;  %v1388_v19 = vadd.f32 %v1385_v63, %v1370_v9  ;;  %v1643_v48 = vadd.f32 %v1640_v43, %v1610_v30  ;;  %v1658_v40 = vmul.f32 %v1649_v14, %v5534_v41  ;;  %v8280_v9 = vld [vmem:[#allocation92_spill] sm:$0xff] }
 0x1dc   : > { %v1676_v45 = vmul.f32 %v1667_v52, %v8276_v8  ;;  %v1772_v46 = vrot.slane %v5767_v31, %v5639_v47  ;;  %v1790_v37 = vrot.slane %v5769_v36, %v5639_v47  ;;  %v1694_v49 = vmul.f32 %v1685_v28, %v5602_v59 }
 0x1dd   : > { %v1141_v20 = vadd.f32 %v5797_v42, %v1120_v6  ;;  %v1406_v32 = vadd.f32 %v1403_v25, %v1388_v19  ;;  %v1661_v34 = vadd.f32 %v1658_v40, %v1643_v48  ;;  %v1727_v63 = vmul.f32 %v5637_v26, %v1703_v22  ;;  %v8282_v19 = vld [vmem:[#allocation81_spill] sm:$0xff] }
 0x1de   : > { %v1745_v55 = vmul.f32 %v1736_v2, %v8278_v51  ;;  %v1763_v14 = vmul.f32 %v1754_v5, %v5524_v53  ;;  %v1823_v42 = vrot.slane %v5774_v1, %v5639_v47  ;;  %v1841_v52 = vrot.slane %v5747_v44, %v5639_v47 }
 0x1df   : > { %v1172_v0 = vadd.f32 %v1169_v60, %v1141_v20  ;;  %v1424_v21 = vadd.f32 %v1421_v62, %v1406_v32  ;;  %v1679_v43 = vadd.f32 %v1676_v45, %v1661_v34  ;;  %v1913_v25 = vrot.slane %v5722_v57, %v8280_v9  ;;  %v8281_v60 = vld [vmem:[#allocation32_spill] sm:$0xff] }
 0x1e0   : > { %v1781_v28 = vmul.f32 %v1772_v46, %v5569_v54  ;;  %v1814_v22 = vmul.f32 %v8281_v60, %v1790_v37  ;;  %v1931_v6 = vrot.slane %v5717_v18, %v8280_v9  ;;  %v1949_v48 = vrot.slane %v5726_v3, %v8280_v9  ;;  %v8318_v60 = vld [vmem:[#allocation13_spill] sm:$0xff] }
 0x1e1   : > { %v1193_v30 = vadd.f32 %v5832_v38, %v1172_v0  ;;  %v1457_v2 = vadd.f32 %v1454_v33, %v1424_v21  ;;  %v1697_v5 = vadd.f32 %v1694_v49, %v1679_v43  ;;  %v1922_v62 = vmul.f32 %v1913_v25, %v8282_v19 }
 0x1e2   : > { %v1832_v40 = vmul.f32 %v1823_v42, %v5607_v61  ;;  %v1859_v57 = vrot.slane %v5780_v50, %v5639_v47  ;;  %v1940_v38 = vmul.f32 %v1931_v6, %v8275_v29  ;;  %v1967_v20 = vrot.slane %v5730_v17, %v8280_v9 }
 0x1e3   : > { %1196 = vst [vmem:[#allocation3 + $0x18] sm:$0xf] %v1193_v30  ;;  %v1475_v45 = vadd.f32 %v1472_v16, %v1457_v2  ;;  %v1730_v18 = vadd.f32 %v1727_v63, %v1697_v5  ;;  %v1850_v33 = vmul.f32 %v1841_v52, %v8279_v13  ;;  %v1877_v46 = vrot.slane %v5789_v11, %v5639_v47  ;;  %v8284_v30 = vld [vmem:[#allocation75_spill] sm:$0xff] }
 0x1e4   : > { %v1943_v37 = vadd.f32 %v1940_v38, %v1922_v62  ;;  %v1958_v3 = vmul.f32 %v1949_v48, %v5534_v41  ;;  %v1985_v32 = vrot.slane %v5728_v24, %v8280_v9  ;;  %v2003_v34 = vrot.slane %v5719_v7, %v8280_v9  ;;  %v8285_v5 = vld [vmem:[#allocation67_spill] sm:$0xff] }
 0x1e5   : > { %v1493_v49 = vadd.f32 %v1490_v10, %v1475_v45  ;;  %v1748_v0 = vadd.f32 %v1745_v55, %v1730_v18  ;;  %v1976_v17 = vmul.f32 %v1967_v20, %v8276_v8  ;;  %v2021_v16 = vrot.slane %v5732_v27, %v8280_v9  ;;  %v8283_v55 = vld [vmem:[#allocation95_spill] sm:$0xff] }
 0x1e6   : > { %v1961_v63 = vadd.f32 %v1958_v3, %v1943_v37  ;;  %v2039_v42 = vrot.slane %v5734_v35, %v8280_v9  ;;  %v2057_v21 = vrot.slane %v5756_v12, %v8280_v9  ;;  %v2075_v24 = vrot.slane %v5740_v39, %v8280_v9  ;;  %v8286_v62 = vld [vmem:[#allocation91_spill] sm:$0xff]  ;;  %v8288_v3 = vld [vmem:[#allocation98_spill] sm:$0xff] }
 0x1e7   : > { %v1511_v43 = vadd.f32 %v1508_v4, %v1493_v49  ;;  %v1766_v52 = vadd.f32 %v1763_v14, %v1748_v0  ;;  %v1868_v7 = vmul.f32 %v1859_v57, %v5662_v56  ;;  %v2093_v10 = vrot.slane %v5767_v31, %v8280_v9  ;;  %v8287_v45 = vld [vmem:[#allocation103_spill] sm:$0xff]  ;;  %v8290_v49 = vld [vmem:[#allocation104_spill] sm:$0xff]  ;;  %v8291_v0 = vld [vmem:[#allocation102_spill] sm:$0xff] }
 0x1e8   : > { %v1901_v25 = vmul.f32 %v8283_v55, %v1877_v46  ;;  %v1979_v27 = vadd.f32 %v1976_v17, %v1961_v63  ;;  %v1994_v6 = vmul.f32 %v1985_v32, %v8284_v30  ;;  %v2111_v35 = vrot.slane %v5769_v36, %v8280_v9  ;;  %v6025_v30 = vpop.f32.mrf.mxu1 }
 0x1e9   : > { %v1544_v2 = vadd.f32 %v1541_v23, %v1511_v43  ;;  %v1784_v12 = vadd.f32 %v1781_v28, %v1766_v52  ;;  %v2012_v19 = vmul.f32 %v2003_v34, %v8285_v5  ;;  %v2030_v39 = vmul.f32 %v2021_v16, %v8278_v51  ;;  %v8292_v52 = vld [vmem:[#allocation59_spill] sm:$0xff]  ;;  %8304 = vst [vmem:[#allocation81_spill] sm:$0xff] %v6025_v30 }
 0x1ea   : > { %v1997_v4 = vadd.f32 %v1994_v6, %v1979_v27  ;;  %v2048_v14 = vmul.f32 %v2039_v42, %v5524_v53  ;;  %v2066_v48 = vmul.f32 %v2057_v21, %v8286_v62  ;;  %v2084_v31 = vmul.f32 %v2075_v24, %v8277_v58 }
 0x1eb   : > { %v1550_v57 = vrot.slane %v1544_v2, 4  ;;  %v1817_v38 = vadd.f32 %v1814_v22, %v1784_v12  ;;  %v2102_v20 = vmul.f32 %v2093_v10, %v5607_v61  ;;  %v679_v18 = vmax.f32 %v8287_v45, 0.0  ;;  %v8296_v45 = vld [vmem:[#allocation33_spill] sm:$0xff] }
 0x1ec   : > { %v2015_v36 = vadd.f32 %v2012_v19, %v1997_v4  ;;  %v2120_v23 = vmul.f32 %v2111_v35, %v8279_v13  ;;  %v2129_v28 = vrot.slane %v5774_v1, %v8280_v9  ;;  %v2162_v46 = vrot.slane %v5747_v44, %v8280_v9  ;;  %v8294_v19 = vld [vmem:[#allocation96_spill] sm:$0xff]  ;;  %v8312_v13 = vld [vmem:[#allocation15_spill] sm:$0xff] }
 0x1ed   : > { %v1835_v37 = vadd.f32 %v1832_v40, %v1817_v38  ;;  %1556 = vst [vmem:[#allocation3 + $0x18] sm:$0xf0] %v1550_v57  ;;  %v8289_v32 = vand.u32 2147483647, %v8288_v3  ;;  %v697_v22 = vrot.slane %v8290_v49, 1  ;;  %v728_v17 = vrot.slane %v8291_v0, 1 }
 0x1ee   : > { %v2033_v16 = vadd.f32 %v2030_v39, %v2015_v36  ;;  %v2195_v63 = vrot.slane %v5780_v50, %v8280_v9  ;;  %v2228_v42 = vrot.slane %v5789_v11, %v8280_v9  ;;  %v5955_v1 = vrot.slane %v679_v18, 1  ;;  %v8295_v38 = vld [vmem:[#allocation10_spill] sm:$0xff]  ;;  %v8297_v3 = vld [vmem:[#allocation56_spill] sm:$0xff] }
 0x1ef   : > { %v688_v34 = vsub.f32 1.0, %v8289_v32  ;;  %v1853_v21 = vadd.f32 %v1850_v33, %v1835_v37  ;;  %v5960_v40 = vmul.f32 %v697_v22, %v8290_v49  ;;  %v5963_v24 = vmul.f32 %v728_v17, %v8290_v49  ;;  %v8293_v33 = vld [vmem:[#allocation87_spill] sm:$0xff] }
 0x1f0   : > { %v2051_v43 = vadd.f32 %v2048_v14, %v2033_v16  ;;  %v2153_v10 = vmul.f32 %v8292_v52, %v2129_v28  ;;  %v5968_v50 = vmul.f32 %v5955_v1, %v8290_v49  ;;  %v5971_v11 = vmul.f32 %v697_v22, %v8291_v0 }
 0x1f1   : > { %v5957_v44 = vmax.f32 %v688_v34, 0.0  ;;  %v1871_v27 = vadd.f32 %v1868_v7, %v1853_v21  ;;  %v712_v6 = vrot.slane %v5960_v40, %v8293_v33  ;;  %v743_v35 = vrot.slane %v5963_v24, %v8293_v33 }
 0x1f2   : > { %v2069_v12 = vadd.f32 %v2066_v48, %v2051_v43  ;;  %v2186_v39 = vmul.f32 %v8294_v19, %v2162_v46  ;;  %v788_v4 = vrot.slane %v5968_v50, %v8293_v33  ;;  %v5982_v14 = vmul.f32 %v728_v17, %v8291_v0  ;;  %v8298_v48 = vld [vmem:[#allocation34_spill] sm:$0xff]  ;;  %v4468_v19 = vpop.f32.mrf.mxu1 }
 0x1f3   : > { %v818_v2 = vrot.slane %v5957_v44, 1  ;;  %v1904_v57 = vadd.f32 %v1901_v25, %v1871_v27  ;;  %v719_v7 = vmul.f32 %v712_v6, %v8295_v38  ;;  %v764_v36 = vmul.f32 %v8296_v45, %v743_v35  ;;  %v8299_v35 = vld [vmem:[#allocation35_spill] sm:$0xff] }
 0x1f4   : > { %v2087_v37 = vadd.f32 %v2084_v31, %v2069_v12  ;;  %v2219_v32 = vmul.f32 %v8297_v3, %v2195_v63  ;;  %v809_v34 = vmul.f32 %v8298_v48, %v788_v4  ;;  %v869_v46 = vrot.slane %v5971_v11, %v8293_v33 }
 0x1f5   : > { %v5987_v28 = vmul.f32 %v818_v2, %v8290_v49  ;;  %1907 = vst [vmem:[#allocation3] sm:$0xf] %v1904_v57  ;;  %v767_v16 = vadd.f32 %v764_v36, %v719_v7  ;;  %v5997_v21 = vmul.f32 %v5955_v1, %v8291_v0  ;;  %v6000_v49 = vmul.f32 %v818_v2, %v8291_v0  ;;  %v8300_v0 = vld [vmem:[#allocation97_spill] sm:$0xff] }
 0x1f6   : > { %v2105_v31 = vadd.f32 %v2102_v20, %v2087_v37  ;;  %v905_v63 = vrot.slane %v5982_v14, %v8293_v33  ;;  %v6004_v43 = vmul.f32 %v697_v22, %v679_v18  ;;  %v6006_v27 = vmul.f32 %v728_v17, %v679_v18  ;;  %v8301_v20 = vld [vmem:[#allocation79_spill] sm:$0xff]  ;;  %v8302_v37 = vld [vmem:[#allocation100_spill] sm:$0xff] }
 0x1f7   : > { %v833_v25 = vrot.slane %v5987_v28, %v8293_v33  ;;  %v812_v6 = vadd.f32 %v809_v34, %v767_v16  ;;  %v926_v4 = vrot.slane %v5997_v21, %v8293_v33  ;;  %v6012_v57 = vmul.f32 %v5955_v1, %v679_v18 }
 0x1f8   : > { %v2123_v38 = vadd.f32 %v2120_v23, %v2105_v31  ;;  %v2252_v7 = vmul.f32 %v8300_v0, %v2228_v42  ;;  %v890_v36 = vmul.f32 %v8301_v20, %v869_v46  ;;  %v6017_v52 = vclamps-f32 %v8302_v37, 1.0  ;;  %v8305_v23 = vld [vmem:[#allocation20_spill] sm:$0xff]  ;;  %v8306_v46 = vld [vmem:[#allocation101_spill] sm:$0xff] }
 0x1f9   : > { %v854_v12 = vmul.f32 %v8299_v35, %v833_v25  ;;  %v957_v34 = vrot.slane %v6000_v49, %v8293_v33  ;;  %v978_v16 = vrot.slane %v6004_v43, %v8293_v33  ;;  %v6023_v25 = vmul.f32 %v818_v2, %v679_v18 }
 0x1fa   : > { %8303 = vst [vmem:[#allocation92_spill] sm:$0xff] %v6017_v52  ;;  %v2156_v55 = vadd.f32 %v2153_v10, %v2123_v38  ;;  %v911_v31 = vmul.f32 %v905_v63, %v8305_v23  ;;  %v1014_v42 = vrot.slane %v6006_v27, %v8293_v33  ;;  %v6031_v37 = vclamps-f32 %v8306_v46, 1.0  ;;  %v8310_v46 = vld [vmem:[#allocation73_spill] sm:$0xff] }
 0x1fb   : > { %v857_v62 = vadd.f32 %v854_v12, %v812_v6  ;;  %v8308_v12 = vld [vmem:[#allocation72_spill] sm:$0xff]  ;;  %v1045_v3 = vrot.slane %v6012_v57, %v8293_v33  ;;  %v6037_v18 = vmul.f32 %v697_v22, %v5957_v44  ;;  %v1066_v10 = vrot.slane %v6023_v25, %v8293_v33 }
 0x1fc   : > { %8307 = vst [vmem:[#allocation103_spill] sm:$0xff] %v6031_v37  ;;  %v942_v0 = vmul.f32 %v8308_v12, %v926_v4  ;;  %v2189_v30 = vadd.f32 %v2186_v39, %v2156_v55  ;;  %v6042_v63 = vmul.f32 %v728_v17, %v5957_v44  ;;  %v1206_v38 = vrot.slane %v5960_v40, %v5622_v15  ;;  %v8311_v55 = vld [vmem:[#allocation68_spill] sm:$0xff] }
 0x1fd   : > { %v893_v6 = vadd.f32 %v890_v36, %v857_v62  ;;  %v8309_v36 = vld [vmem:[#allocation17_spill] sm:$0xff]  ;;  %v999_v56 = vmul.f32 %v8310_v46, %v978_v16  ;;  %v6050_v22 = vmul.f32 %v5955_v1, %v5957_v44  ;;  %v1030_v39 = vmul.f32 %v8311_v55, %v1014_v42  ;;  %v8313_v1 = vld [vmem:[#allocation70_spill] sm:$0xff] }
 0x1fe   : > { %v963_v4 = vmul.f32 %v957_v34, %v8309_v36  ;;  %v2222_v19 = vadd.f32 %v2219_v32, %v2189_v30  ;;  %v1097_v61 = vrot.slane %v6037_v18, %v8293_v33  ;;  %v6056_v17 = vmul.f32 %v818_v2, %v5957_v44 }
 0x1ff   : > { %v914_v62 = vadd.f32 %v911_v31, %v893_v6  ;;  %v1051_v31 = vmul.f32 %v1045_v3, %v8312_v13  ;;  %v1212_v34 = vmul.f32 %v1206_v38, %v8296_v45  ;;  %v1224_v16 = vrot.slane %v5963_v24, %v5622_v15 }
 0x200   : > { %v2255_v6 = vadd.f32 %v2252_v7, %v2222_v19  ;;  %v1082_v51 = vmul.f32 %v8313_v1, %v1066_v10  ;;  %v1133_v30 = vrot.slane %v6042_v63, %v8293_v33  ;;  %v1242_v32 = vrot.slane %v5968_v50, %v5622_v15 }
 0x201   : > { %v945_v58 = vadd.f32 %v942_v0, %v914_v62  ;;  %v1154_v44 = vrot.slane %v6050_v22, %v8293_v33  ;;  %v1230_v2 = vmul.f32 %v1224_v16, %v8298_v48  ;;  %v1260_v45 = vrot.slane %v5987_v28, %v5622_v15  ;;  %v8314_v0 = vld [vmem:[#allocation40_spill] sm:$0xff]  ;;  %v8315_v16 = vld [vmem:[#allocation11_spill] sm:$0xff] }
 0x202   : > { %v2261_v3 = vrot.slane %v2255_v6, 4  ;;  %v1118_v7 = vmul.f32 %v8314_v0, %v1097_v61  ;;  %v1185_v10 = vrot.slane %v6056_v17, %v8293_v33  ;;  %v1293_v38 = vrot.slane %v5971_v11, %v5622_v15 }
 0x203   : > { %v966_v42 = vadd.f32 %v963_v4, %v945_v58  ;;  %v1233_v19 = vadd.f32 %v1230_v2, %v1212_v34  ;;  %v1248_v58 = vmul.f32 %v1242_v32, %v8299_v35  ;;  %v1311_v4 = vrot.slane %v5982_v14, %v5622_v15  ;;  %v8317_v32 = vld [vmem:[#allocation41_spill] sm:$0xff] }
 0x204   : > { %2267 = vst [vmem:[#allocation3] sm:$0xf0] %v2261_v3  ;;  %v1139_v5 = vmul.f32 %v1133_v30, %v8315_v16  ;;  %v1329_v6 = vrot.slane %v5997_v21, %v5622_v15  ;;  %v1347_v61 = vrot.slane %v6000_v49, %v5622_v15  ;;  %v1380_v41 = vrot.slane %v6004_v43, %v5622_v15 }
 0x205   : > { %v1002_v62 = vadd.f32 %v999_v56, %v966_v42  ;;  %v8316_v56 = vld [vmem:[#allocation88_spill] sm:$0xff]  ;;  %v1251_v42 = vadd.f32 %v1248_v58, %v1233_v19  ;;  %v1281_v2 = vmul.f32 %v8317_v32, %v1260_v45  ;;  %v1191_v26 = vmul.f32 %v1185_v10, %v8318_v60 }
 0x206   : > { %v1170_v34 = vmul.f32 %v8316_v56, %v1154_v44  ;;  %v1299_v3 = vmul.f32 %v1293_v38, %v8305_v23  ;;  %v1398_v30 = vrot.slane %v6006_v27, %v5622_v15  ;;  %v1416_v54 = vrot.slane %v6012_v57, %v5622_v15  ;;  %v8319_v45 = vld [vmem:[#allocation80_spill] sm:$0xff] }
 0x207   : > { %v1033_v29 = vadd.f32 %v1030_v39, %v1002_v62  ;;  %v1284_v59 = vadd.f32 %v1281_v2, %v1251_v42  ;;  %v1317_v8 = vmul.f32 %v1311_v4, %v8308_v12  ;;  %v1434_v39 = vrot.slane %v6023_v25, %v5622_v15 }
 0x208   : > { %v1335_v44 = vmul.f32 %v1329_v6, %v8309_v36  ;;  %v1368_v62 = vmul.f32 %v8319_v45, %v1347_v61  ;;  %v1386_v10 = vmul.f32 %v1380_v41, %v8311_v55  ;;  %v1467_v38 = vrot.slane %v6037_v18, %v5622_v15 }
 0x209   : > { %v1054_v53 = vadd.f32 %v1051_v31, %v1033_v29  ;;  %v1302_v58 = vadd.f32 %v1299_v3, %v1284_v59  ;;  %v1485_v29 = vrot.slane %v6042_v63, %v5622_v15  ;;  %v1566_v31 = vrot.slane %v5960_v40, %v5639_v47 }
 0x20a   : > { %v1404_v4 = vmul.f32 %v1398_v30, %v8312_v13  ;;  %v1422_v42 = vmul.f32 %v1416_v54, %v8313_v1  ;;  %v1584_v6 = vrot.slane %v5963_v24, %v5639_v47  ;;  %v1602_v41 = vrot.slane %v5968_v50, %v5639_v47 }
 0x20b   : > { %v1085_v19 = vadd.f32 %v1082_v51, %v1054_v53  ;;  %v1320_v2 = vadd.f32 %v1317_v8, %v1302_v58  ;;  %v8320_v53 = vld [vmem:[#allocation74_spill] sm:$0xff]  ;;  %v1572_v51 = vmul.f32 %v1566_v31, %v8298_v48  ;;  %v1473_v3 = vmul.f32 %v1467_v38, %v8315_v16 }
 0x20c   : > { %v1455_v59 = vmul.f32 %v8320_v53, %v1434_v39  ;;  %v1503_v33 = vrot.slane %v6050_v22, %v5622_v15  ;;  %v1590_v30 = vmul.f32 %v1584_v6, %v8299_v35  ;;  %v1620_v54 = vrot.slane %v5987_v28, %v5639_v47 }
 0x20d   : > { %v1121_v61 = vadd.f32 %v1118_v7, %v1085_v19  ;;  %v1338_v52 = vadd.f32 %v1335_v44, %v1320_v2  ;;  %v1491_v0 = vmul.f32 %v1485_v29, %v8316_v56  ;;  %v1521_v8 = vrot.slane %v6056_v17, %v5622_v15  ;;  %v8321_v29 = vld [vmem:[#allocation47_spill] sm:$0xff] }
 0x20e   : > { %v1593_v7 = vadd.f32 %v1590_v30, %v1572_v51  ;;  %v1608_v48 = vmul.f32 %v1602_v41, %v8317_v32  ;;  %v1653_v39 = vrot.slane %v5971_v11, %v5639_v47  ;;  %v1671_v38 = vrot.slane %v5982_v14, %v5639_v47 }
 0x20f   : > { %v1142_v37 = vadd.f32 %v1139_v5, %v1121_v61  ;;  %v1371_v19 = vadd.f32 %v1368_v62, %v1338_v52  ;;  %v1689_v5 = vrot.slane %v5997_v21, %v5639_v47  ;;  %v1707_v44 = vrot.slane %v6000_v49, %v5639_v47 }
 0x210   : > { %v1611_v58 = vadd.f32 %v1608_v48, %v1593_v7  ;;  %v1641_v31 = vmul.f32 %v8321_v29, %v1620_v54  ;;  %v1740_v32 = vrot.slane %v6004_v43, %v5639_v47  ;;  %v1758_v6 = vrot.slane %v6006_v27, %v5639_v47 }
 0x211   : > { %v1173_v35 = vadd.f32 %v1170_v34, %v1142_v37  ;;  %v1389_v61 = vadd.f32 %v1386_v10, %v1371_v19  ;;  %v1509_v37 = vmul.f32 %v1503_v33, %v8318_v60  ;;  %v1776_v52 = vrot.slane %v6012_v57, %v5639_v47  ;;  %v8322_v34 = vld [vmem:[#allocation46_spill] sm:$0xff] }
 0x212   : > { %v1542_v62 = vmul.f32 %v8322_v34, %v1521_v8  ;;  %v1644_v2 = vadd.f32 %v1641_v31, %v1611_v58  ;;  %v1659_v51 = vmul.f32 %v1653_v39, %v8308_v12  ;;  %v1794_v30 = vrot.slane %v6023_v25, %v5639_v47 }
 0x213   : > { %v1194_v41 = vadd.f32 %v1191_v26, %v1173_v35  ;;  %v1407_v54 = vadd.f32 %v1404_v4, %v1389_v61  ;;  %v1677_v7 = vmul.f32 %v1671_v38, %v8309_v36  ;;  %v1695_v48 = vmul.f32 %v1689_v5, %v8319_v45  ;;  %v8323_v26 = vld [vmem:[#allocation36_spill] sm:$0xff] }
 0x214   : > { %v1728_v10 = vmul.f32 %v8323_v26, %v1707_v44  ;;  %v1662_v33 = vadd.f32 %v1659_v51, %v1644_v2  ;;  %v1746_v35 = vmul.f32 %v1740_v32, %v8312_v13  ;;  %v1764_v19 = vmul.f32 %v1758_v6, %v8313_v1  ;;  %v8324_v44 = vld [vmem:[#allocation29_spill] sm:$0xff] }
 0x215   : > { %1197 = vst [vmem:[#allocation3 + $0x30] sm:$0xf] %v1194_v41  ;;  %v1827_v8 = vrot.slane %v6037_v18, %v5639_v47  ;;  %v1425_v39 = vadd.f32 %v1422_v42, %v1407_v54  ;;  %v1782_v58 = vmul.f32 %v1776_v52, %v8320_v53  ;;  %v1917_v4 = vrot.slane %v5960_v40, %v8280_v9 }
 0x216   : > { %v1935_v38 = vrot.slane %v5963_v24, %v8280_v9  ;;  %v1680_v5 = vadd.f32 %v1677_v7, %v1662_v33  ;;  %v1815_v29 = vmul.f32 %v8324_v44, %v1794_v30  ;;  %v1845_v31 = vrot.slane %v6042_v63, %v5639_v47 }
 0x217   : > { %v1953_v32 = vrot.slane %v5968_v50, %v8280_v9  ;;  %v1458_v6 = vadd.f32 %v1455_v59, %v1425_v39  ;;  %v1923_v42 = vmul.f32 %v1917_v4, %v8301_v20  ;;  %v1971_v40 = vrot.slane %v5987_v28, %v8280_v9 }
 0x218   : > { %v1941_v41 = vmul.f32 %v1935_v38, %v8305_v23  ;;  %v1698_v61 = vadd.f32 %v1695_v48, %v1680_v5  ;;  %v1833_v24 = vmul.f32 %v1827_v8, %v8316_v56  ;;  %v1863_v52 = vrot.slane %v6050_v22, %v5639_v47 }
 0x219   : > { %v1881_v2 = vrot.slane %v6056_v17, %v5639_v47  ;;  %v1476_v51 = vadd.f32 %v1473_v3, %v1458_v6  ;;  %v1959_v50 = vmul.f32 %v1953_v32, %v8308_v12  ;;  %v1989_v20 = vrot.slane %v5971_v11, %v8280_v9 }
 0x21a   : > { %v1944_v30 = vadd.f32 %v1941_v41, %v1923_v42  ;;  %v1731_v59 = vadd.f32 %v1728_v10, %v1698_v61  ;;  %v1851_v54 = vmul.f32 %v1845_v31, %v8318_v60  ;;  %v1977_v28 = vmul.f32 %v1971_v40, %v8309_v36  ;;  %v8325_v31 = vld [vmem:[#allocation50_spill] sm:$0xff]  ;;  %v8326_v42 = vld [vmem:[#allocation40_spill] sm:$0xff] }
 0x21b   : > { %v2007_v7 = vrot.slane %v5982_v14, %v8280_v9  ;;  %v1494_v48 = vadd.f32 %v1491_v0, %v1476_v51  ;;  %v2025_v8 = vrot.slane %v5997_v21, %v8280_v9  ;;  %v2043_v3 = vrot.slane %v6000_v49, %v8280_v9  ;;  %v8327_v51 = vld [vmem:[#allocation92_spill] sm:$0xff] }
 0x21c   : > { %v1962_v33 = vadd.f32 %v1959_v50, %v1944_v30  ;;  %v1749_v39 = vadd.f32 %v1746_v35, %v1731_v59  ;;  %v2061_v11 = vrot.slane %v6004_v43, %v8280_v9  ;;  %v2079_v10 = vrot.slane %v6006_v27, %v8280_v9 }
 0x21d   : > { %v2097_v4 = vrot.slane %v6012_v57, %v8280_v9  ;;  %v1512_v38 = vadd.f32 %v1509_v37, %v1494_v48  ;;  %v1869_v14 = vmul.f32 %v1863_v52, %v8322_v34  ;;  %v1995_v5 = vmul.f32 %v1989_v20, %v8310_v46  ;;  %v8362_v46 = vld [vmem:[#allocation78_spill] sm:$0xff] }
 0x21e   : > { %v1980_v0 = vadd.f32 %v1977_v28, %v1962_v33  ;;  %v1767_v21 = vadd.f32 %v1764_v19, %v1749_v39  ;;  %v1902_v32 = vmul.f32 %v8325_v31, %v1881_v2  ;;  %v2013_v49 = vmul.f32 %v2007_v7, %v8311_v55  ;;  %v8328_v33 = vld [vmem:[#allocation103_spill] sm:$0xff]  ;;  %v8329_v39 = vld [vmem:[#allocation57_spill] sm:$0xff] }
 0x21f   : > { %v2115_v43 = vrot.slane %v6023_v25, %v8280_v9  ;;  %v1545_v35 = vadd.f32 %v1542_v62, %v1512_v38  ;;  %v2031_v27 = vmul.f32 %v2025_v8, %v8312_v13  ;;  %v2049_v57 = vmul.f32 %v2043_v3, %v8313_v1 }
 0x220   : > { %v1998_v6 = vadd.f32 %v1995_v5, %v1980_v0  ;;  %v1785_v37 = vadd.f32 %v1782_v58, %v1767_v21  ;;  %v2067_v41 = vmul.f32 %v2061_v11, %v8326_v42  ;;  %v2085_v40 = vmul.f32 %v2079_v10, %v8315_v16 }
 0x221   : > { %v2103_v19 = vmul.f32 %v2097_v4, %v8316_v56  ;;  %v1551_v61 = vrot.slane %v1545_v35, 4  ;;  %v2133_v2 = vrot.slane %v6037_v18, %v8280_v9  ;;  %v4416_v25 = vadd.f32 1.0, %v8327_v51 }
 0x222   : > { %v2016_v52 = vadd.f32 %v2013_v49, %v1998_v6  ;;  %v1818_v62 = vadd.f32 %v1815_v29, %v1785_v37  ;;  %v2121_v30 = vmul.f32 %v2115_v43, %v8318_v60  ;;  %v2166_v50 = vrot.slane %v6042_v63, %v8280_v9 }
 0x223   : > { %v2282_v58 = vand.u32 2147483647, %v8327_v51  ;;  %1557 = vst [vmem:[#allocation3 + $0x30] sm:$0xf0] %v1551_v61  ;;  %v2273_v59 = vand.u32 2147483647, %v4416_v25  ;;  %v2154_v11 = vmul.f32 %v8329_v39, %v2133_v2 }
 0x224   : > { %v2034_v20 = vadd.f32 %v2031_v27, %v2016_v52  ;;  %v4419_v28 = vadd.f32 -1.0, %v8327_v51  ;;  %v4422_v7 = vadd.f32 -2.0, %v8327_v51  ;;  %v1836_v48 = vadd.f32 %v1833_v24, %v1818_v62 }
 0x225   : > { %v2285_v18 = vsub.f32 1.0, %v2282_v58  ;;  %v4417_v8 = vadd.f32 1.0, %v8328_v33  ;;  %v2283_v29 = vand.u32 2147483647, %v8328_v33  ;;  %v2276_v38 = vsub.f32 1.0, %v2273_v59 }
 0x226   : > { %v2052_v3 = vadd.f32 %v2049_v57, %v2034_v20  ;;  %v2294_v63 = vand.u32 2147483647, %v4419_v28  ;;  %v2306_v10 = vand.u32 2147483647, %v4422_v7  ;;  %v1854_v4 = vadd.f32 %v1851_v54, %v1836_v48  ;;  %v6236_v7 = vpop.permute.xlu1 %3283  ;;  %v6238_v48 = vpop.permute.xlu0 %3285 }
 0x227   : > { %v2274_v0 = vand.u32 2147483647, %v4417_v8  ;;  %v2286_v5 = vsub.f32 1.0, %v2283_v29  ;;  %v6211_v49 = vmax.f32 %v2285_v18, 0.0  ;;  %v4420_v37 = vadd.f32 -1.0, %v8328_v33  ;;  %8336 = vst [vmem:[#allocation35_spill] sm:$0xff] %v6236_v7 }
 0x228   : > { %v2070_v21 = vadd.f32 %v2067_v41, %v2052_v3  ;;  %v2297_v43 = vsub.f32 1.0, %v2294_v63  ;;  %v2309_v35 = vsub.f32 1.0, %v2306_v10  ;;  %v1872_v24 = vadd.f32 %v1869_v14, %v1854_v4  ;;  %8337 = vst [vmem:[#allocation79_spill] sm:$0xff] %v6238_v48  ;;  %v8342_v8 = vld [vmem:[#allocation65_spill] sm:$0xff] }
 0x229   : > { %8330 = vst [vmem:[#allocation98_spill] sm:$0xff] %v6211_v49  ;;  %v2277_v6 = vsub.f32 1.0, %v2274_v0  ;;  %v6213_v27 = vmax.f32 %v2286_v5, 0.0  ;;  %v4423_v54 = vadd.f32 -2.0, %v8328_v33  ;;  %v6221_v51 = vmax.f32 %v2276_v38, 0.0  ;;  %v8341_v33 = vld [vmem:[#allocation66_spill] sm:$0xff] }
 0x22a   : > { %v2088_v57 = vadd.f32 %v2085_v40, %v2070_v21  ;;  %v6216_v61 = vmax.f32 %v2297_v43, 0.0  ;;  %v6218_v52 = vmax.f32 %v2309_v35, 0.0  ;;  %v1905_v2 = vadd.f32 %v1902_v32, %v1872_v24  ;;  %v8346_v4 = vld [vmem:[#allocation53_spill] sm:$0xff]  ;;  %v8347_v0 = vld [vmem:[#allocation87_spill] sm:$0xff]  ;;  %v8348_v43 = vld [vmem:[#allocation54_spill] sm:$0xff] }
 0x22b   : > { %8333 = vst [vmem:[#allocation10_spill] sm:$0xff] %v6221_v51  ;;  %v2280_v41 = vmax.f32 %v2277_v6, 0.0  ;;  %v2295_v25 = vand.u32 2147483647, %v4420_v37  ;;  %v2307_v20 = vand.u32 2147483647, %v4423_v54  ;;  %v2199_v40 = vrot.slane %v6050_v22, %v8280_v9 }
 0x22c   : > { %8331 = vst [vmem:[#allocation104_spill] sm:$0xff] %v6216_v61  ;;  %8332 = vst [vmem:[#allocation102_spill] sm:$0xff] %v6218_v52  ;;  %v2106_v62 = vadd.f32 %v2103_v19, %v2088_v57  ;;  %v6224_v14 = vrot.slane %v6216_v61, 1  ;;  %v6227_v58 = vrot.slane %v6218_v52, 1  ;;  %v2232_v59 = vrot.slane %v6056_v17, %v8280_v9  ;;  %v8349_v24 = vld [vmem:[#allocation58_spill] sm:$0xff]  ;;  %v8374_v61 = vld [vmem:[#allocation32_spill] sm:$0xff] }
 0x22d   : > { %1908 = vst [vmem:[#allocation3 + $0x48] sm:$0xf] %v1905_v2  ;;  %v2298_v32 = vsub.f32 1.0, %v2295_v25  ;;  %v6234_v28 = vrot.slane %v6213_v27, 1  ;;  %v6255_v29 = vsel %vm2995_vm12, %v8342_v8, %v8341_v33  ;;  %v6266_v63 = vrot.slane %v2280_v41, 1 }
 0x22e   : > { %8334 = vst [vmem:[#allocation33_spill] sm:$0xff] %v6224_v14  ;;  %8335 = vst [vmem:[#allocation34_spill] sm:$0xff] %v6227_v58  ;;  %v2124_v19 = vadd.f32 %v2121_v30, %v2106_v62  ;;  %v6242_v18 = vmul.f32 %v6224_v14, %v6221_v51  ;;  %v6246_v22 = vmul.f32 %v6227_v58, %v6221_v51  ;;  %v2310_v21 = vsub.f32 1.0, %v2307_v20 }
 0x22f   : > { %v6250_v17 = vmul.f32 %v6224_v14, %v6211_v49  ;;  %8343 = vst [vmem:[#allocation72_spill] sm:$0xff] %v6255_v29  ;;  %v6260_v30 = vsel %vm3289_vm4, %v6236_v7, %v6238_v48  ;;  %v6264_v3 = vmul.f32 %v6227_v58, %v6211_v49  ;;  %v2187_v38 = vmul.f32 %v8346_v4, %v2166_v50  ;;  %v8371_v58 = vld [vmem:[#allocation90_spill] sm:$0xff] }
 0x230   : > { %8338 = vst [vmem:[#allocation100_spill] sm:$0xff] %v6242_v18  ;;  %8339 = vst [vmem:[#allocation20_spill] sm:$0xff] %v6246_v22  ;;  %v2157_v10 = vadd.f32 %v2154_v11, %v2124_v19  ;;  %v2390_v5 = vrot.slane %v6242_v18, %v8347_v0  ;;  %v2220_v35 = vmul.f32 %v8348_v43, %v2199_v40  ;;  %v6275_v57 = vmax.f32 %v2298_v32, 0.0  ;;  %v8353_v32 = vld [vmem:[#allocation19_spill] sm:$0xff] }
 0x231   : > { %8340 = vst [vmem:[#allocation101_spill] sm:$0xff] %v6250_v17  ;;  %8344 = vst [vmem:[#allocation17_spill] sm:$0xff] %v6260_v30  ;;  %v2253_v6 = vmul.f32 %v8349_v24, %v2232_v59  ;;  %v2420_v37 = vrot.slane %v6246_v22, %v8347_v0  ;;  %v2483_v2 = vrot.slane %v6250_v17, %v8347_v0 }
 0x232   : > { %8345 = vst [vmem:[#allocation41_spill] sm:$0xff] %v6264_v3  ;;  %v2190_v54 = vadd.f32 %v2187_v38, %v2157_v10  ;;  %v2504_v50 = vrot.slane %v6264_v3, %v8347_v0  ;;  %v6282_v11 = vmul.f32 %v6234_v28, %v2280_v41  ;;  %v2744_v25 = vrot.slane %v6242_v18, %v5622_v15  ;;  %v8356_v38 = vld [vmem:[#allocation85_spill] sm:$0xff] }
 0x233   : > { %v2762_v62 = vrot.slane %v6246_v22, %v5622_v15  ;;  %v6289_v20 = vmul.f32 %v6266_v63, %v2280_v41  ;;  %v6293_v40 = vmul.f32 %v6234_v28, %v6213_v27  ;;  %v6296_v19 = vmul.f32 %v2390_v5, %v8353_v32 }
 0x234   : > { %8350 = vst [vmem:[#allocation80_spill] sm:$0xff] %v6282_v11  ;;  %v2223_v59 = vadd.f32 %v2220_v35, %v2190_v54  ;;  %v2816_v8 = vrot.slane %v6250_v17, %v5622_v15  ;;  %v6300_v10 = vmax.f32 %v2310_v21, 0.0  ;;  %v6303_v48 = vmul.f32 %v2420_v37, %v8356_v38  ;;  %v8360_v54 = vld [vmem:[#allocation69_spill] sm:$0xff] }
 0x235   : > { %8351 = vst [vmem:[#allocation74_spill] sm:$0xff] %v6289_v20  ;;  %8352 = vst [vmem:[#allocation47_spill] sm:$0xff] %v6293_v40  ;;  %v2379_v29 = vrot.slane %v6275_v57, 1  ;;  %v6308_v39 = vmul.f32 %v6266_v63, %v6213_v27  ;;  %v6312_v35 = vmul.f32 %v6266_v63, %v6275_v57  ;;  %v6315_v42 = vmul.f32 %v2483_v2, %v8360_v54 }
 0x236   : > { %8354 = vst [vmem:[#allocation36_spill] sm:$0xff] %v6296_v19  ;;  %8355 = vst [vmem:[#allocation92_spill] sm:$0xff] %v6300_v10  ;;  %v2256_v5 = vadd.f32 %v2253_v6, %v2223_v59  ;;  %v6318_v21 = vmul.f32 %v2504_v50, %v8362_v46  ;;  %v6321_v37 = vrot.slane %v6300_v10, 1  ;;  %v2834_v7 = vrot.slane %v6264_v3, %v5622_v15 }
 0x237   : > { %8357 = vst [vmem:[#allocation103_spill] sm:$0xff] %v6303_v48  ;;  %8358 = vst [vmem:[#allocation65_spill] sm:$0xff] %v6308_v39  ;;  %v2334_v17 = vrot.slane %v6289_v20, %v8347_v0  ;;  %v6327_v22 = vmul.f32 %v2379_v29, %v2280_v41  ;;  %v6330_v18 = vmul.f32 %v2379_v29, %v6213_v27 }
 0x238   : > { %8359 = vst [vmem:[#allocation85_spill] sm:$0xff] %v6312_v35  ;;  %8361 = vst [vmem:[#allocation105_spill] sm:$0xff] %v6315_v42  ;;  %v2262_v6 = vrot.slane %v2256_v5, 4  ;;  %v6333_v2 = vmul.f32 %v6321_v37, %v2280_v41  ;;  %v6337_v50 = vmul.f32 %v6321_v37, %v6213_v27  ;;  %v6340_v59 = vmul.f32 %v2379_v29, %v6275_v57 }
 0x239   : > { %8363 = vst [vmem:[#allocation106_spill] sm:$0xff] %v6318_v21  ;;  %8364 = vst [vmem:[#allocation107_spill] sm:$0xff] %v6321_v37  ;;  %v2394_v3 = vrot.slane %v6327_v22, %v8347_v0  ;;  %v2445_v21 = vrot.slane %v6308_v39, %v8347_v0  ;;  %v2529_v42 = vrot.slane %v6312_v35, %v8347_v0 }
 0x23a   : > { %8365 = vst [vmem:[#allocation108_spill] sm:$0xff] %v6327_v22  ;;  %8366 = vst [vmem:[#allocation109_spill] sm:$0xff] %v6330_v18  ;;  %v2712_v41 = vrot.slane %v6289_v20, %v5622_v15  ;;  %v2424_v27 = vrot.slane %v6333_v2, %v8347_v0  ;;  %v2487_v5 = vrot.slane %v6330_v18, %v8347_v0 }
 0x23b   : > { %8367 = vst [vmem:[#allocation110_spill] sm:$0xff] %v6333_v2  ;;  %8368 = vst [vmem:[#allocation111_spill] sm:$0xff] %v6337_v50  ;;  %v2508_v32 = vrot.slane %v6337_v50, %v8347_v0  ;;  %v2571_v48 = vrot.slane %v6340_v59, %v8347_v0  ;;  %v6359_v52 = vmul.f32 %v2744_v25, %v8356_v38 }
 0x23c   : > { %8369 = vst [vmem:[#allocation112_spill] sm:$0xff] %v6340_v59  ;;  %2268 = vst [vmem:[#allocation3 + $0x48] sm:$0xf0] %v2262_v6  ;;  %v6362_v19 = vmul.f32 %v2762_v62, %v8371_v58  ;;  %v2748_v6 = vrot.slane %v6327_v22, %v5622_v15  ;;  %v2766_v54 = vrot.slane %v6333_v2, %v5622_v15 }
 0x23d   : > { %8370 = vst [vmem:[#allocation113_spill] sm:$0xff] %v6359_v52  ;;  %v6369_v14 = vmul.f32 %v2816_v8, %v8362_v46  ;;  %v6372_v49 = vmul.f32 %v2834_v7, %v8374_v61  ;;  %v2340_v51 = vmul.f32 %v2334_v17, %v8305_v23  ;;  %v2784_v25 = vrot.slane %v6308_v39, %v5622_v15 }
 0x23e   : > { %8372 = vst [vmem:[#allocation90_spill] sm:$0xff] %v6362_v19  ;;  %v2400_v58 = vmul.f32 %v2394_v3, %v8309_v36  ;;  %v2451_v62 = vmul.f32 %v2445_v21, %v8311_v55  ;;  %v6380_v38 = vmul.f32 %v2529_v42, %v8315_v16  ;;  %v2718_v19 = vmul.f32 %v2712_v41, %v8308_v12  ;;  %v6397_v41 = vpop.f32.mrf.mxu1 }
 0x23f   : > { %8373 = vst [vmem:[#allocation114_spill] sm:$0xff] %v6369_v14  ;;  %8375 = vst [vmem:[#allocation115_spill] sm:$0xff] %v6372_v49  ;;  %v2430_v8 = vmul.f32 %v2424_v27, %v8319_v45  ;;  %v2493_v14 = vmul.f32 %v2487_v5, %v8313_v1  ;;  %v6386_v7 = vmul.f32 %v2508_v32, %v8320_v53 }
 0x240   : > { %v6389_v23 = vmul.f32 %v2571_v48, %v8318_v60  ;;  %v2754_v17 = vmul.f32 %v2748_v6, %v8319_v45  ;;  %v2772_v3 = vmul.f32 %v2766_v54, %v8323_v26  ;;  %v2820_v42 = vrot.slane %v6330_v18, %v5622_v15  ;;  %8376 = vst [vmem:[#allocation116_spill] sm:$0xff] %v6397_v41 }
 0x241   : > { %v2364_v21 = vrot.slane %v6282_v11, %v8347_v0  ;;  %v2790_v27 = vmul.f32 %v2784_v25, %v8312_v13  ;;  %v2838_v32 = vrot.slane %v6337_v50, %v5622_v15  ;;  %v2856_v48 = vrot.slane %v6312_v35, %v5622_v15  ;;  %v4471_v25 = vpop.f32.mrf.mxu1 }
 0x242   : > { %v6406_v45 = vmul.f32 %v6234_v28, %v6275_v57  ;;  %v6411_v54 = vmul.f32 %v6321_v37, %v6275_v57  ;;  %v6415_v5 = vmul.f32 %v6266_v63, %v6300_v10  ;;  %v6419_v6 = vmul.f32 %v6234_v28, %v6300_v10 }
 0x243   : > { %v2370_v26 = vmul.f32 %v2364_v21, %v8308_v12  ;;  %v2892_v41 = vrot.slane %v6340_v59, %v5622_v15  ;;  %v3378_v61 = vrot.slane %v6289_v20, %v8280_v9  ;;  %v6426_v12 = vmul.f32 %v2379_v29, %v6300_v10 }
 0x244   : > { %8377 = vst [vmem:[#allocation117_spill] sm:$0xff] %v6406_v45  ;;  %8378 = vst [vmem:[#allocation118_spill] sm:$0xff] %v6411_v54  ;;  %v2730_v57 = vrot.slane %v6282_v11, %v5622_v15  ;;  %v2826_v63 = vmul.f32 %v2820_v42, %v8320_v53  ;;  %v2466_v28 = vrot.slane %v6293_v40, %v8347_v0 }
 0x245   : > { %8379 = vst [vmem:[#allocation119_spill] sm:$0xff] %v6415_v5  ;;  %8380 = vst [vmem:[#allocation120_spill] sm:$0xff] %v6419_v6  ;;  %v2373_v21 = vadd.f32 %v2370_v26, %v2340_v51  ;;  %v2550_v25 = vrot.slane %v6406_v45, %v8347_v0  ;;  %v2844_v37 = vmul.f32 %v2838_v32, %v8324_v44 }
 0x246   : > { %8381 = vst [vmem:[#allocation121_spill] sm:$0xff] %v6426_v12  ;;  %v2592_v20 = vrot.slane %v6411_v54, %v8347_v0  ;;  %v2613_v29 = vrot.slane %v6415_v5, %v8347_v0  ;;  %v2736_v10 = vmul.f32 %v2730_v57, %v8309_v36  ;;  %v6442_v49 = vmul.f32 %v2856_v48, %v8316_v56 }
 0x247   : > { %v3414_v51 = vrot.slane %v6327_v22, %v8280_v9  ;;  %v2403_v42 = vadd.f32 %v2400_v58, %v2373_v21  ;;  %v2634_v26 = vrot.slane %v6419_v6, %v8347_v0  ;;  %v6449_v32 = vmul.f32 %v2892_v41, %v8322_v34 }
 0x248   : > { %v2655_v44 = vrot.slane %v6426_v12, %v8347_v0  ;;  %v2739_v52 = vadd.f32 %v2736_v10, %v2718_v19  ;;  %v2802_v36 = vrot.slane %v6293_v40, %v5622_v15  ;;  %v2472_v48 = vmul.f32 %v2466_v28, %v8312_v13 }
 0x249   : > { %v2433_v57 = vadd.f32 %v2430_v8, %v2403_v42  ;;  %v2556_v46 = vmul.f32 %v2550_v25, %v8316_v56  ;;  %v2874_v58 = vrot.slane %v6406_v45, %v5622_v15  ;;  %v6460_v21 = vmul.f32 %v2592_v20, %v8322_v34 }
 0x24a   : > { %v6463_v41 = vmul.f32 %v2613_v29, %v8346_v4  ;;  %v2757_v22 = vadd.f32 %v2754_v17, %v2739_v52  ;;  %v2910_v19 = vrot.slane %v6411_v54, %v5622_v15  ;;  %v6468_v8 = vmul.f32 %v2634_v26, %v8348_v43 }
 0x24b   : > { %v2454_v10 = vadd.f32 %v2451_v62, %v2433_v57  ;;  %v2928_v28 = vrot.slane %v6415_v5, %v5622_v15  ;;  %v2946_v25 = vrot.slane %v6419_v6, %v5622_v15  ;;  %v6475_v20 = vmul.f32 %v2655_v44, %v8349_v24  ;;  %v545_v44 = vpop.f32.mrf.mxu0 }
 0x24c   : > { %v2775_v42 = vadd.f32 %v2772_v3, %v2757_v22  ;;  %v2808_v29 = vmul.f32 %v2802_v36, %v8313_v1  ;;  %v2964_v52 = vrot.slane %v6426_v12, %v5622_v15  ;;  %v2880_v62 = vmul.f32 %v2874_v58, %v8318_v60 }
 0x24d   : > { %v2475_v17 = vadd.f32 %v2472_v48, %v2454_v10  ;;  %v3384_v26 = vmul.f32 %v3378_v61, %v8311_v55  ;;  %v3396_v57 = vrot.slane %v6282_v11, %v8280_v9  ;;  %v2916_v33 = vmul.f32 %v2910_v19, %v8325_v31  ;;  %v8382_v10 = vld [vmem:[#allocation99_spill] sm:$0xff]  ;;  %v8445_v55 = vld [vmem:[#allocation56_spill] sm:$0xff] }
 0x24e   : > { %v2793_v0 = vadd.f32 %v2790_v27, %v2775_v42  ;;  %v3432_v22 = vrot.slane %v6333_v2, %v8280_v9  ;;  %v6490_v36 = vmul.f32 %v2928_v28, %v8348_v43  ;;  %v6493_v48 = vmul.f32 %v2946_v25, %v8349_v24  ;;  %v8451_v11 = vld [vmem:[#allocation95_spill] sm:$0xff] }
 0x24f   : > { %v2496_v3 = vadd.f32 %v2493_v14, %v2475_v17  ;;  %v3402_v61 = vmul.f32 %v3396_v57, %v8312_v13  ;;  %v6497_v27 = vmul.f32 %v2964_v52, %v8382_v10  ;;  %v3450_v19 = vrot.slane %v6308_v39, %v8280_v9 }
 0x250   : > { %v2811_v58 = vadd.f32 %v2808_v29, %v2793_v0  ;;  %v3468_v42 = vrot.slane %v6293_v40, %v8280_v9  ;;  %v3420_v28 = vmul.f32 %v3414_v51, %v8313_v1  ;;  %v3486_v25 = vrot.slane %v6330_v18, %v8280_v9  ;;  %v8444_v1 = vld [vmem:[#allocation96_spill] sm:$0xff] }
 0x251   : > { %v2517_v14 = vadd.f32 %v6386_v7, %v2496_v3  ;;  %v3405_v17 = vadd.f32 %v3402_v61, %v3384_v26  ;;  %v3438_v0 = vmul.f32 %v3432_v22, %v8320_v53  ;;  %v3504_v29 = vrot.slane %v6337_v50, %v8280_v9 }
 0x252   : > { %v2829_v57 = vadd.f32 %v2826_v63, %v2811_v58  ;;  %v3522_v52 = vrot.slane %v6312_v35, %v8280_v9  ;;  %v3540_v7 = vrot.slane %v6406_v45, %v8280_v9  ;;  %v3558_v51 = vrot.slane %v6340_v59, %v8280_v9 }
 0x253   : > { %v2538_v31 = vadd.f32 %v6380_v38, %v2517_v14  ;;  %v3423_v40 = vadd.f32 %v3420_v28, %v3405_v17  ;;  %v3456_v63 = vmul.f32 %v3450_v19, %v8315_v16  ;;  %v3474_v22 = vmul.f32 %v3468_v42, %v8316_v56  ;;  %v547_v17 = vpop.f32.mrf.mxu0  ;;  %v6524_v28 = vpop.permute.xlu1 %3316  ;;  %v8383_v42 = vld [vmem:[#allocation26_spill] sm:$0xff] }
 0x254   : > { %v2847_v26 = vadd.f32 %v2844_v37, %v2829_v57  ;;  %v3576_v3 = vrot.slane %v6411_v54, %v8280_v9  ;;  %v3492_v38 = vmul.f32 %v3486_v25, %v8318_v60  ;;  %v3594_v14 = vrot.slane %v6415_v5, %v8280_v9  ;;  %v8439_v56 = vld [vmem:[#allocation14_spill] sm:$0xff] }
 0x255   : > { %v2559_v61 = vadd.f32 %v2556_v46, %v2538_v31  ;;  %v3441_v58 = vadd.f32 %v3438_v0, %v3423_v40  ;;  %v3510_v57 = vmul.f32 %v3504_v29, %v8322_v34  ;;  %v3528_v19 = vmul.f32 %v3522_v52, %v8346_v4  ;;  %v8427_v4 = vld [vmem:[#allocation16_spill] sm:$0xff] }
 0x256   : > { %v2865_v37 = vadd.f32 %v6442_v49, %v2847_v26  ;;  %v546_v59 = vadd.f32 %v545_v44, %v8383_v42  ;;  %v3546_v31 = vmul.f32 %v3540_v7, %v8348_v43  ;;  %v3564_v40 = vmul.f32 %v3558_v51, %v8349_v24 }
 0x257   : > { %v2580_v54 = vadd.f32 %v6389_v23, %v2559_v61  ;;  %v3459_v46 = vadd.f32 %v3456_v63, %v3441_v58  ;;  %v3582_v0 = vmul.f32 %v3576_v3, %v8382_v10  ;;  %v548_v45 = vadd.f32 %v547_v17, %v8383_v42  ;;  %v6543_v58 = vpop.permute.xlu0 %3318 }
 0x258   : > { %v2883_v25 = vadd.f32 %v2880_v62, %v2865_v37  ;;  %v4404_v5 = vclamps-f32 %v546_v59, 1.0  ;;  %v6537_v52 = vmul.f32 %v3594_v14, %v6260_v30  ;;  %v3612_v23 = vrot.slane %v6419_v6, %v8280_v9  ;;  %8384 = vst [vmem:[#allocation122_spill] sm:$0xff] %v6543_v58  ;;  %v2994_v14 = vpop.permute.xlu1 %2993  ;;  %v8422_v30 = vld [vmem:[#allocation78_spill] sm:$0xff]  ;;  %v8433_v6 = vld [vmem:[#allocation103_spill] sm:$0xff] }
 0x259   : > { %v2601_v49 = vadd.f32 %v6460_v21, %v2580_v54  ;;  %v3477_v29 = vadd.f32 %v3474_v22, %v3459_v46  ;;  %v4405_v3 = vclamps-f32 %v548_v45, 1.0  ;;  %v6553_v45 = vpop.f32.mrf.mxu1 }
 0x25a   : > { %v2901_v44 = vadd.f32 %v6449_v32, %v2883_v25  ;;  %v4425_v7 = vadd.f32 1.0, %v4404_v5  ;;  %v3698_v26 = vand.u32 2147483647, %v4404_v5  ;;  %v4428_v51 = vadd.f32 -1.0, %v4404_v5  ;;  %8387 = vst [vmem:[#allocation125_spill] sm:$0xff] %v6553_v45 }
 0x25b   : > { %v2622_v62 = vadd.f32 %v6463_v41, %v2601_v49  ;;  %v3495_v63 = vadd.f32 %v3492_v38, %v3477_v29  ;;  %v4431_v59 = vadd.f32 -2.0, %v4404_v5  ;;  %v6548_v32 = vsel %vm3322_vm0, %v6524_v28, %v6543_v58 }
 0x25c   : > { %v2919_v61 = vadd.f32 %v2916_v33, %v2901_v44  ;;  %v3689_v54 = vand.u32 2147483647, %v4425_v7  ;;  %v3701_v21 = vsub.f32 1.0, %v3698_v26  ;;  %v3710_v22 = vand.u32 2147483647, %v4428_v51  ;;  %8385 = vst [vmem:[#allocation123_spill] sm:$0xff] %v6548_v32 }
 0x25d   : > { %v3513_v17 = vadd.f32 %v3510_v57, %v3495_v63  ;;  %v3722_v37 = vand.u32 2147483647, %v4431_v59  ;;  %v4426_v46 = vadd.f32 1.0, %v4405_v3  ;;  %v2643_v25 = vadd.f32 %v6468_v8, %v2622_v62  ;;  %v8388_v57 = vld [vmem:[#allocation66_spill] sm:$0xff]  ;;  %v4474_v63 = vpop.f32.mrf.mxu1 }
 0x25e   : > { %v2937_v41 = vadd.f32 %v6490_v36, %v2919_v61  ;;  %v3692_v38 = vsub.f32 1.0, %v3689_v54  ;;  %v6551_v5 = vmax.f32 %v3701_v21, 0.0  ;;  %v3713_v33 = vsub.f32 1.0, %v3710_v22  ;;  %v8394_v62 = vld [vmem:[#allocation10_spill] sm:$0xff] }
 0x25f   : > { %v3531_v49 = vadd.f32 %v3528_v19, %v3513_v17  ;;  %v3725_v29 = vsub.f32 1.0, %v3722_v37  ;;  %v6558_v44 = vsel %vm2995_vm12, %v8388_v57, %v2994_v14  ;;  %v3690_v51 = vand.u32 2147483647, %v4426_v46  ;;  %v8396_v14 = vld [vmem:[#allocation98_spill] sm:$0xff]  ;;  %v8397_v37 = vld [vmem:[#allocation104_spill] sm:$0xff]  ;;  %v8398_v46 = vld [vmem:[#allocation33_spill] sm:$0xff] }
 0x260   : > { %8386 = vst [vmem:[#allocation124_spill] sm:$0xff] %v6551_v5  ;;  %8389 = vst [vmem:[#allocation66_spill] sm:$0xff] %v6558_v44  ;;  %v6560_v7 = vmax.f32 %v3692_v38, 0.0  ;;  %v6562_v26 = vmax.f32 %v3713_v33, 0.0  ;;  %v6565_v36 = vrot.slane %v6551_v5, 1  ;;  %v8392_v61 = vrot.slane %v6426_v12, %v5639_v47 }
 0x261   : > { %v3549_v59 = vadd.f32 %v3546_v31, %v3531_v49  ;;  %v3618_v19 = vmul.f32 %v3612_v23, %v6548_v32  ;;  %v2318_v54 = vrot.slane %v8394_v62, 1  ;;  %v2955_v21 = vadd.f32 %v6493_v48, %v2937_v41  ;;  %vm8725_vm12 = vmmov %vm8724_vm9 }
 0x262   : > { %8390 = vst [vmem:[#allocation126_spill] sm:$0xff] %v6562_v26  ;;  %8391 = vst [vmem:[#allocation127_spill] sm:$0xff] %v6565_v36  ;;  %v6571_v8 = vmul.f32 %v6548_v32, %v8392_v61  ;;  %v6577_v22 = vrot.slane %v6562_v26, 1  ;;  %v2348_v17 = vrot.slane %v8396_v14, 1  ;;  %v6582_v31 = vmul.f32 %v8398_v46, %v8397_v37 }
 0x263   : > { %v6585_v38 = vadd.f32 %v6475_v20, %v2643_v25  ;;  %v3567_v33 = vadd.f32 %v3564_v40, %v3549_v59  ;;  %v3699_v49 = vand.u32 2147483647, %v4405_v3  ;;  %v4429_v57 = vadd.f32 -1.0, %v4405_v3 }
 0x264   : > { %8393 = vst [vmem:[#allocation128_spill] sm:$0xff] %v6571_v8  ;;  %8395 = vst [vmem:[#allocation10_spill] sm:$0xff] %v6577_v22  ;;  %v6587_v23 = vmax.f32 %v3725_v29, 0.0  ;;  %v3770_v48 = vmul.f32 %v6565_v36, %v6560_v7  ;;  %v3693_v41 = vsub.f32 1.0, %v3690_v51  ;;  %v4432_v63 = vadd.f32 -2.0, %v4405_v3  ;;  %v8406_v51 = vld [vmem:[#allocation87_spill] sm:$0xff] }
 0x265   : > { %8399 = vst [vmem:[#allocation98_spill] sm:$0xff] %v6582_v31  ;;  %8400 = vst [vmem:[#allocation104_spill] sm:$0xff] %v6585_v38  ;;  %v3585_v61 = vadd.f32 %v3582_v0, %v3567_v33  ;;  %v3800_v58 = vmul.f32 %v6577_v22, %v6560_v7  ;;  %v3711_v44 = vand.u32 2147483647, %v4429_v57  ;;  %v6594_v32 = vmul.f32 %v2318_v54, %v8394_v62 }
 0x266   : > { %8401 = vst [vmem:[#allocation33_spill] sm:$0xff] %v6587_v23  ;;  %v6597_v20 = vadd.f32 %v6497_v27, %v2955_v21  ;;  %v6601_v40 = vmul.f32 %v6565_v36, %v6551_v5  ;;  %v3723_v25 = vand.u32 2147483647, %v4432_v63  ;;  %v6604_v29 = vmul.f32 %v2348_v17, %v8394_v62  ;;  %v8410_v63 = vld [vmem:[#allocation22_spill] sm:$0xff]  ;;  %v8483_v36 = vld [vmem:[#allocation23_spill] sm:$0xff] }
 0x267   : > { %8402 = vst [vmem:[#allocation129_spill] sm:$0xff] %v6594_v32  ;;  %v3702_v3 = vsub.f32 1.0, %v3699_v49  ;;  %v3714_v0 = vsub.f32 1.0, %v3711_v44  ;;  %v2330_v59 = vrot.slane %v6594_v32, %v8406_v51  ;;  %v6609_v33 = vmul.f32 %v2318_v54, %v8396_v14 }
 0x268   : > { %8403 = vst [vmem:[#allocation130_spill] sm:$0xff] %v6597_v20  ;;  %8404 = vst [vmem:[#allocation131_spill] sm:$0xff] %v6601_v40  ;;  %v3776_v57 = vrot.slane %v3770_v48, %v8406_v51  ;;  %v3726_v27 = vsub.f32 1.0, %v3723_v25  ;;  %v2360_v21 = vrot.slane %v6604_v29, %v8406_v51  ;;  %v6615_v34 = vmul.f32 %v2348_v17, %v8396_v14  ;;  %v8412_v20 = vld [vmem:[#allocation71_spill] sm:$0xff] }
 0x269   : > { %8405 = vst [vmem:[#allocation132_spill] sm:$0xff] %v6604_v29  ;;  %8407 = vst [vmem:[#allocation133_spill] sm:$0xff] %v6609_v33  ;;  %v3603_v62 = vadd.f32 %v6537_v52, %v3585_v61  ;;  %v3806_v49 = vrot.slane %v3800_v58, %v8406_v51  ;;  %v6619_v44 = vmax.f32 %v3714_v0, 0.0  ;;  %v2339_v8 = vmul.f32 %v2330_v59, %v8410_v63  ;;  %v8417_v0 = vld [vmem:[#allocation69_spill] sm:$0xff] }
 0x26a   : > { %8408 = vst [vmem:[#allocation134_spill] sm:$0xff] %v6615_v34  ;;  %v6622_v12 = vmax.f32 %v3726_v27, 0.0  ;;  %v2369_v38 = vmul.f32 %v2360_v21, %v8412_v20  ;;  %v2441_v48 = vrot.slane %v6609_v33, %v8406_v51  ;;  %v2462_v25 = vrot.slane %v6615_v34, %v8406_v51 }
 0x26b   : > { %8409 = vst [vmem:[#allocation135_spill] sm:$0xff] %v6619_v44  ;;  %v6631_v14 = vmul.f32 %v6577_v22, %v6551_v5  ;;  %v6633_v52 = vmax.f32 %v3693_v41, 0.0  ;;  %v6636_v58 = vrot.slane %v6619_v44, 1  ;;  %v6639_v61 = vmul.f32 %v2318_v54, %v8397_v37  ;;  %v8488_v5 = vld [vmem:[#allocation18_spill] sm:$0xff] }
 0x26c   : > { %8411 = vst [vmem:[#allocation22_spill] sm:$0xff] %v6622_v12  ;;  %v6642_v59 = vmul.f32 %v3776_v57, %v8417_v0  ;;  %v6644_v27 = vmax.f32 %v3702_v3, 0.0  ;;  %v2372_v21 = vadd.f32 %v2369_v38, %v2339_v8  ;;  %v6647_v63 = vmul.f32 %v2348_v17, %v8397_v37  ;;  %v8425_v3 = vld [vmem:[#allocation36_spill] sm:$0xff]  ;;  %v8426_v8 = vld [vmem:[#allocation67_spill] sm:$0xff] }
 0x26d   : > { %8413 = vst [vmem:[#allocation71_spill] sm:$0xff] %v6631_v14  ;;  %8414 = vst [vmem:[#allocation136_spill] sm:$0xff] %v6633_v52  ;;  %v6649_v10 = vadd.f32 %v3618_v19, %v3603_v62  ;;  %v6652_v41 = vmul.f32 %v3806_v49, %v8422_v30  ;;  %v6655_v44 = vrot.slane %v6622_v12, 1  ;;  %v2567_v24 = vrot.slane %v6582_v31, %v8406_v51  ;;  %v8429_v49 = vld [vmem:[#allocation34_spill] sm:$0xff] }
 0x26e   : > { %8415 = vst [vmem:[#allocation137_spill] sm:$0xff] %v6636_v58  ;;  %8416 = vst [vmem:[#allocation138_spill] sm:$0xff] %v6639_v61  ;;  %v3801_v57 = vmul.f32 %v6636_v58, %v6633_v52  ;;  %v2402_v43 = vadd.f32 %v8425_v3, %v2372_v21  ;;  %v2450_v38 = vmul.f32 %v2441_v48, %v8426_v8 }
 0x26f   : > { %8418 = vst [vmem:[#allocation139_spill] sm:$0xff] %v6642_v59  ;;  %8419 = vst [vmem:[#allocation140_spill] sm:$0xff] %v6644_v27  ;;  %v2471_v45 = vmul.f32 %v2462_v25, %v8427_v4  ;;  %v6666_v19 = vmul.f32 %v6636_v58, %v6644_v27  ;;  %v2525_v62 = vrot.slane %v6639_v61, %v8406_v51 }
 0x270   : > { %8420 = vst [vmem:[#allocation141_spill] sm:$0xff] %v6647_v63  ;;  %8421 = vst [vmem:[#allocation142_spill] sm:$0xff] %v6649_v10  ;;  %v6672_v12 = vmul.f32 %v8429_v49, %v8397_v37  ;;  %v8431_v10 = vld [vmem:[#allocation102_spill] sm:$0xff]  ;;  %v2432_v21 = vadd.f32 %v8433_v6, %v2402_v43  ;;  %v2546_v48 = vrot.slane %v6647_v63, %v8406_v51 }
 0x271   : > { %8423 = vst [vmem:[#allocation78_spill] sm:$0xff] %v6652_v41  ;;  %8424 = vst [vmem:[#allocation143_spill] sm:$0xff] %v6655_v44  ;;  %v6675_v42 = vmul.f32 %v2318_v54, %v8431_v10  ;;  %v6681_v25 = vmul.f32 %v2348_v17, %v8431_v10  ;;  %v2708_v3 = vrot.slane %v6594_v32, %v5622_v15  ;;  %v8437_v54 = vld [vmem:[#allocation12_spill] sm:$0xff] }
 0x272   : > { %8428 = vst [vmem:[#allocation36_spill] sm:$0xff] %v6666_v19  ;;  %8430 = vst [vmem:[#allocation144_spill] sm:$0xff] %v6672_v12  ;;  %v6687_v58 = vmul.f32 %v6655_v44, %v6633_v52  ;;  %v6691_v37 = vmul.f32 %v6655_v44, %v6644_v27  ;;  %v2576_v49 = vmul.f32 %v2567_v24, %v8437_v54 }
 0x273   : > { %8432 = vst [vmem:[#allocation145_spill] sm:$0xff] %v6675_v42  ;;  %8434 = vst [vmem:[#allocation103_spill] sm:$0xff] %v6681_v25  ;;  %v2726_v43 = vrot.slane %v6604_v29, %v5622_v15  ;;  %v3810_v6 = vrot.slane %v3801_v57, %v8406_v51  ;;  %v2453_v17 = vadd.f32 %v2450_v38, %v2432_v21 }
 0x274   : > { %8435 = vst [vmem:[#allocation146_spill] sm:$0xff] %v6687_v58  ;;  %8436 = vst [vmem:[#allocation147_spill] sm:$0xff] %v6691_v37  ;;  %v2588_v19 = vrot.slane %v6672_v12, %v8406_v51  ;;  %v2717_v35 = vmul.f32 %v2708_v3, %v8412_v20  ;;  %v2609_v52 = vrot.slane %v6675_v42, %v8406_v51  ;;  %v8438_v37 = vld [vmem:[#allocation19_spill] sm:$0xff]  ;;  %v8440_v3 = vld [vmem:[#allocation86_spill] sm:$0xff] }
 0x275   : > { %v2630_v44 = vrot.slane %v6681_v25, %v8406_v51  ;;  %v2735_v27 = vmul.f32 %v2726_v43, %v8438_v37  ;;  %v2780_v24 = vrot.slane %v6609_v33, %v5622_v15  ;;  %v2474_v60 = vadd.f32 %v2471_v45, %v2453_v17  ;;  %v8442_v45 = vld [vmem:[#allocation105_spill] sm:$0xff]  ;;  %v8443_v17 = vld [vmem:[#allocation94_spill] sm:$0xff] }
 0x276   : > { %v2534_v57 = vmul.f32 %v2525_v62, %v8439_v56  ;;  %v2798_v38 = vrot.slane %v6615_v34, %v5622_v15  ;;  %v2852_v20 = vrot.slane %v6639_v61, %v5622_v15  ;;  %v2555_v16 = vmul.f32 %v2546_v48, %v8440_v3  ;;  %v8446_v48 = vld [vmem:[#allocation113_spill] sm:$0xff]  ;;  %v8447_v58 = vld [vmem:[#allocation106_spill] sm:$0xff] }
 0x277   : > { %v2738_v50 = vadd.f32 %v2735_v27, %v2717_v35  ;;  %v2870_v37 = vrot.slane %v6647_v63, %v5622_v15  ;;  %v6718_v43 = vmul.f32 %v3810_v6, %v8320_v53  ;;  %v2495_v62 = vadd.f32 %v8442_v45, %v2474_v60  ;;  %v8448_v6 = vld [vmem:[#allocation90_spill] sm:$0xff] }
 0x278   : > { %v2597_v18 = vmul.f32 %v2588_v19, %v8443_v17  ;;  %v2888_v39 = vrot.slane %v6582_v31, %v5622_v15  ;;  %v2618_v13 = vmul.f32 %v2609_v52, %v8444_v1  ;;  %v6726_v21 = vmul.f32 %v2630_v44, %v8445_v55 }
 0x279   : > { %8441 = vst [vmem:[#allocation19_spill] sm:$0xff] %v6718_v43  ;;  %v2756_v35 = vadd.f32 %v8446_v48, %v2738_v50  ;;  %v2789_v27 = vmul.f32 %v2780_v24, %v8427_v4  ;;  %v2516_v2 = vadd.f32 %v8447_v58, %v2495_v62  ;;  %v2807_v53 = vmul.f32 %v2798_v38, %v8417_v0 }
 0x27a   : > { %v2861_v60 = vmul.f32 %v2852_v20, %v8440_v3  ;;  %v2906_v19 = vrot.slane %v6672_v12, %v5622_v15  ;;  %v2879_v52 = vmul.f32 %v2870_v37, %v8437_v54  ;;  %v3374_v44 = vrot.slane %v6594_v32, %v8280_v9  ;;  %v8449_v20 = vld [vmem:[#allocation100_spill] sm:$0xff] }
 0x27b   : > { %v2774_v45 = vadd.f32 %v8448_v6, %v2756_v35  ;;  %v3392_v50 = vrot.slane %v6604_v29, %v8280_v9  ;;  %v2537_v24 = vadd.f32 %v2534_v57, %v2516_v2  ;;  %v2897_v58 = vmul.f32 %v2888_v39, %v8443_v17  ;;  %v8450_v6 = vld [vmem:[#allocation20_spill] sm:$0xff] }
 0x27c   : > { %v2924_v38 = vrot.slane %v6675_v42, %v5622_v15  ;;  %v3410_v62 = vrot.slane %v8449_v20, %v8280_v9  ;;  %v3383_v35 = vmul.f32 %v3374_v44, %v8426_v8  ;;  %v3428_v32 = vrot.slane %v8450_v6, %v8280_v9  ;;  %v8454_v8 = vld [vmem:[#allocation114_spill] sm:$0xff] }
 0x27d   : > { %v2792_v48 = vadd.f32 %v2789_v27, %v2774_v45  ;;  %v3401_v37 = vmul.f32 %v3392_v50, %v8427_v4  ;;  %v2558_v43 = vadd.f32 %v2555_v16, %v2537_v24  ;;  %v2915_v29 = vmul.f32 %v2906_v19, %v8451_v11  ;;  %v8452_v16 = vld [vmem:[#allocation101_spill] sm:$0xff] }
 0x27e   : > { %v2942_v39 = vrot.slane %v6681_v25, %v5622_v15  ;;  %v3419_v27 = vmul.f32 %v3410_v62, %v8417_v0  ;;  %v3446_v45 = vrot.slane %v6609_v33, %v8280_v9  ;;  %v3464_v50 = vrot.slane %v6615_v34, %v8280_v9  ;;  %v8453_v24 = vld [vmem:[#allocation41_spill] sm:$0xff]  ;;  %v8456_v0 = vld [vmem:[#allocation115_spill] sm:$0xff] }
 0x27f   : > { %v2810_v57 = vadd.f32 %v2807_v53, %v2792_v48  ;;  %v3404_v22 = vadd.f32 %v3401_v37, %v3383_v35  ;;  %v2579_v44 = vadd.f32 %v2576_v49, %v2558_v43  ;;  %v3482_v19 = vrot.slane %v8452_v16, %v8280_v9  ;;  %v8455_v43 = vld [vmem:[#allocation97_spill] sm:$0xff] }
 0x280   : > { %v3500_v6 = vrot.slane %v8453_v24, %v8280_v9  ;;  %v3437_v53 = vmul.f32 %v3428_v32, %v8422_v30  ;;  %v3518_v62 = vrot.slane %v6639_v61, %v8280_v9  ;;  %v2933_v49 = vmul.f32 %v2924_v38, %v8445_v55 }
 0x281   : > { %v2828_v20 = vadd.f32 %v8454_v8, %v2810_v57  ;;  %v3422_v2 = vadd.f32 %v3419_v27, %v3404_v22  ;;  %v2600_v48 = vadd.f32 %v2597_v18, %v2579_v44  ;;  %v2951_v35 = vmul.f32 %v2942_v39, %v8455_v43  ;;  %v8459_v44 = vld [vmem:[#allocation81_spill] sm:$0xff] }
 0x282   : > { %v3536_v37 = vrot.slane %v6647_v63, %v8280_v9  ;;  %v3455_v24 = vmul.f32 %v3446_v45, %v8439_v56  ;;  %v3572_v22 = vrot.slane %v6672_v12, %v8280_v9  ;;  %v3473_v30 = vmul.f32 %v3464_v50, %v8440_v3  ;;  %v8458_v45 = vld [vmem:[#allocation28_spill] sm:$0xff]  ;;  %v3315_v50 = vpop.permute.xlu1 %3314  ;;  %v8484_v3 = vld [vmem:[#allocation21_spill] sm:$0xff] }
 0x283   : > { %v2846_v16 = vadd.f32 %v8456_v0, %v2828_v20  ;;  %v3440_v34 = vadd.f32 %v3437_v53, %v3422_v2  ;;  %v3491_v32 = vmul.f32 %v3482_v19, %v8437_v54  ;;  %v3509_v18 = vmul.f32 %v3500_v6, %v8443_v17  ;;  %v8457_v0 = vld [vmem:[#allocation64_spill] sm:$0xff] }
 0x284   : > { %v3554_v8 = vrot.slane %v6582_v31, %v8280_v9  ;;  %v3527_v57 = vmul.f32 %v3518_v62, %v8444_v1  ;;  %v3581_v20 = vmul.f32 %v3572_v22, %v8457_v0  ;;  %v2621_v2 = vadd.f32 %v2618_v13, %v2600_v48  ;;  %v8481_v54 = vld [vmem:[#allocation76_spill] sm:$0xff] }
 0x285   : > { %v2864_v38 = vadd.f32 %v2861_v60, %v2846_v16  ;;  %v3458_v39 = vadd.f32 %v3455_v24, %v3440_v34  ;;  %v3545_v27 = vmul.f32 %v3536_v37, %v8445_v55  ;;  %v617_v53 = vadd.f32 %v8459_v44, %v8458_v45  ;;  %v3282_v37 = vpop.permute.xlu0 %3281  ;;  %v8463_v44 = vld [vmem:[#allocation35_spill] sm:$0xff] }
 0x286   : > { %v6788_v19 = vmul.f32 %v8398_v46, %v8431_v10  ;;  %v6792_v34 = vsel %vm3322_vm0, %v3315_v50, %v6524_v28  ;;  %v3608_v60 = vrot.slane %v6681_v25, %v8280_v9  ;;  %v3563_v13 = vmul.f32 %v3554_v8, %v8455_v43 }
 0x287   : > { %v2882_v6 = vadd.f32 %v2879_v52, %v2864_v38  ;;  %v3476_v12 = vadd.f32 %v3473_v30, %v3458_v39  ;;  %8461 = vst [vmem:[#allocation113_spill] sm:$0xff] %v6792_v34  ;;  %v4400_v16 = vclamps-f32 %v617_v53, 1.0  ;;  %v3590_v52 = vrot.slane %v6675_v42, %v8280_v9 }
 0x288   : > { %8460 = vst [vmem:[#allocation105_spill] sm:$0xff] %v6788_v19  ;;  %v2960_v24 = vrot.slane %v6788_v19, %v5622_v15  ;;  %v3305_v62 = vrot.slane %v6788_v19, %v5639_v47  ;;  %v6804_v28 = vmul.f32 %v3608_v60, %v6792_v34  ;;  %v6808_v53 = vsel %vm3289_vm4, %v3282_v37, %v8463_v44 }
 0x289   : > { %v2900_v46 = vadd.f32 %v2897_v58, %v2882_v6  ;;  %v3494_v48 = vadd.f32 %v3491_v32, %v3476_v12  ;;  %v4409_v22 = vadd.f32 1.0, %v4400_v16  ;;  %v662_v30 = vand.u32 2147483647, %v4400_v16  ;;  %8464 = vst [vmem:[#allocation90_spill] sm:$0xff] %v6808_v53 }
 0x28a   : > { %8462 = vst [vmem:[#allocation106_spill] sm:$0xff] %v6804_v28  ;;  %v4412_v38 = vadd.f32 -1.0, %v4400_v16  ;;  %v4415_v8 = vadd.f32 -2.0, %v4400_v16  ;;  %v2969_v58 = vmul.f32 %v2960_v24, %v8457_v0  ;;  %v6812_v6 = vmul.f32 %v6792_v34, %v3305_v62  ;;  %v8478_v34 = vld [vmem:[#allocation44_spill] sm:$0xff] }
 0x28b   : > { %v2918_v39 = vadd.f32 %v2915_v29, %v2900_v46  ;;  %v3512_v45 = vadd.f32 %v3509_v18, %v3494_v48  ;;  %v653_v12 = vand.u32 2147483647, %v4409_v22  ;;  %v665_v32 = vsub.f32 1.0, %v662_v30 }
 0x28c   : > { %v674_v50 = vand.u32 2147483647, %v4412_v38  ;;  %8465 = vst [vmem:[#allocation114_spill] sm:$0xff] %v6812_v6  ;;  %v686_v1 = vand.u32 2147483647, %v4415_v8  ;;  %v6815_v42 = vrot.slane %v6560_v7, 1  ;;  %v6818_v29 = vadd.f32 %v6726_v21, %v2621_v2 }
 0x28d   : > { %v2936_v60 = vadd.f32 %v2933_v49, %v2918_v39  ;;  %v3530_v10 = vadd.f32 %v3527_v57, %v3512_v45  ;;  %v656_v18 = vsub.f32 1.0, %v653_v12  ;;  %v668_v16 = vmax.f32 %v665_v32, 0.0 }
 0x28e   : > { %8466 = vst [vmem:[#allocation115_spill] sm:$0xff] %v6815_v42  ;;  %8467 = vst [vmem:[#allocation28_spill] sm:$0xff] %v6818_v29  ;;  %v677_v46 = vsub.f32 1.0, %v674_v50  ;;  %v689_v37 = vsub.f32 1.0, %v686_v1  ;;  %v2651_v22 = vrot.slane %v6788_v19, %v8406_v51  ;;  %v3599_v62 = vmul.f32 %v3590_v52, %v6808_v53  ;;  %v8477_v29 = vld [vmem:[#allocation37_spill] sm:$0xff] }
 0x28f   : > { %v2954_v48 = vadd.f32 %v2951_v35, %v2936_v60  ;;  %v3548_v24 = vadd.f32 %v3545_v27, %v3530_v10  ;;  %v659_v49 = vmax.f32 %v656_v18, 0.0  ;;  %v729_v30 = vrot.slane %v668_v16, 1 }
 0x290   : > { %v680_v57 = vmax.f32 %v677_v46, 0.0  ;;  %v692_v8 = vmax.f32 %v689_v37, 0.0  ;;  %v6827_v21 = vmul.f32 %v6815_v42, %v6560_v7  ;;  %v6834_v52 = vmul.f32 %v2651_v22, %v8455_v43  ;;  %v8473_v22 = vld [vmem:[#allocation42_spill] sm:$0xff]  ;;  %v8474_v37 = vld [vmem:[#allocation43_spill] sm:$0xff]  ;;  %v8487_v42 = vld [vmem:[#allocation93_spill] sm:$0xff] }
 0x291   : > { %v3566_v38 = vadd.f32 %v3563_v13, %v3548_v24  ;;  %v6823_v39 = vadd.f32 %v2969_v58, %v2954_v48  ;;  %v698_v2 = vrot.slane %v659_v49, 1  ;;  %v6829_v35 = vmul.f32 %v729_v30, %v659_v49 }
 0x292   : > { %8469 = vst [vmem:[#allocation35_spill] sm:$0xff] %v6827_v21  ;;  %v774_v1 = vrot.slane %v680_v57, 1  ;;  %v6831_v10 = vmul.f32 %v729_v30, %v668_v16  ;;  %v819_v45 = vrot.slane %v692_v8, 1  ;;  %8470 = vst [vmem:[#allocation148_spill] sm:$0xff] %v6834_v52  ;;  %v6837_v13 = vrot.slane %v6587_v23, 1 }
 0x293   : > { %8468 = vst [vmem:[#allocation81_spill] sm:$0xff] %v6823_v39  ;;  %v3584_v27 = vadd.f32 %v3581_v20, %v3566_v38  ;;  %v6839_v44 = vmul.f32 %v698_v2, %v659_v49  ;;  %v747_v58 = vrot.slane %v6829_v35, %v8406_v51  ;;  %v6845_v32 = vmul.f32 %v698_v2, %v668_v16  ;;  %v4584_v39 = vld [vmem:[%s4839_s23 + $0x8] sm:$0xff] }
 0x294   : > { %8471 = vst [vmem:[#allocation149_spill] sm:$0xff] %v6837_v13  ;;  %v6843_v12 = vmul.f32 %v774_v1, %v659_v49  ;;  %v6849_v20 = vmul.f32 %v819_v45, %v659_v49  ;;  %v909_v60 = vrot.slane %v6831_v10, %v8406_v51  ;;  %v6853_v18 = vmul.f32 %v774_v1, %v668_v16 }
 0x295   : > { %v6847_v50 = vadd.f32 %v3599_v62, %v3584_v27  ;;  %v716_v46 = vrot.slane %v6839_v44, %v8406_v51  ;;  %v6859_v24 = vmul.f32 %v729_v30, %v680_v57  ;;  %v765_v62 = vmul.f32 %v8473_v22, %v747_v58  ;;  %v8475_v58 = vld [vmem:[#allocation25_spill] sm:$0xff] }
 0x296   : > { %v792_v48 = vrot.slane %v6843_v12, %v8406_v51  ;;  %v873_v49 = vrot.slane %v6845_v32, %v8406_v51  ;;  %v6866_v38 = vmul.f32 %v819_v45, %v668_v16  ;;  %v6868_v27 = vmul.f32 %v729_v30, %v692_v8 }
 0x297   : > { %8472 = vst [vmem:[#allocation150_spill] sm:$0xff] %v6847_v50  ;;  %v720_v19 = vmul.f32 %v4584_v39, %v716_v46  ;;  %v837_v6 = vrot.slane %v6849_v20, %v8406_v51  ;;  %v930_v31 = vrot.slane %v6853_v18, %v8406_v51  ;;  %v6875_v56 = vmul.f32 %v698_v2, %v680_v57  ;;  %v8490_v50 = vld [vmem:[#allocation38_spill] sm:$0xff] }
 0x298   : > { %v810_v63 = vmul.f32 %v8474_v37, %v792_v48  ;;  %v912_v61 = vmul.f32 %v909_v60, %v8475_v58  ;;  %v961_v16 = vrot.slane %v6866_v38, %v8406_v51  ;;  %v6883_v30 = vmul.f32 %v6837_v13, %v6560_v7 }
 0x299   : > { %v768_v39 = vadd.f32 %v765_v62, %v720_v19  ;;  %v1018_v46 = vrot.slane %v6859_v24, %v8406_v51  ;;  %v6887_v33 = vmul.f32 %v774_v1, %v680_v57  ;;  %v6889_v52 = vmul.f32 %v819_v45, %v680_v57  ;;  %v8479_v62 = vld [vmem:[#allocation84_spill] sm:$0xff] }
 0x29a   : > { %8476 = vst [vmem:[#allocation42_spill] sm:$0xff] %v6883_v30  ;;  %v891_v53 = vmul.f32 %v8477_v29, %v873_v49  ;;  %v982_v60 = vrot.slane %v6875_v56, %v8406_v51  ;;  %v6894_v48 = vmul.f32 %v698_v2, %v692_v8  ;;  %v1137_v25 = vrot.slane %v6868_v27, %v8406_v51  ;;  %v8480_v57 = vld [vmem:[#allocation24_spill] sm:$0xff] }
 0x29b   : > { %v813_v7 = vadd.f32 %v810_v63, %v768_v39  ;;  %v855_v19 = vmul.f32 %v8478_v34, %v837_v6  ;;  %v943_v0 = vmul.f32 %v8479_v62, %v930_v31  ;;  %v1049_v43 = vrot.slane %v6887_v33, %v8406_v51  ;;  %v8482_v6 = vld [vmem:[#allocation30_spill] sm:$0xff] }
 0x29c   : > { %v964_v55 = vmul.f32 %v961_v16, %v8480_v57  ;;  %v1070_v49 = vrot.slane %v6889_v52, %v8406_v51  ;;  %v6905_v11 = vmul.f32 %v774_v1, %v692_v8  ;;  %v6907_v2 = vmul.f32 %v819_v45, %v692_v8 }
 0x29d   : > { %v858_v17 = vadd.f32 %v855_v19, %v813_v7  ;;  %v1031_v23 = vmul.f32 %v8481_v54, %v1018_v46  ;;  %v1101_v63 = vrot.slane %v6894_v48, %v8406_v51  ;;  %v1210_v31 = vrot.slane %v6839_v44, %v5622_v15  ;;  %v8485_v19 = vld [vmem:[#allocation77_spill] sm:$0xff] }
 0x29e   : > { %v1000_v39 = vmul.f32 %v8482_v6, %v982_v60  ;;  %v1052_v16 = vmul.f32 %v1049_v43, %v8483_v36  ;;  %v6917_v26 = vmul.f32 %v1137_v25, %v8484_v3  ;;  %v1228_v8 = vrot.slane %v6829_v35, %v5622_v15 }
 0x29f   : > { %v894_v1 = vadd.f32 %v891_v53, %v858_v17  ;;  %v1158_v45 = vrot.slane %v6905_v11, %v8406_v51  ;;  %v1213_v46 = vmul.f32 %v1210_v31, %v8473_v22  ;;  %v1246_v7 = vrot.slane %v6843_v12, %v5622_v15  ;;  %v8486_v17 = vld [vmem:[#allocation48_spill] sm:$0xff] }
 0x2a0   : > { %v1083_v41 = vmul.f32 %v8485_v19, %v1070_v49  ;;  %v1189_v43 = vrot.slane %v6907_v2, %v8406_v51  ;;  %v1231_v25 = vmul.f32 %v1228_v8, %v8474_v37  ;;  %v1264_v60 = vrot.slane %v6849_v20, %v5622_v15 }
 0x2a1   : > { %v915_v14 = vadd.f32 %v912_v61, %v894_v1  ;;  %v1119_v53 = vmul.f32 %v8486_v17, %v1101_v63  ;;  %v1297_v40 = vrot.slane %v6845_v32, %v5622_v15  ;;  %v1315_v22 = vrot.slane %v6831_v10, %v5622_v15 }
 0x2a2   : > { %v1234_v31 = vadd.f32 %v1231_v25, %v1213_v46  ;;  %v1249_v49 = vmul.f32 %v1246_v7, %v8478_v34  ;;  %v1333_v59 = vrot.slane %v6853_v18, %v5622_v15  ;;  %v1351_v8 = vrot.slane %v6866_v38, %v5622_v15  ;;  %v8489_v25 = vld [vmem:[#allocation49_spill] sm:$0xff] }
 0x2a3   : > { %v946_v13 = vadd.f32 %v943_v0, %v915_v14  ;;  %v6943_v61 = vmul.f32 %v8487_v42, %v1158_v45  ;;  %v1384_v63 = vrot.slane %v6875_v56, %v5622_v15  ;;  %v1402_v1 = vrot.slane %v6859_v24, %v5622_v15 }
 0x2a4   : > { %v6950_v46 = vmul.f32 %v1189_v43, %v8488_v5  ;;  %v1252_v7 = vadd.f32 %v1249_v49, %v1234_v31  ;;  %v1282_v30 = vmul.f32 %v8489_v25, %v1264_v60  ;;  %v1420_v51 = vrot.slane %v6887_v33, %v5622_v15 }
 0x2a5   : > { %v967_v21 = vadd.f32 %v964_v55, %v946_v13  ;;  %v1300_v14 = vmul.f32 %v1297_v40, %v8475_v58  ;;  %v1318_v0 = vmul.f32 %v1315_v22, %v8479_v62  ;;  %v1438_v45 = vrot.slane %v6889_v52, %v5622_v15 }
 0x2a6   : > { %v1285_v4 = vadd.f32 %v1282_v30, %v1252_v7  ;;  %v1336_v28 = vmul.f32 %v1333_v59, %v8480_v57  ;;  %v1369_v43 = vmul.f32 %v8490_v50, %v1351_v8  ;;  %v1471_v31 = vrot.slane %v6894_v48, %v5622_v15  ;;  %v8491_v7 = vld [vmem:[#allocation31_spill] sm:$0xff] }
 0x2a7   : > { %v1003_v60 = vadd.f32 %v1000_v39, %v967_v21  ;;  %v1387_v49 = vmul.f32 %v1384_v63, %v8481_v54  ;;  %v1405_v55 = vmul.f32 %v1402_v1, %v8483_v36  ;;  %v1489_v40 = vrot.slane %v6868_v27, %v5622_v15 }
 0x2a8   : > { %v1303_v13 = vadd.f32 %v1300_v14, %v1285_v4  ;;  %v1423_v22 = vmul.f32 %v1420_v51, %v8485_v19  ;;  %v1507_v30 = vrot.slane %v6905_v11, %v5622_v15  ;;  %v1570_v59 = vrot.slane %v6839_v44, %v5639_v47 }
 0x2a9   : > { %v1034_v8 = vadd.f32 %v1031_v23, %v1003_v60  ;;  %v1456_v17 = vmul.f32 %v8491_v7, %v1438_v45  ;;  %v1525_v21 = vrot.slane %v6907_v2, %v5622_v15  ;;  %v1588_v39 = vrot.slane %v6829_v35, %v5639_v47 }
 0x2aa   : > { %v1321_v63 = vadd.f32 %v1318_v0, %v1303_v13  ;;  %v1474_v4 = vmul.f32 %v1471_v31, %v8484_v3  ;;  %v1573_v51 = vmul.f32 %v1570_v59, %v8474_v37  ;;  %v1606_v1 = vrot.slane %v6843_v12, %v5639_v47  ;;  %v8492_v59 = vld [vmem:[#allocation51_spill] sm:$0xff]  ;;  %v8493_v3 = vld [vmem:[#allocation52_spill] sm:$0xff] }
 0x2ab   : > { %v1055_v14 = vadd.f32 %v1052_v16, %v1034_v8  ;;  %v1492_v54 = vmul.f32 %v1489_v40, %v8487_v42  ;;  %v1591_v23 = vmul.f32 %v1588_v39, %v8478_v34  ;;  %v1624_v45 = vrot.slane %v6849_v20, %v5639_v47 }
 0x2ac   : > { %v1339_v60 = vadd.f32 %v1336_v28, %v1321_v63  ;;  %v6986_v15 = vmul.f32 %v1507_v30, %v8488_v5  ;;  %v1657_v0 = vrot.slane %v6845_v32, %v5639_v47  ;;  %v1675_v37 = vrot.slane %v6831_v10, %v5639_v47 }
 0x2ad   : > { %v1086_v31 = vadd.f32 %v1083_v41, %v1055_v14  ;;  %v1594_v13 = vadd.f32 %v1591_v23, %v1573_v51  ;;  %v1609_v16 = vmul.f32 %v1606_v1, %v8489_v25  ;;  %v1693_v34 = vrot.slane %v6853_v18, %v5639_v47 }
 0x2ae   : > { %v1372_v40 = vadd.f32 %v1369_v43, %v1339_v60  ;;  %v6996_v8 = vmul.f32 %v8492_v59, %v1525_v21  ;;  %v1711_v28 = vrot.slane %v6866_v38, %v5639_v47  ;;  %v1744_v30 = vrot.slane %v6875_v56, %v5639_v47 }
 0x2af   : > { %v1122_v39 = vadd.f32 %v1119_v53, %v1086_v31  ;;  %v1612_v63 = vadd.f32 %v1609_v16, %v1594_v13  ;;  %v1642_v41 = vmul.f32 %v8493_v3, %v1624_v45  ;;  %v1762_v25 = vrot.slane %v6859_v24, %v5639_v47  ;;  %v8494_v45 = vld [vmem:[#allocation45_spill] sm:$0xff] }
 0x2b0   : > { %v1390_v51 = vadd.f32 %v1387_v49, %v1372_v40  ;;  %v1660_v1 = vmul.f32 %v1657_v0, %v8479_v62  ;;  %v1780_v43 = vrot.slane %v6887_v33, %v5639_v47  ;;  %v1798_v21 = vrot.slane %v6889_v52, %v5639_v47 }
 0x2b1   : > { %v1143_v14 = vadd.f32 %v6917_v26, %v1122_v39  ;;  %v1645_v23 = vadd.f32 %v1642_v41, %v1612_v63  ;;  %v1678_v53 = vmul.f32 %v1675_v37, %v8480_v57  ;;  %v1696_v60 = vmul.f32 %v1693_v34, %v8490_v50  ;;  %v8495_v34 = vld [vmem:[#allocation39_spill] sm:$0xff] }
 0x2b2   : > { %v1408_v3 = vadd.f32 %v1405_v55, %v1390_v51  ;;  %v1729_v31 = vmul.f32 %v8494_v45, %v1711_v28  ;;  %v1747_v49 = vmul.f32 %v1744_v30, %v8483_v36  ;;  %v1765_v0 = vmul.f32 %v1762_v25, %v8485_v19 }
 0x2b3   : > { %v1174_v13 = vadd.f32 %v6943_v61, %v1143_v14  ;;  %v1663_v16 = vadd.f32 %v1660_v1, %v1645_v23  ;;  %v1831_v40 = vrot.slane %v6894_v48, %v5639_v47  ;;  %v1849_v26 = vrot.slane %v6868_v27, %v5639_v47 }
 0x2b4   : > { %v1426_v39 = vadd.f32 %v1423_v22, %v1408_v3  ;;  %v1783_v37 = vmul.f32 %v1780_v43, %v8491_v7  ;;  %v1816_v55 = vmul.f32 %v8495_v34, %v1798_v21  ;;  %v1921_v28 = vrot.slane %v6839_v44, %v8280_v9 }
 0x2b5   : > { %v1195_v30 = vadd.f32 %v6950_v46, %v1174_v13  ;;  %v1681_v63 = vadd.f32 %v1678_v53, %v1663_v16  ;;  %v1867_v61 = vrot.slane %v6905_v11, %v5639_v47  ;;  %v1885_v41 = vrot.slane %v6907_v2, %v5639_v47  ;;  %v8496_v53 = vld [vmem:[#allocation55_spill] sm:$0xff] }
 0x2b6   : > { %v1459_v25 = vadd.f32 %v1456_v17, %v1426_v39  ;;  %v1924_v51 = vmul.f32 %v1921_v28, %v8477_v29  ;;  %v1939_v22 = vrot.slane %v6829_v35, %v8280_v9  ;;  %v1957_v1 = vrot.slane %v6843_v12, %v8280_v9 }
 0x2b7   : > { %v1699_v43 = vadd.f32 %v1696_v60, %v1681_v63  ;;  %v1834_v44 = vmul.f32 %v1831_v40, %v8487_v42  ;;  %v1852_v46 = vmul.f32 %v1849_v26, %v8488_v5  ;;  %v1975_v21 = vrot.slane %v6849_v20, %v8280_v9  ;;  %1198 = vst [vmem:[#allocation3 + $0x70] sm:$0xf] %v1195_v30 }
 0x2b8   : > { %v1477_v14 = vadd.f32 %v1474_v4, %v1459_v25  ;;  %v1942_v17 = vmul.f32 %v1939_v22, %v8475_v58  ;;  %v1993_v29 = vrot.slane %v6845_v32, %v8280_v9  ;;  %v2011_v35 = vrot.slane %v6831_v10, %v8280_v9 }
 0x2b9   : > { %v1732_v23 = vadd.f32 %v1729_v31, %v1699_v43  ;;  %v1870_v12 = vmul.f32 %v1867_v61, %v8492_v59  ;;  %v7046_v60 = vmul.f32 %v8496_v53, %v1885_v41  ;;  %v2029_v3 = vrot.slane %v6853_v18, %v8280_v9  ;;  %v8497_v18 = vld [vmem:[#allocation76_spill] sm:$0xff]  ;;  %v8587_v59 = vld [vmem:[#allocation107_spill] sm:$0xff] }
 0x2ba   : > { %v1495_v20 = vadd.f32 %v1492_v54, %v1477_v14  ;;  %v1945_v13 = vadd.f32 %v1942_v17, %v1924_v51  ;;  %v1960_v4 = vmul.f32 %v1957_v1, %v8479_v62  ;;  %v2047_v16 = vrot.slane %v6866_v38, %v8280_v9  ;;  %v8499_v51 = vld [vmem:[#allocation21_spill] sm:$0xff] }
 0x2bb   : > { %v1750_v32 = vadd.f32 %v1747_v49, %v1732_v23  ;;  %v1978_v40 = vmul.f32 %v1975_v21, %v8480_v57  ;;  %v2065_v10 = vrot.slane %v6875_v56, %v8280_v9  ;;  %v2083_v31 = vrot.slane %v6859_v24, %v8280_v9  ;;  %v8501_v21 = vld [vmem:[#allocation106_spill] sm:$0xff]  ;;  %v8504_v23 = vld [vmem:[#allocation35_spill] sm:$0xff] }
 0x2bc   : > { %v1513_v26 = vadd.f32 %v6986_v15, %v1495_v20  ;;  %v1963_v39 = vadd.f32 %v1960_v4, %v1945_v13  ;;  %v1996_v54 = vmul.f32 %v1993_v29, %v8482_v6  ;;  %v2014_v28 = vmul.f32 %v2011_v35, %v8497_v18  ;;  %v8498_v15 = vld [vmem:[#allocation48_spill] sm:$0xff] }
 0x2bd   : > { %v1768_v30 = vadd.f32 %v1765_v0, %v1750_v32  ;;  %v2032_v63 = vmul.f32 %v2029_v3, %v8483_v36  ;;  %v2101_v38 = vrot.slane %v6887_v33, %v8280_v9  ;;  %v2119_v49 = vrot.slane %v6889_v52, %v8280_v9  ;;  %v8505_v3 = vld [vmem:[#allocation87_spill] sm:$0xff] }
 0x2be   : > { %v1546_v56 = vadd.f32 %v6996_v8, %v1513_v26  ;;  %v1981_v61 = vadd.f32 %v1978_v40, %v1963_v39  ;;  %v2050_v24 = vmul.f32 %v2047_v16, %v8485_v19  ;;  %v2068_v41 = vmul.f32 %v2065_v10, %v8498_v15  ;;  %v8500_v8 = vld [vmem:[#allocation150_spill] sm:$0xff]  ;;  %v8508_v16 = vld [vmem:[#allocation124_spill] sm:$0xff]  ;;  %v8509_v32 = vld [vmem:[#allocation115_spill] sm:$0xff] }
 0x2bf   : > { %v1786_v25 = vadd.f32 %v1783_v37, %v1768_v30  ;;  %v2086_v22 = vmul.f32 %v2083_v31, %v8499_v51  ;;  %v2137_v0 = vrot.slane %v6894_v48, %v8280_v9  ;;  %v2170_v1 = vrot.slane %v6868_v27, %v8280_v9  ;;  %v8503_v27 = vld [vmem:[#allocation16_spill] sm:$0xff]  ;;  %v8510_v10 = vld [vmem:[#allocation62_spill] sm:$0xff]  ;;  %v8513_v30 = vld [vmem:[#allocation61_spill] sm:$0xff] }
 0x2c0   : > { %v1552_v33 = vrot.slane %v1546_v56, 4  ;;  %v1999_v43 = vadd.f32 %v1996_v54, %v1981_v61  ;;  %v2203_v52 = vrot.slane %v6905_v11, %v8280_v9  ;;  %v7078_v14 = vadd.f32 %v8501_v21, %v8500_v8  ;;  %v8507_v11 = vld [vmem:[#allocation42_spill] sm:$0xff]  ;;  %v8511_v26 = vld [vmem:[#allocation60_spill] sm:$0xff]  ;;  %v8531_v15 = vld [vmem:[#allocation97_spill] sm:$0xff] }
 0x2c1   : > { %v1819_v17 = vadd.f32 %v1816_v55, %v1786_v25  ;;  %v2104_v37 = vmul.f32 %v2101_v38, %v8487_v42  ;;  %v2122_v29 = vmul.f32 %v2119_v49, %v8488_v5  ;;  %v2236_v48 = vrot.slane %v6907_v2, %v8280_v9  ;;  %v8512_v2 = vld [vmem:[#allocation149_spill] sm:$0xff]  ;;  %v8514_v49 = vld [vmem:[#allocation139_spill] sm:$0xff] }
 0x2c2   : > { %8502 = vst [vmem:[#allocation43_spill] sm:$0xff] %v7078_v14  ;;  %v2017_v35 = vadd.f32 %v2014_v28, %v1999_v43  ;;  %1558 = vst [vmem:[#allocation3 + $0x70] sm:$0xf0] %v1552_v33  ;;  %v8506_v20 = vrot.slane %v8504_v23, %v8505_v3  ;;  %v3836_v4 = vrot.slane %v8507_v11, %v8505_v3  ;;  %v8515_v33 = vld [vmem:[#allocation32_spill] sm:$0xff]  ;;  %v8590_v42 = vld [vmem:[#allocation17_spill] sm:$0xff] }
 0x2c3   : > { %v3851_v55 = vmul.f32 %v8509_v32, %v8508_v16  ;;  %v1837_v40 = vadd.f32 %v1834_v44, %v1819_v17  ;;  %v2155_v31 = vmul.f32 %v8510_v10, %v2137_v0  ;;  %v2188_v39 = vmul.f32 %v8511_v26, %v2170_v1  ;;  %v8516_v44 = vld [vmem:[#allocation131_spill] sm:$0xff]  ;;  %v8518_v17 = vld [vmem:[#allocation78_spill] sm:$0xff] }
 0x2c4   : > { %v3755_v13 = vmul.f32 %v8506_v20, %v8503_v27  ;;  %v3914_v54 = vmul.f32 %v8512_v2, %v8508_v16  ;;  %v2035_v28 = vadd.f32 %v2032_v63, %v2017_v35  ;;  %v7097_v38 = vmul.f32 %v8513_v30, %v2203_v52  ;;  %v8517_v0 = vld [vmem:[#allocation71_spill] sm:$0xff]  ;;  %v8519_v52 = vld [vmem:[#allocation126_spill] sm:$0xff]  ;;  %v8583_v30 = vld [vmem:[#allocation125_spill] sm:$0xff] }
 0x2c5   : > { %v3857_v61 = vrot.slane %v3851_v55, %v8505_v3  ;;  %v1855_v25 = vadd.f32 %v1852_v46, %v1837_v40  ;;  %v3845_v43 = vmul.f32 %v3836_v4, %v8515_v33  ;;  %v3878_v8 = vrot.slane %v8516_v44, %v8505_v3  ;;  %v8521_v46 = vld [vmem:[#allocation127_spill] sm:$0xff]  ;;  %v8522_v16 = vld [vmem:[#allocation10_spill] sm:$0xff] }
 0x2c6   : > { %v3788_v56 = vadd.f32 %v8514_v49, %v3755_v13  ;;  %v3899_v1 = vrot.slane %v8517_v0, %v8505_v3  ;;  %v2053_v21 = vadd.f32 %v2050_v24, %v2035_v28  ;;  %v3920_v63 = vrot.slane %v3914_v54, %v8505_v3  ;;  %v8520_v13 = vld [vmem:[#allocation86_spill] sm:$0xff] }
 0x2c7   : > { %v3935_v35 = vmul.f32 %v8509_v32, %v8519_v52  ;;  %v1873_v20 = vadd.f32 %v1870_v12, %v1855_v25  ;;  %v3866_v11 = vmul.f32 %v3857_v61, %v8520_v13  ;;  %v3956_v4 = vmul.f32 %v8521_v46, %v8519_v52  ;;  %v8524_v61 = vld [vmem:[#allocation33_spill] sm:$0xff] }
 0x2c8   : > { %v3818_v23 = vadd.f32 %v8518_v17, %v3788_v56  ;;  %v3977_v55 = vmul.f32 %v8522_v16, %v8519_v52  ;;  %v2071_v40 = vadd.f32 %v2068_v41, %v2053_v21  ;;  %v3998_v28 = vmul.f32 %v8512_v2, %v8519_v52  ;;  %v8523_v56 = vld [vmem:[#allocation63_spill] sm:$0xff]  ;;  %v8525_v17 = vld [vmem:[#allocation12_spill] sm:$0xff]  ;;  %v8526_v41 = vld [vmem:[#allocation94_spill] sm:$0xff] }
 0x2c9   : > { %v3941_v24 = vrot.slane %v3935_v35, %v8505_v3  ;;  %v1906_v54 = vadd.f32 %v7046_v60, %v1873_v20  ;;  %v2254_v33 = vmul.f32 %v8523_v56, %v2236_v48  ;;  %v3962_v12 = vrot.slane %v3956_v4, %v8505_v3  ;;  %v8527_v21 = vld [vmem:[#allocation95_spill] sm:$0xff]  ;;  %v8528_v35 = vld [vmem:[#allocation56_spill] sm:$0xff] }
 0x2ca   : > { %v3848_v49 = vadd.f32 %v3845_v43, %v3818_v23  ;;  %v4019_v25 = vmul.f32 %v8509_v32, %v8524_v61  ;;  %v2089_v44 = vadd.f32 %v2086_v22, %v2071_v40  ;;  %v3887_v16 = vmul.f32 %v3878_v8, %v8525_v17  ;;  %v8529_v20 = vld [vmem:[#allocation27_spill] sm:$0xff]  ;;  %v8530_v48 = vld [vmem:[#allocation116_spill] sm:$0xff] }
 0x2cb   : > { %v3908_v43 = vmul.f32 %v3899_v1, %v8526_v41  ;;  %1909 = vst [vmem:[#allocation3 + $0x50] sm:$0xf] %v1906_v54  ;;  %v3929_v23 = vmul.f32 %v3920_v63, %v8527_v21  ;;  %v3950_v52 = vmul.f32 %v3941_v24, %v8528_v35  ;;  %v3983_v60 = vrot.slane %v3977_v55, %v8505_v3  ;;  %v8532_v1 = vld [vmem:[#allocation74_spill] sm:$0xff]  ;;  %v8533_v63 = vld [vmem:[#allocation80_spill] sm:$0xff]  ;;  %v8536_v21 = vld [vmem:[#allocation73_spill] sm:$0xff] }
 0x2cc   : > { %v3869_v0 = vadd.f32 %v3866_v11, %v3848_v49  ;;  %v622_v2 = vadd.f32 %v8530_v48, %v8529_v20  ;;  %v2107_v4 = vadd.f32 %v2104_v37, %v2089_v44  ;;  %v3971_v32 = vmul.f32 %v3962_v12, %v8531_v15  ;;  %v8534_v54 = vld [vmem:[#allocation108_spill] sm:$0xff]  ;;  %v8535_v37 = vld [vmem:[#allocation110_spill] sm:$0xff]  ;;  %v8540_v56 = vld [vmem:[#allocation83_spill] sm:$0xff] }
 0x2cd   : > { %v4004_v22 = vrot.slane %v3998_v28, %v8505_v3  ;;  %v4025_v8 = vrot.slane %v4019_v25, %v8505_v3  ;;  %v3027_v40 = vrot.slane %v8532_v1, %v5639_v47  ;;  %v3045_v49 = vrot.slane %v8533_v63, %v5639_v47  ;;  %v8537_v48 = vld [vmem:[#allocation68_spill] sm:$0xff] }
 0x2ce   : > { %v3890_v10 = vadd.f32 %v3887_v16, %v3869_v0  ;;  %v4403_v11 = vclamps-f32 %v622_v2, 1.0  ;;  %v2125_v24 = vadd.f32 %v2122_v29, %v2107_v4  ;;  %v3063_v41 = vrot.slane %v8534_v54, %v5639_v47 }
 0x2cf   : > { %v3081_v16 = vrot.slane %v8535_v37, %v5639_v47  ;;  %v3033_v20 = vmul.f32 %v3027_v40, %v8536_v21  ;;  %v3051_v1 = vmul.f32 %v3045_v49, %v8537_v48  ;;  %v8539_v37 = vld [vmem:[#allocation64_spill] sm:$0xff]  ;;  %v4013_v53 = vmul.f32 %v4004_v22, %v8540_v56  ;;  %v7239_v56 = vpop.permute.xlu1 %3252 }
 0x2d0   : > { %v3911_v55 = vadd.f32 %v3908_v43, %v3890_v10  ;;  %v4418_v12 = vadd.f32 1.0, %v4403_v11  ;;  %v2284_v44 = vand.u32 2147483647, %v4403_v11  ;;  %v4421_v28 = vadd.f32 -1.0, %v4403_v11  ;;  %v8538_v10 = vld [vmem:[#allocation15_spill] sm:$0xff]  ;;  %v8549_v48 = vld [vmem:[#allocation40_spill] sm:$0xff] }
 0x2d1   : > { %v4424_v0 = vadd.f32 -2.0, %v4403_v11  ;;  %v2158_v25 = vadd.f32 %v2155_v31, %v2125_v24  ;;  %v3069_v43 = vmul.f32 %v3063_v41, %v8538_v10  ;;  %v3054_v46 = vadd.f32 %v3051_v1, %v3033_v20  ;;  %v8542_v41 = vld [vmem:[#allocation70_spill] sm:$0xff]  ;;  %8573 = vst [vmem:[#allocation150_spill] sm:$0xff] %v7239_v56 }
 0x2d2   : > { %v3932_v2 = vadd.f32 %v3929_v23, %v3911_v55  ;;  %v2275_v6 = vand.u32 2147483647, %v4418_v12  ;;  %v2287_v63 = vsub.f32 1.0, %v2284_v44  ;;  %v2296_v29 = vand.u32 2147483647, %v4421_v28  ;;  %v8541_v55 = vld [vmem:[#allocation113_spill] sm:$0xff] }
 0x2d3   : > { %v2191_v4 = vadd.f32 %v2188_v39, %v2158_v25  ;;  %v2308_v14 = vand.u32 2147483647, %v4424_v0  ;;  %v3992_v61 = vmul.f32 %v3983_v60, %v8539_v37  ;;  %v3072_v49 = vadd.f32 %v3069_v43, %v3054_v46  ;;  %v8544_v46 = vld [vmem:[#allocation47_spill] sm:$0xff]  ;;  %v8552_v43 = vld [vmem:[#allocation146_spill] sm:$0xff] }
 0x2d4   : > { %v3953_v54 = vadd.f32 %v3950_v52, %v3932_v2  ;;  %v2278_v11 = vsub.f32 1.0, %v2275_v6  ;;  %v2299_v31 = vsub.f32 1.0, %v2296_v29  ;;  %v4034_v12 = vmul.f32 %v4025_v8, %v8541_v55  ;;  %v8543_v52 = vld [vmem:[#allocation65_spill] sm:$0xff] }
 0x2d5   : > { %v2224_v23 = vadd.f32 %v7097_v38, %v2191_v4  ;;  %v2311_v24 = vsub.f32 1.0, %v2308_v14  ;;  %v3087_v39 = vmul.f32 %v3081_v16, %v8542_v41  ;;  %v3099_v28 = vrot.slane %v8543_v52, %v5639_v47  ;;  %v8562_v52 = vld [vmem:[#allocation148_spill] sm:$0xff] }
 0x2d6   : > { %v3974_v40 = vadd.f32 %v3971_v32, %v3953_v54  ;;  %v7148_v44 = vmax.f32 %v2299_v31, 0.0  ;;  %v7153_v25 = vmax.f32 %v2287_v63, 0.0  ;;  %v7157_v22 = vmax.f32 %v2278_v11, 0.0  ;;  %v8550_v63 = vld [vmem:[#allocation111_spill] sm:$0xff] }
 0x2d7   : > { %v2257_v0 = vadd.f32 %v2254_v33, %v2224_v23  ;;  %v7155_v6 = vmax.f32 %v2311_v24, 0.0  ;;  %v3090_v38 = vadd.f32 %v3087_v39, %v3072_v49  ;;  %v3117_v32 = vrot.slane %v8544_v46, %v5639_v47  ;;  %v8546_v33 = vld [vmem:[#allocation109_spill] sm:$0xff]  ;;  %v8559_v49 = vld [vmem:[#allocation90_spill] sm:$0xff]  ;;  %v8561_v39 = vld [vmem:[#allocation28_spill] sm:$0xff] }
 0x2d8   : > { %v3995_v60 = vadd.f32 %v3992_v61, %v3974_v40  ;;  %v7160_v14 = vrot.slane %v7148_v44, 1  ;;  %v3135_v61 = vrot.slane %v8546_v33, %v5639_v47  ;;  %v3105_v1 = vmul.f32 %v3099_v28, %v8549_v48  ;;  %v8557_v40 = vld [vmem:[#allocation103_spill] sm:$0xff] }
 0x2d9   : > { %v2263_v8 = vrot.slane %v2257_v0, 4  ;;  %v7165_v2 = vrot.slane %v7155_v6, 1  ;;  %v3153_v29 = vrot.slane %v8550_v63, %v5639_v47  ;;  %v8553_v4 = vrot.slane %v8552_v43, %v8505_v3  ;;  %v8564_v46 = vld [vmem:[#allocation11_spill] sm:$0xff]  ;;  %v8566_v63 = vld [vmem:[#allocation89_spill] sm:$0xff] }
 0x2da   : > { %v4016_v16 = vadd.f32 %v4013_v53, %v3995_v60  ;;  %v7171_v21 = vmul.f32 %v7160_v14, %v7157_v22  ;;  %v7175_v20 = vmul.f32 %v7160_v14, %v7153_v25  ;;  %v8551_v53 = vld [vmem:[#allocation29_spill] sm:$0xff]  ;;  %v8558_v24 = vrot.slane %v8557_v40, %v5639_v47 }
 0x2db   : > { %8545 = vst [vmem:[#allocation25_spill] sm:$0xff] %v7165_v2  ;;  %v7184_v54 = vmul.f32 %v8553_v4, %v8551_v53  ;;  %2269 = vst [vmem:[#allocation3 + $0x50] sm:$0xf0] %v2263_v8  ;;  %v7190_v31 = vmul.f32 %v7165_v2, %v7157_v22  ;;  %v7194_v23 = vmul.f32 %v7165_v2, %v7153_v25  ;;  %v8567_v4 = vld [vmem:[#allocation13_spill] sm:$0xff] }
 0x2dc   : > { %8547 = vst [vmem:[#allocation37_spill] sm:$0xff] %v7171_v21  ;;  %8548 = vst [vmem:[#allocation44_spill] sm:$0xff] %v7175_v20  ;;  %v7186_v11 = vadd.f32 %v4034_v12, %v4016_v16  ;;  %v7200_v55 = vmul.f32 %v8559_v49, %v8558_v24  ;;  %v7204_v28 = vadd.f32 %v8562_v52, %v8561_v39  ;;  %v8565_v16 = vld [vmem:[#allocation88_spill] sm:$0xff]  ;;  %v8569_v49 = vld [vmem:[#allocation85_spill] sm:$0xff] }
 0x2dd   : > { %8555 = vst [vmem:[#allocation77_spill] sm:$0xff] %v7190_v31  ;;  %8556 = vst [vmem:[#allocation49_spill] sm:$0xff] %v7194_v23  ;;  %v2398_v12 = vrot.slane %v7171_v21, %v8505_v3  ;;  %v3108_v0 = vadd.f32 %v3105_v1, %v3090_v38  ;;  %v2491_v60 = vrot.slane %v7175_v20, %v8505_v3  ;;  %v8570_v52 = vld [vmem:[#allocation117_spill] sm:$0xff] }
 0x2de   : > { %8554 = vst [vmem:[#allocation84_spill] sm:$0xff] %v7186_v11  ;;  %8560 = vst [vmem:[#allocation38_spill] sm:$0xff] %v7200_v55  ;;  %v3123_v8 = vmul.f32 %v3117_v32, %v8564_v46  ;;  %v3141_v33 = vmul.f32 %v3135_v61, %v8565_v16  ;;  %v2428_v48 = vrot.slane %v7190_v31, %v8505_v3  ;;  %v7234_v11 = vpop.permute.xlu0 %3250  ;;  %v8574_v32 = vld [vmem:[#allocation118_spill] sm:$0xff] }
 0x2df   : > { %8563 = vst [vmem:[#allocation31_spill] sm:$0xff] %v7204_v28  ;;  %v2752_v53 = vrot.slane %v7171_v21, %v8566_v63  ;;  %v2824_v43 = vrot.slane %v7175_v20, %v8566_v63  ;;  %v3159_v40 = vmul.f32 %v3153_v29, %v8567_v4  ;;  %v7220_v38 = vmul.f32 %v2398_v12, %v8480_v57  ;;  %v8571_v29 = vld [vmem:[#allocation112_spill] sm:$0xff]  ;;  %v8597_v21 = vld [vmem:[#allocation130_spill] sm:$0xff] }
 0x2e0   : > { %v2512_v1 = vrot.slane %v7194_v23, %v8505_v3  ;;  %v3126_v24 = vadd.f32 %v3123_v8, %v3108_v0  ;;  %v3171_v39 = vrot.slane %v8569_v49, %v5639_v47  ;;  %v3189_v46 = vrot.slane %v8570_v52, %v5639_v47  ;;  %v8575_v0 = vld [vmem:[#allocation119_spill] sm:$0xff]  ;;  %v8576_v49 = vld [vmem:[#allocation120_spill] sm:$0xff] }
 0x2e1   : > { %8568 = vst [vmem:[#allocation52_spill] sm:$0xff] %v7220_v38  ;;  %v3207_v12 = vrot.slane %v8571_v29, %v5639_v47  ;;  %v7237_v28 = vmul.f32 %v2491_v60, %v8485_v19  ;;  %v3225_v61 = vrot.slane %v8574_v32, %v5639_v47  ;;  %v3243_v8 = vrot.slane %v8575_v0, %v5639_v47  ;;  %v8581_v0 = vld [vmem:[#allocation57_spill] sm:$0xff] }
 0x2e2   : > { %v3276_v37 = vrot.slane %v8576_v49, %v5639_v47  ;;  %v7248_v52 = vmul.f32 %v2752_v53, %v8490_v50  ;;  %v7251_v29 = vmul.f32 %v2824_v43, %v8491_v7  ;;  %v3144_v55 = vadd.f32 %v3141_v33, %v3126_v24  ;;  %v8582_v49 = vld [vmem:[#allocation26_spill] sm:$0xff]  ;;  %v8586_v24 = vld [vmem:[#allocation92_spill] sm:$0xff] }
 0x2e3   : > { %8572 = vst [vmem:[#allocation45_spill] sm:$0xff] %v7237_v28  ;;  %v3258_v60 = vsel %vm3256_vm1, %v7234_v11, %v7239_v56  ;;  %v7257_v20 = vmul.f32 %v2428_v48, %v8490_v50  ;;  %v7260_v32 = vmul.f32 %v2512_v1, %v8491_v7  ;;  %v3177_v28 = vmul.f32 %v3171_v39, %v8581_v0  ;;  %v8589_v56 = vld [vmem:[#allocation58_spill] sm:$0xff] }
 0x2e4   : > { %8577 = vst [vmem:[#allocation106_spill] sm:$0xff] %v7248_v52  ;;  %8578 = vst [vmem:[#allocation16_spill] sm:$0xff] %v7251_v29  ;;  %v627_v53 = vadd.f32 %v8583_v30, %v8582_v49  ;;  %v3162_v26 = vadd.f32 %v3159_v40, %v3144_v55  ;;  %v8584_v52 = vld [vmem:[#allocation53_spill] sm:$0xff]  ;;  %v8585_v29 = vld [vmem:[#allocation54_spill] sm:$0xff]  ;;  %v7269_v5 = vmul.f32 %v8587_v59, %v8586_v24  ;;  %v7282_v49 = vpop.permute.xlu1 %3351 }
 0x2e5   : > { %8579 = vst [vmem:[#allocation35_spill] sm:$0xff] %v7257_v20  ;;  %8580 = vst [vmem:[#allocation87_spill] sm:$0xff] %v7260_v32  ;;  %v3195_v43 = vmul.f32 %v3189_v46, %v8584_v52  ;;  %v3213_v33 = vmul.f32 %v3207_v12, %v8585_v29  ;;  %v3231_v50 = vmul.f32 %v3225_v61, %v8589_v56  ;;  %v8591_v52 = vld [vmem:[#allocation99_spill] sm:$0xff]  ;;  %v8592_v61 = vld [vmem:[#allocation72_spill] sm:$0xff] }
 0x2e6   : > { %8588 = vst [vmem:[#allocation42_spill] sm:$0xff] %v7269_v5  ;;  %v3264_v48 = vmul.f32 %v3258_v60, %v3243_v8  ;;  %v3297_v1 = vmul.f32 %v8590_v42, %v3276_v37  ;;  %v4406_v32 = vclamps-f32 %v627_v53, 1.0  ;;  %v3180_v57 = vadd.f32 %v3177_v28, %v3162_v26  ;;  %v8593_v60 = vld [vmem:[#allocation136_spill] sm:$0xff]  ;;  %8594 = vst [vmem:[#allocation124_spill] sm:$0xff] %v7282_v49 }
 0x2e7   : > { %v2676_v30 = vrot.slane %v7269_v5, %v8505_v3  ;;  %v2982_v55 = vrot.slane %v7269_v5, %v8566_v63  ;;  %v7280_v42 = vrot.slane %v8593_v60, 1  ;;  %v8595_v53 = vld [vmem:[#allocation140_spill] sm:$0xff] }
 0x2e8   : > { %v4427_v40 = vadd.f32 1.0, %v4406_v32  ;;  %v3700_v39 = vand.u32 2147483647, %v4406_v32  ;;  %v4430_v46 = vadd.f32 -1.0, %v4406_v32  ;;  %v4433_v12 = vadd.f32 -2.0, %v4406_v32  ;;  %v8596_v20 = vld [vmem:[#allocation104_spill] sm:$0xff] }
 0x2e9   : > { %v3198_v59 = vadd.f32 %v3195_v43, %v3180_v57  ;;  %v2697_v0 = vmul.f32 %v8591_v52, %v2676_v30  ;;  %v3003_v8 = vmul.f32 %v8592_v61, %v2982_v55  ;;  %v3765_v24 = vrot.slane %v8595_v53, 1  ;;  %v8598_v57 = vld [vmem:[#allocation121_spill] sm:$0xff]  ;;  %v7289_v30 = vpop.permute.xlu0 %3349 }
 0x2ea   : > { %v3691_v26 = vand.u32 2147483647, %v4427_v40  ;;  %v3703_v37 = vsub.f32 1.0, %v3700_v39  ;;  %v3712_v28 = vand.u32 2147483647, %v4430_v46  ;;  %v3630_v43 = vrot.slane %v8598_v57, %v8280_v9  ;;  %8599 = vst [vmem:[#allocation115_spill] sm:$0xff] %v7289_v30 }
 0x2eb   : > { %v3216_v51 = vadd.f32 %v3213_v33, %v3198_v59  ;;  %v2700_v36 = vadd.f32 %v2697_v0, %v8596_v20  ;;  %v3006_v32 = vadd.f32 %v3003_v8, %v8597_v21  ;;  %v3724_v39 = vand.u32 2147483647, %v4433_v12 }
 0x2ec   : > { %v3694_v55 = vsub.f32 1.0, %v3691_v26  ;;  %v7291_v18 = vmax.f32 %v3703_v37, 0.0  ;;  %v3715_v40 = vsub.f32 1.0, %v3712_v28  ;;  %v7296_v33 = vsel %vm3355_vm2, %v7289_v30, %v7282_v49  ;;  %v8617_v30 = vld [vmem:[#allocation129_spill] sm:$0xff] }
 0x2ed   : > { %v3234_v46 = vadd.f32 %v3231_v50, %v3216_v51  ;;  %2703 = vst [vmem:[#allocation3 + $0x8] sm:$0xf] %v2700_v36  ;;  %v3012_v38 = vrot.slane %v3006_v32, 4  ;;  %v3741_v21 = vmul.f32 %v7280_v42, %v8593_v60  ;;  %v3771_v12 = vmul.f32 %v3765_v24, %v8593_v60 }
 0x2ee   : > { %v7300_v20 = vmax.f32 %v3694_v55, 0.0  ;;  %v7302_v59 = vmax.f32 %v3715_v40, 0.0  ;;  %v7305_v0 = vrot.slane %v7291_v18, 1  ;;  %v3342_v36 = vrot.slane %v7269_v5, %v5639_v47 }
 0x2ef   : > { %v3267_v51 = vadd.f32 %v3264_v48, %v3234_v46  ;;  %3018 = vst [vmem:[#allocation3 + $0x8] sm:$0xf0] %v3012_v38  ;;  %v3750_v50 = vrot.slane %v3741_v21, %v8505_v3  ;;  %v3852_v8 = vmul.f32 %v7280_v42, %v8595_v53  ;;  %v3727_v26 = vsub.f32 1.0, %v3724_v39 }
 0x2f0   : > { %8600 = vst [vmem:[#allocation139_spill] sm:$0xff] %v7302_v59  ;;  %8601 = vst [vmem:[#allocation32_spill] sm:$0xff] %v7305_v0  ;;  %v3772_v37 = vmul.f32 %v7305_v0, %v7300_v20  ;;  %v7316_v28 = vrot.slane %v7302_v59, 1  ;;  %v3780_v32 = vrot.slane %v3771_v12, %v8505_v3  ;;  %v3636_v38 = vmul.f32 %v3630_v43, %v7296_v33  ;;  %v8606_v12 = vld [vmem:[#allocation142_spill] sm:$0xff] }
 0x2f1   : > { %v3300_v60 = vadd.f32 %v3297_v1, %v3267_v51  ;;  %v3756_v48 = vmul.f32 %v3750_v50, %v8538_v10  ;;  %v3873_v57 = vmul.f32 %v3765_v24, %v8595_v53  ;;  %v8603_v55 = vrot.slane %v7190_v31, %v8566_v63  ;;  %v8605_v10 = vld [vmem:[#allocation128_spill] sm:$0xff] }
 0x2f2   : > { %8602 = vst [vmem:[#allocation131_spill] sm:$0xff] %v7316_v28  ;;  %v8604_v39 = vrot.slane %v7194_v23, %v8566_v63  ;;  %v3802_v1 = vmul.f32 %v7316_v28, %v7300_v20  ;;  %v3786_v43 = vmul.f32 %v3780_v32, %v8542_v41  ;;  %v3363_v53 = vmul.f32 %v7296_v33, %v3342_v36  ;;  %v8609_v32 = vld [vmem:[#allocation36_spill] sm:$0xff] }
 0x2f3   : > { %v7326_v40 = vmul.f32 %v8603_v55, %v8494_v45  ;;  %v3333_v21 = vadd.f32 %v8605_v10, %v3300_v60  ;;  %v7340_v51 = vadd.f32 %v3636_v38, %v8606_v12  ;;  %v3861_v45 = vrot.slane %v3852_v8, %v8505_v3  ;;  %v8610_v60 = vld [vmem:[#allocation135_spill] sm:$0xff] }
 0x2f4   : > { %v7332_v46 = vmul.f32 %v8604_v39, %v8495_v34  ;;  %v7343_v50 = vmax.f32 %v3727_v26, 0.0  ;;  %v3784_v55 = vrot.slane %v3772_v37, %v8505_v3  ;;  %v7348_v39 = vmul.f32 %v7305_v0, %v7291_v18  ;;  %v8611_v26 = vld [vmem:[#allocation19_spill] sm:$0xff] }
 0x2f5   : > { %8607 = vst [vmem:[#allocation71_spill] sm:$0xff] %v7340_v51  ;;  %v3789_v49 = vadd.f32 %v3786_v43, %v3756_v48  ;;  %v3366_v5 = vadd.f32 %v3363_v53, %v3333_v21  ;;  %v3882_v41 = vrot.slane %v3873_v57, %v8505_v3  ;;  %v3903_v36 = vrot.slane %v8609_v32, %v8505_v3  ;;  %v8612_v37 = vld [vmem:[#allocation147_spill] sm:$0xff]  ;;  %v8614_v43 = vld [vmem:[#allocation137_spill] sm:$0xff]  ;;  %v8616_v32 = vld [vmem:[#allocation22_spill] sm:$0xff] }
 0x2f6   : > { %8608 = vst [vmem:[#allocation78_spill] sm:$0xff] %v7348_v39  ;;  %v3936_v38 = vmul.f32 %v7280_v42, %v8610_v60  ;;  %v3814_v8 = vrot.slane %v3802_v1, %v8505_v3  ;;  %v3924_v12 = vrot.slane %v8612_v37, %v8505_v3  ;;  %v3957_v51 = vmul.f32 %v3765_v24, %v8610_v60  ;;  %v8615_v53 = vld [vmem:[#allocation143_spill] sm:$0xff] }
 0x2f7   : > { %v3819_v10 = vadd.f32 %v8611_v26, %v3789_v49  ;;  %v7362_v48 = vmul.f32 %v7316_v28, %v7291_v18  ;;  %3369 = vst [vmem:[#allocation3 + $0x20] sm:$0xf] %v3366_v5  ;;  %v3867_v57 = vmul.f32 %v3861_v45, %v8565_v16  ;;  %v3978_v21 = vmul.f32 %v8614_v43, %v8610_v60 }
 0x2f8   : > { %v3999_v1 = vmul.f32 %v8615_v53, %v8610_v60  ;;  %v4020_v26 = vmul.f32 %v7280_v42, %v8616_v32  ;;  %v4041_v37 = vmul.f32 %v3765_v24, %v8616_v32  ;;  %v3023_v28 = vrot.slane %v8617_v30, %v5639_v47  ;;  %v8621_v53 = vld [vmem:[#allocation50_spill] sm:$0xff] }
 0x2f9   : > { %8613 = vst [vmem:[#allocation126_spill] sm:$0xff] %v7362_v48  ;;  %v3849_v49 = vadd.f32 %v7184_v54, %v3819_v10  ;;  %v7376_v5 = vmul.f32 %v3784_v55, %v8485_v19  ;;  %v3888_v16 = vmul.f32 %v3882_v41, %v8567_v4  ;;  %v3945_v45 = vrot.slane %v3936_v38, %v8505_v3  ;;  %v8620_v10 = vld [vmem:[#allocation46_spill] sm:$0xff]  ;;  %v8622_v55 = vld [vmem:[#allocation75_spill] sm:$0xff]  ;;  %v8623_v4 = vld [vmem:[#allocation132_spill] sm:$0xff] }
 0x2fa   : > { %v3966_v43 = vrot.slane %v3957_v51, %v8505_v3  ;;  %v7382_v60 = vmul.f32 %v3814_v8, %v8491_v7  ;;  %v3909_v42 = vmul.f32 %v3903_v36, %v8620_v10  ;;  %v3930_v24 = vmul.f32 %v3924_v12, %v8621_v53  ;;  %v8663_v48 = vld [vmem:[#allocation87_spill] sm:$0xff] }
 0x2fb   : > { %8618 = vst [vmem:[#allocation86_spill] sm:$0xff] %v7376_v5  ;;  %v3870_v54 = vadd.f32 %v3867_v57, %v3849_v49  ;;  %v3987_v32 = vrot.slane %v3978_v21, %v8505_v3  ;;  %v4008_v30 = vrot.slane %v3999_v1, %v8505_v3  ;;  %v3032_v0 = vmul.f32 %v3023_v28, %v8622_v55  ;;  %v8624_v57 = vld [vmem:[#allocation100_spill] sm:$0xff]  ;;  %v8625_v21 = vld [vmem:[#allocation67_spill] sm:$0xff]  ;;  %v8627_v55 = vld [vmem:[#allocation133_spill] sm:$0xff] }
 0x2fc   : > { %8619 = vst [vmem:[#allocation12_spill] sm:$0xff] %v7382_v60  ;;  %v3041_v41 = vrot.slane %v8623_v4, %v5639_v47  ;;  %v4029_v51 = vrot.slane %v4020_v26, %v8505_v3  ;;  %v4050_v8 = vrot.slane %v4041_v37, %v8505_v3  ;;  %v3059_v49 = vrot.slane %v8624_v57, %v5639_v47  ;;  %v8626_v1 = vld [vmem:[#allocation20_spill] sm:$0xff]  ;;  %v8628_v26 = vld [vmem:[#allocation134_spill] sm:$0xff]  ;;  %v8629_v37 = vld [vmem:[#allocation101_spill] sm:$0xff] }
 0x2fd   : > { %v3891_v38 = vadd.f32 %v3888_v16, %v3870_v54  ;;  %v3951_v36 = vmul.f32 %v3945_v45, %v8585_v29  ;;  %v3972_v12 = vmul.f32 %v3966_v43, %v8589_v56  ;;  %v3077_v28 = vrot.slane %v8626_v1, %v5639_v47  ;;  %v8630_v43 = vld [vmem:[#allocation41_spill] sm:$0xff] }
 0x2fe   : > { %v3050_v53 = vmul.f32 %v3041_v41, %v8625_v21  ;;  %v3095_v16 = vrot.slane %v8627_v55, %v5639_v47  ;;  %v3113_v54 = vrot.slane %v8628_v26, %v5639_v47  ;;  %v3131_v4 = vrot.slane %v8629_v37, %v5639_v47  ;;  %v8632_v26 = vld [vmem:[#allocation69_spill] sm:$0xff]  ;;  %v8633_v37 = vld [vmem:[#allocation138_spill] sm:$0xff] }
 0x2ff   : > { %v3912_v10 = vadd.f32 %v3909_v42, %v3891_v38  ;;  %v3993_v57 = vmul.f32 %v3987_v32, %v8591_v52  ;;  %v3068_v56 = vmul.f32 %v3059_v49, %v8503_v27  ;;  %v3149_v45 = vrot.slane %v8630_v43, %v5639_v47  ;;  %v8631_v38 = vld [vmem:[#allocation123_spill] sm:$0xff]  ;;  %v8634_v52 = vld [vmem:[#allocation141_spill] sm:$0xff] }
 0x300   : > { %v3053_v29 = vadd.f32 %v3050_v53, %v3032_v0  ;;  %v4014_v42 = vmul.f32 %v4008_v30, %v8592_v61  ;;  %v4035_v21 = vmul.f32 %v4029_v51, %v8631_v38  ;;  %v4056_v1 = vmul.f32 %v4050_v8, %v7296_v33  ;;  %v8635_v32 = vld [vmem:[#allocation91_spill] sm:$0xff]  ;;  %v8636_v53 = vld [vmem:[#allocation14_spill] sm:$0xff]  ;;  %v3249_v30 = vpop.permute.xlu0 %3248  ;;  %v8639_v43 = vld [vmem:[#allocation145_spill] sm:$0xff] }
 0x301   : > { %v3933_v41 = vadd.f32 %v3930_v24, %v3912_v10  ;;  %v3086_v60 = vmul.f32 %v3077_v28, %v8632_v26  ;;  %v3167_v59 = vrot.slane %v8633_v37, %v5639_v47  ;;  %v3185_v0 = vrot.slane %v8634_v52, %v5639_v47  ;;  %v8637_v8 = vld [vmem:[#allocation98_spill] sm:$0xff]  ;;  %v8638_v10 = vld [vmem:[#allocation144_spill] sm:$0xff] }
 0x302   : > { %v3071_v55 = vadd.f32 %v3068_v56, %v3053_v29  ;;  %v3104_v49 = vmul.f32 %v3095_v16, %v8635_v32  ;;  %v3122_v24 = vmul.f32 %v3113_v54, %v8636_v53  ;;  %v3140_v61 = vmul.f32 %v3131_v4, %v8520_v13  ;;  %v8640_v13 = vld [vmem:[#allocation59_spill] sm:$0xff] }
 0x303   : > { %v3954_v27 = vadd.f32 %v3951_v36, %v3933_v41  ;;  %v3158_v33 = vmul.f32 %v3149_v45, %v8525_v17  ;;  %v3203_v28 = vrot.slane %v8637_v8, %v5639_v47  ;;  %v3221_v29 = vrot.slane %v8638_v10, %v5639_v47 }
 0x304   : > { %v3089_v51 = vadd.f32 %v3086_v60, %v3071_v55  ;;  %v3239_v36 = vrot.slane %v8639_v43, %v5639_v47  ;;  %v2320_v16 = vrot.slane %v7157_v22, 1  ;;  %v2350_v54 = vrot.slane %v7153_v25, 1  ;;  %v8641_v60 = vld [vmem:[#allocation96_spill] sm:$0xff] }
 0x305   : > { %v3975_v56 = vadd.f32 %v3972_v12, %v3954_v27  ;;  %v3176_v4 = vmul.f32 %v3167_v59, %v8640_v13  ;;  %v3194_v38 = vmul.f32 %v3185_v0, %v8641_v60  ;;  %v3257_v17 = vsel %vm3256_vm1, %v3249_v30, %v7234_v11  ;;  %v8649_v13 = vld [vmem:[#allocation76_spill] sm:$0xff] }
 0x306   : > { %v3107_v41 = vadd.f32 %v3104_v49, %v3089_v51  ;;  %v7435_v55 = vmul.f32 %v2320_v16, %v7157_v22  ;;  %v7438_v12 = vmul.f32 %v2350_v54, %v7157_v22  ;;  %v7441_v26 = vmul.f32 %v2320_v16, %v7153_v25 }
 0x307   : > { %v3996_v45 = vadd.f32 %v3993_v57, %v3975_v56  ;;  %v3212_v52 = vmul.f32 %v3203_v28, %v8528_v35  ;;  %v7445_v59 = vmul.f32 %v2350_v54, %v7153_v25  ;;  %v7448_v0 = vmul.f32 %v2320_v16, %v7148_v44  ;;  %v3288_v57 = vpop.permute.xlu1 %3287 }
 0x308   : > { %8642 = vst [vmem:[#allocation94_spill] sm:$0xff] %v7441_v26  ;;  %v3125_v37 = vadd.f32 %v3122_v24, %v3107_v41  ;;  %v2338_v27 = vrot.slane %v7435_v55, %v8505_v3  ;;  %v2368_v22 = vrot.slane %v7438_v12, %v8505_v3  ;;  %v7455_v32 = vmul.f32 %v2350_v54, %v7148_v44  ;;  %v8648_v41 = vld [vmem:[#allocation52_spill] sm:$0xff] }
 0x309   : > { %8643 = vst [vmem:[#allocation95_spill] sm:$0xff] %v7445_v59  ;;  %v4017_v11 = vadd.f32 %v4014_v42, %v3996_v45  ;;  %v3230_v35 = vmul.f32 %v3221_v29, %v8531_v15  ;;  %v3263_v53 = vmul.f32 %v3257_v17, %v3239_v36  ;;  %v7460_v25 = vmul.f32 %v7160_v14, %v7148_v44  ;;  %v8650_v45 = vld [vmem:[#allocation37_spill] sm:$0xff] }
 0x30a   : > { %v3143_v49 = vadd.f32 %v3140_v61, %v3125_v37  ;;  %v2341_v42 = vmul.f32 %v2338_v27, %v8475_v58  ;;  %v2371_v30 = vmul.f32 %v2368_v22, %v8479_v62  ;;  %v2449_v51 = vrot.slane %v7441_v26, %v8505_v3  ;;  %v8644_v61 = vld [vmem:[#allocation79_spill] sm:$0xff] }
 0x30b   : > { %v4038_v24 = vadd.f32 %v4035_v21, %v4017_v11  ;;  %v2470_v28 = vrot.slane %v7445_v59, %v8505_v3  ;;  %v7470_v15 = vmul.f32 %v7165_v2, %v7148_v44  ;;  %v7474_v10 = vsel %vm3289_vm4, %v8644_v61, %v3288_v57  ;;  %v8651_v11 = vld [vmem:[#allocation23_spill] sm:$0xff]  ;;  %v8655_v61 = vld [vmem:[#allocation93_spill] sm:$0xff] }
 0x30c   : > { %v3161_v8 = vadd.f32 %v3158_v33, %v3143_v49  ;;  %8645 = vst [vmem:[#allocation56_spill] sm:$0xff] %v7474_v10  ;;  %v2374_v58 = vadd.f32 %v2371_v30, %v2341_v42  ;;  %v2533_v29 = vrot.slane %v7448_v0, %v8505_v3  ;;  %v2554_v33 = vrot.slane %v7455_v32, %v8505_v3  ;;  %v8652_v27 = vld [vmem:[#allocation35_spill] sm:$0xff]  ;;  %v8653_v49 = vld [vmem:[#allocation21_spill] sm:$0xff]  ;;  %v8654_v30 = vld [vmem:[#allocation24_spill] sm:$0xff] }
 0x30d   : > { %v7476_v21 = vadd.f32 %v4056_v1, %v4038_v24  ;;  %v7483_v43 = vmul.f32 %v2320_v16, %v7155_v6  ;;  %v7486_v44 = vmul.f32 %v2350_v54, %v7155_v6  ;;  %v2716_v36 = vrot.slane %v7435_v55, %v8566_v63 }
 0x30e   : > { %v3179_v56 = vadd.f32 %v3176_v4, %v3161_v8  ;;  %v2404_v1 = vadd.f32 %v8648_v41, %v2374_v58  ;;  %v2452_v60 = vmul.f32 %v2449_v51, %v8649_v13  ;;  %v2734_v17 = vrot.slane %v7438_v12, %v8566_v63 }
 0x30f   : > { %8646 = vst [vmem:[#allocation27_spill] sm:$0xff] %v7476_v21  ;;  %8647 = vst [vmem:[#allocation116_spill] sm:$0xff] %v7486_v44  ;;  %v3418_v37 = vrot.slane %v8650_v45, %v8280_v9  ;;  %v2473_v16 = vmul.f32 %v2470_v28, %v8651_v11  ;;  %v2575_v54 = vrot.slane %v7460_v25, %v8505_v3  ;;  %v8660_v21 = vld [vmem:[#allocation61_spill] sm:$0xff] }
 0x310   : > { %v3197_v4 = vadd.f32 %v3194_v38, %v3179_v56  ;;  %v2719_v57 = vmul.f32 %v2716_v36, %v8479_v62  ;;  %v2434_v22 = vadd.f32 %v8652_v27, %v2404_v1  ;;  %v2536_v24 = vmul.f32 %v2533_v29, %v8653_v49  ;;  %v8656_v1 = vld [vmem:[#allocation18_spill] sm:$0xff]  ;;  %v8657_v27 = vld [vmem:[#allocation51_spill] sm:$0xff]  ;;  %v8662_v45 = vld [vmem:[#allocation45_spill] sm:$0xff] }
 0x311   : > { %v2596_v42 = vrot.slane %v7470_v15, %v8505_v3  ;;  %v2737_v51 = vmul.f32 %v2734_v17, %v8654_v30  ;;  %v2557_v58 = vmul.f32 %v2554_v33, %v8655_v61  ;;  %v2617_v38 = vrot.slane %v7483_v43, %v8505_v3 }
 0x312   : > { %v3215_v8 = vadd.f32 %v3212_v52, %v3197_v4  ;;  %v2638_v28 = vrot.slane %v7486_v44, %v8505_v3  ;;  %v2455_v56 = vadd.f32 %v2452_v60, %v2434_v22  ;;  %v2788_v36 = vrot.slane %v7441_v26, %v8566_v63  ;;  %v8658_v60 = vld [vmem:[#allocation106_spill] sm:$0xff] }
 0x313   : > { %v2740_v62 = vadd.f32 %v2737_v51, %v2719_v57  ;;  %v2806_v29 = vrot.slane %v7445_v59, %v8566_v63  ;;  %v2578_v17 = vmul.f32 %v2575_v54, %v8656_v1  ;;  %v2860_v52 = vrot.slane %v7448_v0, %v8566_v63  ;;  %v8659_v51 = vld [vmem:[#allocation60_spill] sm:$0xff] }
 0x314   : > { %v3233_v41 = vadd.f32 %v3230_v35, %v3215_v8  ;;  %v2878_v33 = vrot.slane %v7455_v32, %v8566_v63  ;;  %v2476_v4 = vadd.f32 %v2473_v16, %v2455_v56  ;;  %v2599_v30 = vmul.f32 %v2596_v42, %v8657_v27 }
 0x315   : > { %v2758_v57 = vadd.f32 %v8658_v60, %v2740_v62  ;;  %v2896_v22 = vrot.slane %v7460_v25, %v8566_v63  ;;  %v2620_v2 = vmul.f32 %v2617_v38, %v8659_v51  ;;  %v7525_v35 = vmul.f32 %v2638_v28, %v8660_v21 }
 0x316   : > { %v2914_v54 = vrot.slane %v7470_v15, %v8566_v63  ;;  %v2932_v8 = vrot.slane %v7483_v43, %v8566_v63  ;;  %v2497_v16 = vadd.f32 %v8662_v45, %v2476_v4  ;;  %v2791_v56 = vmul.f32 %v2788_v36, %v8651_v11  ;;  %v8664_v45 = vld [vmem:[#allocation55_spill] sm:$0xff] }
 0x317   : > { %8661 = vst [vmem:[#allocation97_spill] sm:$0xff] %v7525_v35  ;;  %v2776_v42 = vadd.f32 %v7326_v40, %v2758_v57  ;;  %v2809_v62 = vmul.f32 %v2806_v29, %v8485_v19  ;;  %v3266_v60 = vadd.f32 %v3263_v53, %v3233_v41  ;;  %v2863_v38 = vmul.f32 %v2860_v52, %v8655_v61 }
 0x318   : > { %v2881_v28 = vmul.f32 %v2878_v33, %v8656_v1  ;;  %v3382_v5 = vrot.slane %v7435_v55, %v8280_v9  ;;  %v2518_v34 = vadd.f32 %v8663_v48, %v2497_v16  ;;  %v2899_v35 = vmul.f32 %v2896_v22, %v8657_v27 }
 0x319   : > { %v2794_v39 = vadd.f32 %v2791_v56, %v2776_v42  ;;  %v3400_v40 = vrot.slane %v7438_v12, %v8280_v9  ;;  %v2917_v36 = vmul.f32 %v2914_v54, %v8664_v45  ;;  %v2935_v29 = vmul.f32 %v2932_v8, %v8660_v21  ;;  %v8665_v54 = vld [vmem:[#allocation44_spill] sm:$0xff]  ;;  %v8667_v56 = vld [vmem:[#allocation38_spill] sm:$0xff] }
 0x31a   : > { %v2950_v53 = vrot.slane %v7486_v44, %v8566_v63  ;;  %v3385_v41 = vmul.f32 %v3382_v5, %v8649_v13  ;;  %v2539_v52 = vadd.f32 %v2536_v24, %v2518_v34  ;;  %v3436_v48 = vrot.slane %v7190_v31, %v8280_v9  ;;  %v8666_v34 = vld [vmem:[#allocation16_spill] sm:$0xff] }
 0x31b   : > { %v2812_v33 = vadd.f32 %v2809_v62, %v2794_v39  ;;  %v3403_v4 = vmul.f32 %v3400_v40, %v8651_v11  ;;  %v3454_v57 = vrot.slane %v7441_v26, %v8280_v9  ;;  %v3472_v22 = vrot.slane %v7445_v59, %v8280_v9  ;;  %v8668_v40 = vld [vmem:[#allocation63_spill] sm:$0xff]  ;;  %v3348_v59 = vpop.permute.xlu1 %3347 }
 0x31c   : > { %v3490_v8 = vrot.slane %v8665_v54, %v8280_v9  ;;  %v3508_v16 = vrot.slane %v7194_v23, %v8280_v9  ;;  %v2560_v5 = vadd.f32 %v2557_v58, %v2539_v52  ;;  %v3421_v42 = vmul.f32 %v3418_v37, %v8485_v19 }
 0x31d   : > { %v2830_v39 = vadd.f32 %v8666_v34, %v2812_v33  ;;  %v3406_v24 = vadd.f32 %v3403_v4, %v3385_v41  ;;  %v7562_v62 = vadd.f32 %v8667_v56, %v3266_v60  ;;  %v2953_v26 = vmul.f32 %v2950_v53, %v8668_v40 }
 0x31e   : > { %v3526_v54 = vrot.slane %v7448_v0, %v8280_v9  ;;  %v2581_v31 = vadd.f32 %v2578_v17, %v2560_v5  ;;  %v3439_v52 = vmul.f32 %v3436_v48, %v8491_v7  ;;  %v3457_v41 = vmul.f32 %v3454_v57, %v8653_v49 }
 0x31f   : > { %v2848_v23 = vadd.f32 %v7332_v46, %v2830_v39  ;;  %v3424_v58 = vadd.f32 %v3421_v42, %v3406_v24  ;;  %v3475_v37 = vmul.f32 %v3472_v22, %v8655_v61  ;;  %v3493_v60 = vmul.f32 %v3490_v8, %v8656_v1  ;;  %v8670_v24 = vld [vmem:[#allocation82_spill] sm:$0xff] }
 0x320   : > { %v3511_v53 = vmul.f32 %v3508_v16, %v8657_v27  ;;  %v2602_v33 = vadd.f32 %v2599_v30, %v2581_v31  ;;  %v3544_v56 = vrot.slane %v7455_v32, %v8280_v9  ;;  %v3529_v17 = vmul.f32 %v3526_v54, %v8659_v51 }
 0x321   : > { %v2866_v4 = vadd.f32 %v2863_v38, %v2848_v23  ;;  %v3442_v34 = vadd.f32 %v3439_v52, %v3424_v58  ;;  %v3562_v46 = vrot.slane %v7460_v25, %v8280_v9  ;;  %v3580_v7 = vrot.slane %v7470_v15, %v8280_v9 }
 0x322   : > { %v7584_v48 = vmul.f32 %v7160_v14, %v7155_v6  ;;  %v3598_v31 = vrot.slane %v7483_v43, %v8280_v9  ;;  %v3736_v23 = vrot.slane %v7300_v20, 1  ;;  %v2623_v30 = vadd.f32 %v2620_v2, %v2602_v33 }
 0x323   : > { %v2884_v57 = vadd.f32 %v2881_v28, %v2866_v4  ;;  %v3460_v22 = vadd.f32 %v3457_v41, %v3442_v34  ;;  %v7594_v8 = vrot.slane %v7343_v50, 1  ;;  %v3547_v28 = vmul.f32 %v3544_v56, %v8660_v21 }
 0x324   : > { %v2659_v38 = vrot.slane %v7584_v48, %v8505_v3  ;;  %v2968_v54 = vrot.slane %v7584_v48, %v8566_v63  ;;  %v3742_v5 = vmul.f32 %v3736_v23, %v7300_v20  ;;  %v3565_v39 = vmul.f32 %v3562_v46, %v8668_v40 }
 0x325   : > { %8669 = vst [vmem:[#allocation74_spill] sm:$0xff] %v7594_v8  ;;  %v2902_v16 = vadd.f32 %v2899_v35, %v2884_v57  ;;  %v3478_v14 = vadd.f32 %v3475_v37, %v3460_v22  ;;  %v3583_v42 = vmul.f32 %v3580_v7, %v8670_v24  ;;  %v3832_v2 = vmul.f32 %v7594_v8, %v7300_v20  ;;  %v8671_v37 = vld [vmem:[#allocation97_spill] sm:$0xff]  ;;  %v8673_v22 = vld [vmem:[#allocation39_spill] sm:$0xff] }
 0x326   : > { %v3853_v58 = vmul.f32 %v3736_v23, %v7291_v18  ;;  %v7604_v33 = vmul.f32 %v3598_v31, %v7474_v10  ;;  %v3754_v35 = vrot.slane %v3742_v5, %v8505_v3  ;;  %v2644_v4 = vadd.f32 %v8671_v37, %v2623_v30 }
 0x327   : > { %v2920_v52 = vadd.f32 %v2917_v36, %v2902_v16  ;;  %v3496_v41 = vadd.f32 %v3493_v60, %v3478_v14  ;;  %v2662_v34 = vmul.f32 %v2659_v38, %v8668_v40  ;;  %v2971_v56 = vmul.f32 %v2968_v54, %v8670_v24  ;;  %v8672_v36 = vld [vmem:[#allocation78_spill] sm:$0xff] }
 0x328   : > { %v3844_v46 = vrot.slane %v3832_v2, %v8505_v3  ;;  %v3757_v20 = vmul.f32 %v3754_v35, %v8651_v11  ;;  %v3886_v60 = vrot.slane %v8672_v36, %v8505_v3  ;;  %v3865_v16 = vrot.slane %v3853_v58, %v8505_v3  ;;  %v8674_v14 = vld [vmem:[#allocation126_spill] sm:$0xff]  ;;  %v8677_v35 = vld [vmem:[#allocation32_spill] sm:$0xff] }
 0x329   : > { %v2938_v7 = vadd.f32 %v2935_v29, %v2920_v52  ;;  %v3514_v57 = vadd.f32 %v3511_v53, %v3496_v41  ;;  %v3907_v30 = vrot.slane %v8674_v14, %v8505_v3  ;;  %v3916_v38 = vmul.f32 %v7594_v8, %v7291_v18  ;;  %v8675_v2 = vld [vmem:[#allocation86_spill] sm:$0xff]  ;;  %v8676_v53 = vld [vmem:[#allocation139_spill] sm:$0xff]  ;;  %v8680_v18 = vld [vmem:[#allocation12_spill] sm:$0xff] }
 0x32a   : > { %v3847_v31 = vmul.f32 %v3844_v46, %v8673_v22  ;;  %v3790_v29 = vadd.f32 %v8675_v2, %v3757_v20  ;;  %v3937_v52 = vmul.f32 %v3736_v23, %v8676_v53  ;;  %v3958_v37 = vmul.f32 %v8677_v35, %v8676_v53  ;;  %v8678_v46 = vld [vmem:[#allocation131_spill] sm:$0xff] }
 0x32b   : > { %v2956_v54 = vadd.f32 %v2953_v26, %v2938_v7  ;;  %v3532_v5 = vadd.f32 %v3529_v17, %v3514_v57  ;;  %v3928_v41 = vrot.slane %v3916_v38, %v8505_v3  ;;  %v3979_v58 = vmul.f32 %v8678_v46, %v8676_v53  ;;  %v3321_v7 = vpop.permute.xlu0 %3320  ;;  %v8694_v46 = vld [vmem:[#allocation42_spill] sm:$0xff] }
 0x32c   : > { %v4000_v36 = vmul.f32 %v7594_v8, %v8676_v53  ;;  %v3820_v26 = vadd.f32 %v8680_v18, %v3790_v29  ;;  %v3949_v17 = vrot.slane %v3937_v52, %v8505_v3  ;;  %v3616_v57 = vrot.slane %v7486_v44, %v8280_v9  ;;  %v8686_v18 = vld [vmem:[#allocation122_spill] sm:$0xff]  ;;  %v8693_v44 = vld [vmem:[#allocation43_spill] sm:$0xff] }
 0x32d   : > { %v3550_v22 = vadd.f32 %v3547_v28, %v3532_v5  ;;  %v7629_v14 = vadd.f32 %v2971_v56, %v2956_v54  ;;  %v3970_v20 = vrot.slane %v3958_v37, %v8505_v3  ;;  %v3991_v38 = vrot.slane %v3979_v58, %v8505_v3 }
 0x32e   : > { %v4012_v2 = vrot.slane %v4000_v36, %v8505_v3  ;;  %v7638_v53 = vadd.f32 %v2662_v34, %v2644_v4  ;;  %v3850_v28 = vadd.f32 %v3847_v31, %v3820_v26  ;;  %v3868_v56 = vmul.f32 %v3865_v16, %v8655_v61  ;;  %v8681_v4 = vld [vmem:[#allocation66_spill] sm:$0xff] }
 0x32f   : > { %8679 = vst [vmem:[#allocation80_spill] sm:$0xff] %v7629_v14  ;;  %v3568_v10 = vadd.f32 %v3565_v39, %v3550_v22  ;;  %v3889_v54 = vmul.f32 %v3886_v60, %v8656_v1  ;;  %v3910_v5 = vmul.f32 %v3907_v30, %v8657_v27  ;;  %v3931_v29 = vmul.f32 %v3928_v41, %v8664_v45  ;;  %v8682_v31 = vld [vmem:[#allocation102_spill] sm:$0xff]  ;;  %v8685_v30 = vld [vmem:[#allocation115_spill] sm:$0xff] }
 0x330   : > { %v4021_v52 = vmul.f32 %v3736_v23, %v7343_v50  ;;  %v3871_v37 = vadd.f32 %v3868_v56, %v3850_v28  ;;  %v3952_v58 = vmul.f32 %v3949_v17, %v8660_v21  ;;  %v3973_v36 = vmul.f32 %v3970_v20, %v8668_v40  ;;  %v8683_v22 = vld [vmem:[#allocation34_spill] sm:$0xff]  ;;  %v8687_v17 = vld [vmem:[#allocation105_spill] sm:$0xff] }
 0x331   : > { %v3994_v39 = vmul.f32 %v3991_v38, %v8670_v24  ;;  %v4015_v34 = vmul.f32 %v4012_v2, %v8681_v4  ;;  %v7651_v16 = vmul.f32 %v8683_v22, %v8682_v31  ;;  %v8684_v60 = vld [vmem:[#allocation114_spill] sm:$0xff]  ;;  %v3356_v45 = vsel %vm3355_vm2, %v3348_v59, %v8685_v30  ;;  %v7663_v38 = vpop.permute.xlu0 %3655  ;;  %v8690_v31 = vld [vmem:[#allocation83_spill] sm:$0xff] }
 0x332   : > { %v3332_v27 = vadd.f32 %v8684_v60, %v7562_v62  ;;  %v3586_v23 = vadd.f32 %v3583_v42, %v3568_v10  ;;  %v3892_v41 = vadd.f32 %v3889_v54, %v3871_v37  ;;  %v7659_v26 = vsel %vm3322_vm0, %v8686_v18, %v3321_v7  ;;  %v7672_v10 = vpop.permute.xlu1 %3657  ;;  %v8689_v54 = vld [vmem:[#allocation64_spill] sm:$0xff]  ;;  %v8691_v60 = vld [vmem:[#allocation33_spill] sm:$0xff]  ;;  %v8692_v30 = vld [vmem:[#allocation127_spill] sm:$0xff] }
 0x333   : > { %v3626_v20 = vrot.slane %v8687_v17, %v8280_v9  ;;  %v4033_v2 = vrot.slane %v4021_v52, %v8505_v3  ;;  %v2672_v28 = vrot.slane %v7651_v16, %v8505_v3  ;;  %v2978_v62 = vrot.slane %v7651_v16, %v8566_v63  ;;  %8688 = vst [vmem:[#allocation108_spill] sm:$0xff] %v7672_v10 }
 0x334   : > { %v3338_v59 = vrot.slane %v7651_v16, %v5639_v47  ;;  %v3913_v42 = vadd.f32 %v3910_v5, %v3892_v41  ;;  %v3619_v7 = vmul.f32 %v3616_v57, %v7659_v26  ;;  %v4040_v18 = vmul.f32 %v8692_v30, %v8691_v60  ;;  %v8695_v41 = vld [vmem:[#allocation31_spill] sm:$0xff] }
 0x335   : > { %v3635_v56 = vmul.f32 %v3626_v20, %v3356_v45  ;;  %v2696_v37 = vmul.f32 %v8689_v54, %v2672_v28  ;;  %v3002_v52 = vmul.f32 %v8690_v31, %v2978_v62  ;;  %v3648_v14 = vrot.slane %v8694_v46, %v8280_v9  ;;  %v8696_v28 = vld [vmem:[#allocation81_spill] sm:$0xff]  ;;  %v3255_v46 = vpop.permute.xlu0 %3254 }
 0x336   : > { %v3362_v22 = vmul.f32 %v3356_v45, %v3338_v59  ;;  %v3934_v17 = vadd.f32 %v3931_v29, %v3913_v42  ;;  %v3663_v57 = vsel %vm3661_vm5, %v7663_v38, %v7672_v10  ;;  %v3604_v5 = vadd.f32 %v7604_v33, %v3586_v23  ;;  %v8697_v29 = vld [vmem:[#allocation22_spill] sm:$0xff]  ;;  %v8698_v42 = vld [vmem:[#allocation137_spill] sm:$0xff] }
 0x337   : > { %v7680_v8 = vadd.f32 %v3635_v56, %v8693_v44  ;;  %v2699_v20 = vadd.f32 %v2696_v37, %v8695_v41  ;;  %v3005_v62 = vadd.f32 %v3002_v52, %v8696_v28  ;;  %v3669_v31 = vmul.f32 %v3663_v57, %v3648_v14  ;;  %v8699_v23 = vld [vmem:[#allocation37_spill] sm:$0xff]  ;;  %v8700_v37 = vld [vmem:[#allocation71_spill] sm:$0xff] }
 0x338   : > { %v3365_v59 = vadd.f32 %v3362_v22, %v3332_v27  ;;  %v3955_v54 = vadd.f32 %v3952_v58, %v3934_v17  ;;  %v4062_v44 = vmul.f32 %v8698_v42, %v8697_v29  ;;  %v3031_v56 = vrot.slane %v7435_v55, %v5639_v47  ;;  %v8701_v22 = vld [vmem:[#allocation30_spill] sm:$0xff]  ;;  %v3354_v55 = vpop.permute.xlu1 %3353  ;;  %v8702_v28 = vld [vmem:[#allocation77_spill] sm:$0xff] }
 0x339   : > { %2702 = vst [vmem:[#allocation3 + $0x38] sm:$0xf] %v2699_v20  ;;  %v3011_v30 = vrot.slane %v3005_v62, 4  ;;  %v4046_v10 = vrot.slane %v4040_v18, %v8505_v3  ;;  %v3049_v33 = vrot.slane %v7438_v12, %v5639_v47  ;;  %v3067_v27 = vrot.slane %v8699_v23, %v5639_v47  ;;  %v8707_v23 = vld [vmem:[#allocation49_spill] sm:$0xff] }
 0x33a   : > { %3368 = vst [vmem:[#allocation3 + $0x28] sm:$0xf] %v3365_v59  ;;  %v3976_v58 = vadd.f32 %v3973_v36, %v3955_v54  ;;  %v4036_v14 = vmul.f32 %v4033_v2, %v7659_v26  ;;  %v3672_v52 = vadd.f32 %v3669_v31, %v8700_v37  ;;  %v3034_v17 = vmul.f32 %v3031_v56, %v8701_v22  ;;  %v8703_v36 = vld [vmem:[#allocation94_spill] sm:$0xff]  ;;  %v8704_v2 = vld [vmem:[#allocation95_spill] sm:$0xff]  ;;  %v3654_v37 = vpop.permute.xlu0 %3653 }
 0x33b   : > { %3017 = vst [vmem:[#allocation3 + $0x38] sm:$0xf0] %v3011_v30  ;;  %v4055_v41 = vmul.f32 %v4046_v10, %v3356_v45  ;;  %v4071_v20 = vrot.slane %v4062_v44, %v8505_v3  ;;  %v3052_v18 = vmul.f32 %v3049_v33, %v8649_v13  ;;  %v3085_v12 = vrot.slane %v8702_v28, %v5639_v47  ;;  %v8705_v45 = vld [vmem:[#allocation44_spill] sm:$0xff] }
 0x33c   : > { %v3997_v62 = vadd.f32 %v3994_v39, %v3976_v58  ;;  %v3678_v59 = vrot.slane %v3672_v52, 4  ;;  %v3103_v54 = vrot.slane %v8703_v36, %v5639_v47  ;;  %v3121_v31 = vrot.slane %v8704_v2, %v5639_v47  ;;  %v8706_v13 = vld [vmem:[#allocation84_spill] sm:$0xff]  ;;  %v8711_v36 = vld [vmem:[#allocation25_spill] sm:$0xff] }
 0x33d   : > { %v3622_v42 = vadd.f32 %v3619_v7, %v3604_v5  ;;  %v3055_v56 = vadd.f32 %v3052_v18, %v3034_v17  ;;  %v3070_v30 = vmul.f32 %v3067_v27, %v8651_v11  ;;  %v3139_v10 = vrot.slane %v8705_v45, %v5639_v47  ;;  %v8708_v5 = vld [vmem:[#allocation27_spill] sm:$0xff]  ;;  %v8709_v27 = vld [vmem:[#allocation48_spill] sm:$0xff]  ;;  %v8713_v45 = vld [vmem:[#allocation10_spill] sm:$0xff] }
 0x33e   : > { %v4018_v44 = vadd.f32 %v4015_v34, %v3997_v62  ;;  %v7714_v33 = vadd.f32 %v4055_v41, %v8706_v13  ;;  %3684 = vst [vmem:[#allocation3 + $0x20] sm:$0xf0] %v3678_v59  ;;  %v4077_v39 = vmul.f32 %v4071_v20, %v3663_v57  ;;  %v3157_v58 = vrot.slane %v8707_v23, %v5639_v47  ;;  %v4100_v20 = vpop.permute.xlu1 %4099 }
 0x33f   : > { %v3073_v52 = vadd.f32 %v3070_v30, %v3055_v56  ;;  %v3088_v22 = vmul.f32 %v3085_v12, %v8485_v19  ;;  %v3175_v7 = vrot.slane %v7448_v0, %v5639_v47  ;;  %v3193_v11 = vrot.slane %v7455_v32, %v5639_v47  ;;  %v8710_v12 = vld [vmem:[#allocation62_spill] sm:$0xff] }
 0x340   : > { %v7724_v34 = vadd.f32 %v4077_v39, %v8708_v5  ;;  %v3106_v17 = vmul.f32 %v3103_v54, %v8709_v27  ;;  %v3124_v57 = vmul.f32 %v3121_v31, %v8653_v49  ;;  %v3211_v41 = vrot.slane %v7460_v25, %v5639_v47  ;;  %v4102_v31 = vpop.permute.xlu0 %4101 }
 0x341   : > { %v4039_v18 = vadd.f32 %v4036_v14, %v4018_v44  ;;  %v3091_v28 = vadd.f32 %v3088_v22, %v3073_v52  ;;  %v3142_v19 = vmul.f32 %v3139_v10, %v8655_v61  ;;  %v3229_v0 = vrot.slane %v7470_v15, %v5639_v47  ;;  %v8712_v14 = vld [vmem:[#allocation124_spill] sm:$0xff]  ;;  %v8714_v44 = vld [vmem:[#allocation150_spill] sm:$0xff] }
 0x342   : > { %v3160_v32 = vmul.f32 %v3157_v58, %v8656_v1  ;;  %v3178_v62 = vmul.f32 %v3175_v7, %v8710_v12  ;;  %v3196_v59 = vmul.f32 %v3193_v11, %v8659_v51  ;;  %v7738_v49 = vmul.f32 %v8711_v36, %v7155_v6  ;;  %v8715_v7 = vld [vmem:[#allocation80_spill] sm:$0xff]  ;;  %v8718_v12 = vld [vmem:[#allocation131_spill] sm:$0xff] }
 0x343   : > { %v3109_v54 = vadd.f32 %v3106_v17, %v3091_v28  ;;  %v3247_v25 = vrot.slane %v7483_v43, %v5639_v47  ;;  %v7744_v61 = vsel %vm3355_vm2, %v8712_v14, %v3354_v55  ;;  %v3634_v15 = vrot.slane %v7584_v48, %v8280_v9 }
 0x344   : > { %v3214_v1 = vmul.f32 %v3211_v41, %v8660_v21  ;;  %v2680_v51 = vrot.slane %v7738_v49, %v8505_v3  ;;  %v2986_v6 = vrot.slane %v7738_v49, %v8566_v63  ;;  %v4042_v2 = vmul.f32 %v8677_v35, %v7343_v50  ;;  %v3660_v35 = vpop.permute.xlu1 %3659 }
 0x345   : > { %v3127_v56 = vadd.f32 %v3124_v57, %v3109_v54  ;;  %v3232_v30 = vmul.f32 %v3229_v0, %v8668_v40  ;;  %v3637_v55 = vmul.f32 %v3634_v15, %v7744_v61  ;;  %v4061_v10 = vmul.f32 %v8713_v45, %v8691_v60 }
 0x346   : > { %v3259_v21 = vsel %vm3256_vm1, %v8714_v44, %v3255_v46  ;;  %v2698_v13 = vmul.f32 %v8670_v24, %v2680_v51  ;;  %v3004_v39 = vmul.f32 %v8681_v4, %v2986_v6  ;;  %v3644_v63 = vrot.slane %v7651_v16, %v8280_v9  ;;  %v8716_v16 = vld [vmem:[#allocation143_spill] sm:$0xff] }
 0x347   : > { %v3145_v23 = vadd.f32 %v3142_v19, %v3127_v56  ;;  %v3640_v58 = vadd.f32 %v3637_v55, %v3622_v42  ;;  %v4054_v40 = vrot.slane %v4042_v2, %v8505_v3  ;;  %v3662_v52 = vsel %vm3661_vm5, %v3654_v37, %v7663_v38  ;;  %v8720_v56 = vld [vmem:[#allocation74_spill] sm:$0xff] }
 0x348   : > { %v2701_v22 = vadd.f32 %v2698_v13, %v7638_v53  ;;  %v3007_v11 = vadd.f32 %v3004_v39, %v8715_v7  ;;  %v4067_v46 = vrot.slane %v4061_v10, %v8505_v3  ;;  %v3668_v24 = vmul.f32 %v3662_v52, %v3644_v63  ;;  %v4098_v53 = vpop.permute.xlu0 %4097  ;;  %v4104_v14 = vpop.permute.xlu1 %4103 }
 0x349   : > { %v3163_v5 = vadd.f32 %v3160_v32, %v3145_v23  ;;  %v4057_v4 = vmul.f32 %v4054_v40, %v7744_v61  ;;  %v4083_v27 = vmul.f32 %v8716_v16, %v8697_v29  ;;  %v4107_v38 = vsel %vm4105_vm7, %v4100_v20, %v4102_v31  ;;  %v8717_v32 = vld [vmem:[#allocation108_spill] sm:$0xff]  ;;  %v4123_v16 = vld [vmem:[#allocation3 + $0x30] sm:$0xff] }
 0x34a   : > { %2704 = vst [vmem:[#allocation3 + $0x40] sm:$0xf] %v2701_v22  ;;  %v3013_v42 = vrot.slane %v3007_v11, 4  ;;  %v3671_v17 = vadd.f32 %v3668_v24, %v7680_v8  ;;  %v4076_v57 = vmul.f32 %v4067_v46, %v3662_v52  ;;  %v3652_v19 = vrot.slane %v7738_v49, %v8280_v9  ;;  %v8719_v8 = vld [vmem:[#allocation149_spill] sm:$0xff]  ;;  %v8721_v23 = vld [vmem:[#allocation116_spill] sm:$0xff] }
 0x34b   : > { %v3181_v37 = vadd.f32 %v3178_v62, %v3163_v5  ;;  %v4060_v41 = vadd.f32 %v4057_v4, %v4039_v18  ;;  %v4092_v28 = vrot.slane %v4083_v27, %v8505_v3  ;;  %v3664_v29 = vsel %vm3661_vm5, %v8717_v32, %v3660_v35  ;;  %v4132_v46 = vld [vmem:[#allocation3 + $0x20] sm:$0xff]  ;;  %v4129_v5 = vld [vmem:[#allocation3 + $0x8] sm:$0xff] }
 0x34c   : > { %3019 = vst [vmem:[#allocation3 + $0x40] sm:$0xf0] %v3013_v42  ;;  %v3677_v0 = vrot.slane %v3671_v17, 4  ;;  %v4063_v36 = vmul.f32 %v8718_v12, %v7343_v50  ;;  %v4082_v54 = vmul.f32 %v8719_v8, %v8691_v60  ;;  %v3670_v18 = vmul.f32 %v3664_v29, %v3652_v19  ;;  %v4125_v4 = vld [vmem:[#allocation3] sm:$0xff]  ;;  %v4121_v27 = vld [vmem:[%s7864_s3] sm:$0xff]  ;;  %v4122_v17 = vld [vmem:[#allocation3 + $0x18] sm:$0xff] }
 0x34d   : > { %v3199_v15 = vadd.f32 %v3196_v59, %v3181_v37  ;;  %v4113_v62 = vmul.f32 %v4107_v38, %v4092_v28  ;;  %v4106_v51 = vsel %vm4105_vm7, %v4098_v53, %v4100_v20  ;;  %v4079_v9 = vadd.f32 %v4076_v57, %v7714_v33  ;;  %v4127_v38 = vld [vmem:[#allocation3 + $0x50] sm:$0xff]  ;;  %v4141_v37 = vpop.permute.xlu0 %4140 }
 0x34e   : > { %3683 = vst [vmem:[#allocation3 + $0x28] sm:$0xf0] %v3677_v0  ;;  %v4075_v6 = vrot.slane %v4063_v36, %v8505_v3  ;;  %v4088_v2 = vrot.slane %v4082_v54, %v8505_v3  ;;  %v4084_v55 = vmul.f32 %v8720_v56, %v7343_v50  ;;  %v3673_v60 = vadd.f32 %v3670_v18, %v3640_v58  ;;  %v8723_v58 = vld [vmem:[#allocation56_spill] sm:$0xff]  ;;  %v4124_v53 = vld [vmem:[#allocation3 + $0x70] sm:$0xff] }
 0x34f   : > { %v3217_v45 = vadd.f32 %v3214_v1, %v3199_v15  ;;  %v4116_v10 = vadd.f32 %v4113_v62, %v7724_v34  ;;  %v4108_v59 = vsel %vm4105_vm7, %v4102_v31, %v4104_v14  ;;  %v3313_v33 = vrot.slane %v7584_v48, %v5639_v47 }
 0x350   : > { %v4078_v44 = vmul.f32 %v4075_v6, %v3664_v29  ;;  %v4112_v13 = vmul.f32 %v4106_v51, %v4088_v2  ;;  %v4096_v20 = vrot.slane %v4084_v55, %v8505_v3  ;;  %v3265_v63 = vmul.f32 %v3259_v21, %v3247_v25 }
 0x351   : > { %v3235_v39 = vadd.f32 %v3232_v30, %v3217_v45  ;;  %4119 = vst [vmem:[#allocation3 + $0x58] sm:$0xf] %v4116_v10  ;;  %v3679_v50 = vrot.slane %v3673_v60, 4  ;;  %v8722_v31 = vrot.slane %v8721_v23, %v5639_v47  ;;  %v3331_v48 = vmul.f32 %v7659_v26, %v3313_v33 }
 0x352   : > { %v4081_v1 = vadd.f32 %v4078_v44, %v4060_v41  ;;  %v4115_v35 = vadd.f32 %v4112_v13, %v4079_v9  ;;  %v4114_v34 = vmul.f32 %v4108_v59, %v4096_v20  ;;  %v3346_v43 = vrot.slane %v7738_v49, %v5639_v47  ;;  %v4128_v47 = vld [vmem:[#allocation3 + $0x38] sm:$0xff] }
 0x353   : > { %v3298_v40 = vmul.f32 %v8723_v58, %v8722_v31  ;;  %v3268_v52 = vadd.f32 %v3265_v63, %v3235_v39  ;;  %3685 = vst [vmem:[#allocation3 + $0x68] sm:$0xf0] %v3679_v50  ;;  %v8727_v49 = vmov 0.0   ;;  %v4130_v57 = vld [vmem:[#allocation3 + $0x40] sm:$0xff] }
 0x354   : > { %4118 = vst [vmem:[#allocation3 + $0x60] sm:$0xf] %v4115_v35  ;;  %v4117_v3 = vadd.f32 %v4114_v34, %v4081_v1  ;;  %v3364_v21 = vmul.f32 %v7744_v61, %v3346_v43  ;;  %v4126_v61 = vld [vmem:[#allocation3 + $0x48] sm:$0xff] }
 0x355   : > { %v3301_v30 = vadd.f32 %v3298_v40, %v3268_v52  ;;  %v4131_v24 = vld [vmem:[#allocation3 + $0x28] sm:$0xff] }
 0x356   : > { %4120 = vst [vmem:[#allocation3 + $0x10] sm:$0xf] %v4117_v3 }
 0x357   : > { %v3334_v25 = vadd.f32 %v3331_v48, %v3301_v30 }
 0x358   : > { %v4135_v22 = vld [vmem:[#allocation3 + $0x58] sm:$0xf] }
 0x359   : > { %v3367_v7 = vadd.f32 %v3364_v21, %v3334_v25  ;;  %4434 = vmatprep.subr.msk.mxu0 %vm8724_vm9, %v4135_v22 }
 0x35b   : > { %3370 = vst [vmem:[#allocation3 + $0x68] sm:$0xf] %v3367_v7  ;;  %v4134_v11 = vld [vmem:[#allocation3 + $0x60] sm:$0xf] }
 0x35c   : > { %4435 = vmatpush1.msk.msra.mxu0 %vm8725_vm12, %v4134_v11 }
 0x35d   : > { %4179 = vmatprep.subr.mxu0 %v4132_v46  ;;  %v4136_v26 = vld [vmem:[#allocation3 + $0x10] sm:$0xf] }
 0x35e   : > { %4180 = vmatpush1.msra.mxu0 %v4131_v24  ;;  %4476 = vmatpush3.msk.msra.mxu1 %vm8726_vm6, %v4136_v26 }
 0x35f   : > { %4181 = vmatprep.subr.mxu0 %v4129_v5  ;;  %4477 = vmatprep.subr.mxu1 %v8727_v49 }
 0x360   : > { %4182 = vmatpush1.msra.mxu0 %v4128_v47 }
 0x361   : > { %4183 = vmatprep.subr.mxu0 %v4126_v61 }
 0x362   : > { %4184 = vmatpush1.msra.mxu0 %v4125_v4  ;;  %v4133_v42 = vld [vmem:[#allocation3 + $0x68] sm:$0xff] }
 0x363   : > { %4185 = vmatprep.subr.mxu0 %v4123_v16  ;;  %4478 = vmatpush3.msra.mxu1 %v4133_v42 }
 0x364   : > { %4186 = vmatpush1.msra.mxu0 %v4122_v17  ;;  %4479 = vmatprep.subr.mxu1 %v8727_v49 }
 0x365   : > { %4436 = vmatmul.mubr.msk.f32.vlgmr.msra.gmra.mxu0 %vm8728_vm8, %v4121_v27  ;;  %4480 = vmatpush3.msra.mxu1 %v4130_v57 }
 0x366   : > { %4481 = vmatprep.subr.mxu1 %v8727_v49 }
 0x367   : > { %4482 = vmatpush3.msra.mxu1 %v4127_v38 }
 0x368   : > { %4483 = vmatprep.subr.mxu1 %v8727_v49 }
 0x369   : > { %4484 = vmatpush3.msra.mxu1 %v4124_v53 }
 0x36a   : > { %4486 = vmatmul.mubr.msk.f32.vlgmr.msra.gmra.mxu1 %vm8729_vm10, %v4121_v27 }
 0x425   : > { %v4221_v41 = vpop.f32.mrf.mxu0 }
 0x426   : > { %v4222_v28 = vadd.f32 %v4221_v41, %v4141_v37 }
 0x427   : > { %v4223_v19 = vpop.f32.mrf.mxu0 }
 0x428   : > { %4296 = vst [vmem:[%s240_s10] sm:$0xff] %v4222_v28  ;;  %v4224_v0 = vadd.f32 %v4223_v19, %v4141_v37 }
 0x42a   : > { %4297 = vst [vmem:[%s240_s10 + $0x8] sm:$0xff] %v4224_v0  ;;  %v4292_v32 = vpop.f32.mrf.mxu1 }
 0x42b   : > { %v4293_v29 = vadd.f32 %v4292_v32, %v4141_v37 }
 0x42c   : > { %v4487_v12 = vpop.f32.mrf.mxu1 }
 0x42d   : > { %4298 = vst [vmem:[%s240_s10 + $0x10] sm:$0xff] %v4293_v29 }
 0x42e   : > { %4626 = shalt.err (!%p4623_p10)
}
 0x42f   : > { %s4627_s26 = scalar_lea.hbm %s7824_s11, 384  ;;  %s4631_s23 = scalar_lea.hbm %s7866_s5, 768 }
 0x430   : > { %p4628_p2 = scmp.ne.s32.totalorder %s7824_s11, %s4627_s26  ;;  %p4632_p7 = scmp.lt.s32.totalorder %s7824_s11, %s7866_s5 }
 0x431   : > { %p4633_p5 = scmp.lt.s32.totalorder %s4631_s23, %s4627_s26 }
 0x432   : > { %p4629_p4 = pnand %p4628_p2, %p8730_p12 }
 0x433   : > { %p4634_p6 = por %p4633_p5, %p4632_p7 }
 0x434   : > { %p4630_p9 = pneg %p4629_p4 }
 0x436   : > { %p4635_p11 = pnand %p4634_p6, %p4630_p9 }
 0x438   : > { %4638 = shalt.err (!%p4635_p11)
}
 0x439   : > { %4495 = dma.vmem_to_hbm [thread:$0]  (%p8730_p12), %s4315_s16, 384, %s7824_s11, %s4300_s12  }
 0x43a PF: > { %s4326_s9 = sand.u32 1, %s4665_s18   ;;  %p8731_p13 = scmp.ne.s32.totalorder %s8158_s30, 0 }
 0x43b   : > { %p8732_p0 = scmp.ge.s32.totalorder %s4677_s21, 2  ;;  %s4327_s10 = scalar_lea.sflag [#allocation6], %s4326_s9 }
 0x43d   : > { %p4502_p1 = pnand %p8732_p0, %p8731_p13 }
 0x43f   : > { %p4503_p3 = pneg %p4502_p1 }
 0x441   : > { %4660 = dma.done.wait (%p4503_p3), %s4327_s10, 384  }
 0x442   : > { %4662 = vsyncadd (%p4503_p3), %s4327_s10, 4294966912  ;;  %p18_p8 = scmp.ge.s32.totalorder %s4774_s24, 4   ;;  %s8733_s18 = smov %s4669_s19 }
 0x443   : > { %s8734_s19 = smov %s4673_s20  ;;  %s8735_s20 = smov %s4786_s27 }
 0x444   : > { %s8736_s21 = smov %s4774_s24  ;;  %20 = sbr.rel (!%p18_p8) target bundleno = 5 (0x5), region = 85 }
 0x449   :  { %4332 = vsyncpa [#allocation5], 1 }
 0x44a   :  { %4334 = vsyncpa [#allocation5 + $0x1], 1 }
 0x44b   :  { %4335 = vsyncpa [#allocation6], 1 }
 0x44c   :  { %4337 = vsyncpa [#allocation6 + $0x1], 1 }

</bundles_post_ra>
